<compile_context>
chip_gen: v5e
topology: v5e:2x2
jax: 0.10.0
libtpu: 0.0.40
codegen_flags: <defaults>
</compile_context>

<pallas_src>
from functools import partial

import jax
import jax.numpy as jnp
from jax.experimental import pallas as pl
from jax.experimental.pallas import tpu as pltpu


# ----------------------------------------------------------------------------------
# helpers
# ----------------------------------------------------------------------------------

def _round_up(x, m):
    return ((x + m - 1) // m) * m


# ----------------------------------------------------------------------------------
# Pallas kernels
# ----------------------------------------------------------------------------------

def _conv_kernel(x_ref, w_ref, y_ref, s_ref, q_ref, *, KH, OH, OH_a, out_act):
    """Direct conv as KH banded matmuls on a whole-image VMEM block.

    x_ref: (Hp_a, Wp*Cin) bf16   padded input rows for one image
    w_ref: (KH, Wp*Cin, OW*Cout) bf16  block-Toeplitz ("banded") weights
    y_ref: (OH_a, OW*Cout) bf16  raw (or activated) conv output
    s_ref/q_ref: (1, 1, OW*Cout) f32  per-lane sum / sum-of-squares (BN stats)
    """
    acc = jnp.dot(x_ref[pl.ds(0, OH), :], w_ref[0],
                  preferred_element_type=jnp.float32)
    for ki in range(1, KH):
        acc = acc + jnp.dot(x_ref[pl.ds(ki, OH), :], w_ref[ki],
                            preferred_element_type=jnp.float32)

    # fused BatchNorm statistics of the raw conv output (f32 accumulator)
    s_ref[0] = jnp.sum(acc, axis=0, keepdims=True)
    q_ref[0] = jnp.sum(acc * acc, axis=0, keepdims=True)

    if out_act == "leaky":          # fused activation when no BN follows
        acc = jnp.where(acc >= 0.0, acc, 0.2 * acc)

    y = acc.astype(y_ref.dtype)
    if OH_a != OH:
        y = jnp.concatenate(
            [y, jnp.zeros((OH_a - OH, y.shape[1]), y.dtype)], axis=0)
    y_ref[...] = y


def _bn_leaky_kernel(x_ref, sc_ref, sh_ref, o_ref):
    y = x_ref[...].astype(jnp.float32) * sc_ref[...] + sh_ref[...]
    y = jnp.where(y >= 0.0, y, 0.2 * y)
    o_ref[...] = y.astype(o_ref.dtype)


def _combine_kernel(a_ref, b_ref, sa_ref, ba_ref, sb_ref, bb_ref, o_ref):
    """DownBlockComp epilogue: (leaky(bn(main)) + leaky(bn(direct))) / 2, one pass."""
    a = a_ref[...].astype(jnp.float32) * sa_ref[...] + ba_ref[...]
    b = b_ref[...].astype(jnp.float32) * sb_ref[...] + bb_ref[...]
    a = jnp.where(a >= 0.0, a, 0.2 * a)
    b = jnp.where(b >= 0.0, b, 0.2 * b)
    o_ref[...] = ((a + b) * 0.5).astype(o_ref.dtype)


# ----------------------------------------------------------------------------------
# Pallas call wrappers
# ----------------------------------------------------------------------------------

def _to_rows(x_nhwc, pad, s2d):
    """NHWC -> bf16 2D row slab (N*Hp_a, Wp*C), spatially padded (+space-to-depth)."""
    x = x_nhwc.astype(jnp.bfloat16)
    N = x.shape[0]
    if pad:
        x = jnp.pad(x, ((0, 0), (pad, pad), (pad, pad), (0, 0)))
    if s2d:
        _, Hp, Wp, C0 = x.shape
        x = x.reshape(N, Hp // 2, 2, Wp // 2, 2, C0)
        x = x.transpose(0, 1, 3, 2, 4, 5).reshape(N, Hp // 2, Wp // 2, 4 * C0)
    _, Hp, Wp, Ce = x.shape
    Hp_a = max(_round_up(Hp, 16), 16)
    if Hp_a != Hp:
        x = jnp.pad(x, ((0, 0), (0, Hp_a - Hp), (0, 0), (0, 0)))
    return x.reshape(N * Hp_a, Wp * Ce)


def _rows_to_nhwc(y2d, N, OH, OH_a, OW, C):
    return y2d.reshape(N, OH_a, OW, C)[:, :OH]


def pallas_conv(x_nhwc, plan):
    """Run one conv layer (fused stats) for the whole batch: grid over N images."""
    N = x_nhwc.shape[0]
    x2d = _to_rows(x_nhwc, plan["pad"], plan["s2d"])
    Hp_a, L_in = plan["Hp_a"], plan["L_in"]
    assert x2d.shape == (N * Hp_a, L_in), (x2d.shape, N, Hp_a, L_in)
    OH_a, L_out, KH = plan["OH_a"], plan["L_out"], plan["KH"]

    y, s, q = pl.pallas_call(
        plan["kernel"],
        out_shape=(jax.ShapeDtypeStruct((N * OH_a, L_out), jnp.bfloat16),
                   jax.ShapeDtypeStruct((N, 1, L_out), jnp.float32),
                   jax.ShapeDtypeStruct((N, 1, L_out), jnp.float32)),
        grid_spec=pltpu.PrefetchScalarGridSpec(
            num_scalar_prefetch=0,
            grid=(N,),
            in_specs=[pl.BlockSpec((Hp_a, L_in), lambda n: (n, 0)),
                      pl.BlockSpec((KH, L_in, L_out), lambda n: (0, 0, 0))],
            out_specs=(pl.BlockSpec((OH_a, L_out), lambda n: (n, 0)),
                       pl.BlockSpec((1, 1, L_out), lambda n: (n, 0, 0)),
                       pl.BlockSpec((1, 1, L_out), lambda n: (n, 0, 0)))),
        compiler_params=pltpu.CompilerParams(
            dimension_semantics=("parallel",)),
    )(x2d, plan["wb"])
    return y, s, q


def pallas_bn_leaky(y2d, scale_l, shift_l, block_rows):
    R, L = y2d.shape
    return pl.pallas_call(
        _bn_leaky_kernel,
        out_shape=jax.ShapeDtypeStruct((R, L), jnp.bfloat16),
        grid_spec=pltpu.PrefetchScalarGridSpec(
            num_scalar_prefetch=0,
            grid=(R // block_rows,),
            in_specs=[pl.BlockSpec((block_rows, L), lambda i: (i, 0)),
                      pl.BlockSpec((1, L), lambda i: (0, 0)),
                      pl.BlockSpec((1, L), lambda i: (0, 0))],
            out_specs=pl.BlockSpec((block_rows, L), lambda i: (i, 0))),
        compiler_params=pltpu.CompilerParams(dimension_semantics=("parallel",)),
    )(y2d, scale_l, shift_l)


def pallas_combine(a2d, b2d, sa, ba, sb, bb, block_rows):
    R, L = a2d.shape
    return pl.pallas_call(
        _combine_kernel,
        out_shape=jax.ShapeDtypeStruct((R, L), jnp.bfloat16),
        grid_spec=pltpu.PrefetchScalarGridSpec(
            num_scalar_prefetch=0,
            grid=(R // block_rows,),
            in_specs=[pl.BlockSpec((block_rows, L), lambda i: (i, 0)),
                      pl.BlockSpec((block_rows, L), lambda i: (i, 0)),
                      pl.BlockSpec((1, L), lambda i: (0, 0)),
                      pl.BlockSpec((1, L), lambda i: (0, 0)),
                      pl.BlockSpec((1, L), lambda i: (0, 0)),
                      pl.BlockSpec((1, L), lambda i: (0, 0))],
            out_specs=pl.BlockSpec((block_rows, L), lambda i: (i, 0))),
        compiler_params=pltpu.CompilerParams(dimension_semantics=("parallel",)),
    )(a2d, b2d, sa, ba, sb, bb)


# ----------------------------------------------------------------------------------
# Conv "plans": precomputed block-Toeplitz (banded) weights + static geometry.
# Built ONCE outside the forward pass (feedback: keep weight prep off the hot path).
# ----------------------------------------------------------------------------------

def _banded_weight(w_khkwcico, Wp, OW):
    """Wb[ki, (j+kj)*Cin+ci, j*Cout+co] = w[ki, kj, ci, co]."""
    KH, KW, Cin, Cout = w_khkwcico.shape
    j = jnp.arange(OW)
    p = jnp.arange(Wp)
    Wb = jnp.zeros((KH, Wp, Cin, OW, Cout), jnp.float32)
    for kj in range(KW):
        E = (p[:, None] == (j[None, :] + kj)).astype(jnp.float32)    # (Wp, OW)
        Wb = Wb + jnp.einsum("pj,kcd->kpcjd", E,
                             w_khkwcico[:, kj].astype(jnp.float32))
    return Wb.reshape(KH, Wp * Cin, OW * Cout).astype(jnp.bfloat16)


def _plan_conv(w_oihw, H, W, *, stride, pad, out_act="none"):
    OC, IC, KH, KW = w_oihw.shape
    w = jnp.transpose(w_oihw, (2, 3, 1, 0))            # (KH, KW, IC, OC)
    if stride == 2:
        assert KH == 4 and KW == 4 and pad == 1
        # 4x4 stride-2 conv == 2x2 stride-1 conv on space-to-depth input
        w = w.reshape(2, 2, 2, 2, IC, OC)               # (a, p, b, q, IC, OC)
        w = w.transpose(0, 2, 1, 3, 4, 5)               # (a, b, p, q, IC, OC)
        w = w.reshape(2, 2, 4 * IC, OC)
        KHe, Cine = 2, 4 * IC
        Hp_in, Wp_in = (H + 2) // 2, (W + 2) // 2
        OH, OW = H // 2, W // 2
        s2d, padv = True, 1
    else:
        KHe, Cine = KH, IC
        Hp_in, Wp_in = H + 2 * pad, W + 2 * pad
        OH, OW = Hp_in - KH + 1, Wp_in - KW + 1
        s2d, padv = False, pad

    Hp_a = max(_round_up(Hp_in, 16), 16)
    OH_a = max(_round_up(OH, 16), 16)
    wb = _banded_weight(w, Wp_in, OW)
    return dict(
        wb=wb, KH=KHe, pad=padv, s2d=s2d, OH=OH, OW=OW, OC=OC,
        Hp_a=Hp_a, OH_a=OH_a, L_in=Wp_in * Cine, L_out=OW * OC,
        kernel=partial(_conv_kernel, KH=KHe, OH=OH, OH_a=OH_a, out_act=out_act),
    )


# ----------------------------------------------------------------------------------
# JAX glue: BN math on tiny vectors, pooling, blocks, tiny heads (plain jnp)
# ----------------------------------------------------------------------------------

def _bn_scale_shift(s, q, count, OW, C, gamma, beta, eps=1e-5):
    """Fold the kernel's per-lane stats into per-channel BN scale/shift (tiled to lanes)."""
    ssum = s.sum(axis=(0, 1)).reshape(OW, C).sum(axis=0)
    qsum = q.sum(axis=(0, 1)).reshape(OW, C).sum(axis=0)
    mean = ssum / count
    # TODO(synk): E[x^2]-E[x]^2 can cancel for huge activations; fine at these scales.
    var = jnp.maximum(qsum / count - mean * mean, 0.0)
    scale = gamma.astype(jnp.float32) / jnp.sqrt(var + eps)
    shift = beta.astype(jnp.float32) - mean * scale
    return jnp.tile(scale, OW)[None, :], jnp.tile(shift, OW)[None, :]


def avg_pool2(x):
    N, H, W, C = x.shape
    return x.astype(jnp.float32).reshape(N, H // 2, 2, W // 2, 2, C).mean(axis=(2, 4))


def adaptive_avg_pool4(x):
    N, H, W, C = x.shape
    return x.astype(jnp.float32).reshape(N, 4, H // 4, 4, W // 4, C).mean(axis=(2, 4))


def run_conv_act(x_nhwc, plan):
    """conv + fused LeakyReLU (no BN) — stem / down_from_small[0]."""
    N = x_nhwc.shape[0]
    y, _, _ = pallas_conv(x_nhwc, plan)
    return _rows_to_nhwc(y, N, plan["OH"], plan["OH_a"], plan["OW"], plan["OC"])


def run_conv_bn_act(x_nhwc, plan, gamma, beta):
    """conv (fused stats) + fused BN-apply/LeakyReLU — DownBlock."""
    N = x_nhwc.shape[0]
    y, s, q = pallas_conv(x_nhwc, plan)
    sc, sh = _bn_scale_shift(s, q, N * plan["OH"] * plan["OW"],
                             plan["OW"], plan["OC"], gamma, beta)
    a = pallas_bn_leaky(y, sc, sh, plan["OH_a"])
    return _rows_to_nhwc(a, N, plan["OH"], plan["OH_a"], plan["OW"], plan["OC"])


def down_block_comp(x_nhwc, plans, p):
    N = x_nhwc.shape[0]
    pm1, pm2, pd = plans["m1"], plans["m2"], plans["d"]
    # main branch
    y1, s1, q1 = pallas_conv(x_nhwc, pm1)
    sc1, sh1 = _bn_scale_shift(s1, q1, N * pm1["OH"] * pm1["OW"],
                               pm1["OW"], pm1["OC"], p["g1"], p["b1"])
    m1 = pallas_bn_leaky(y1, sc1, sh1, pm1["OH_a"])
    m1 = _rows_to_nhwc(m1, N, pm1["OH"], pm1["OH_a"], pm1["OW"], pm1["OC"])
    y2, s2, q2 = pallas_conv(m1, pm2)
    sc2, sh2 = _bn_scale_shift(s2, q2, N * pm2["OH"] * pm2["OW"],
                               pm2["OW"], pm2["OC"], p["g2"], p["b2"])
    # direct branch
    xd = avg_pool2(x_nhwc)
    y3, s3, q3 = pallas_conv(xd, pd)
    sc3, sh3 = _bn_scale_shift(s3, q3, N * pd["OH"] * pd["OW"],
                               pd["OW"], pd["OC"], p["g3"], p["b3"])
    out = pallas_combine(y2, y3, sc2, sh2, sc3, sh3, pm2["OH_a"])
    return _rows_to_nhwc(out, N, pm2["OH"], pm2["OH_a"], pm2["OW"], pm2["OC"])


# Tiny heads in plain JAX per perf review (M = 2..32; a Pallas launch would cost more).
def se_block(feat_small, feat_big, p):
    pooled = adaptive_avg_pool4(feat_small)                         # (N,4,4,Cin)
    y = jnp.einsum("nhwc,ochw->no", pooled, p["w1"].astype(jnp.float32))
    y = y * jax.nn.sigmoid(y)                                       # Swish
    z = y @ p["w2"][:, :, 0, 0].astype(jnp.float32).T
    gate = jax.nn.sigmoid(z)                                        # (N, Cout)
    return feat_big.astype(jnp.float32) * gate[:, None, None, :]


def rf_big(feat_last, p, eps=1e-5):
    x = feat_last.astype(jnp.float32)                               # (N,4,4,64)
    y = jnp.einsum("nhwc,oc->nhwo", x, p["w1"][:, :, 0, 0].astype(jnp.float32))
    mean = y.mean(axis=(0, 1, 2))
    var = y.var(axis=(0, 1, 2))                                     # biased, like training BN
    yn = (y - mean) * (p["g"] / jnp.sqrt(var + eps)) + p["b"]
    yl = jnp.where(yn >= 0.0, yn, 0.2 * yn)
    return jnp.einsum("nhwc,ochw->no", yl, p["w2"].astype(jnp.float32)).reshape(-1)


def rf_small(feat_small, w):
    return jnp.einsum("nhwc,ochw->no", feat_small.astype(jnp.float32),
                      w.astype(jnp.float32)).reshape(-1)


# ----------------------------------------------------------------------------------
# Parameters (deterministic, synthetic).  spectral_norm is approximated with a
# deterministic power iteration (PyTorch uses a persistent random `u` vector).
# ----------------------------------------------------------------------------------

def spectral_normalize(w, iters=3, eps=1e-12):
    oc = w.shape[0]
    wm = w.reshape(oc, -1)
    u = jnp.ones((oc,), jnp.float32) / jnp.sqrt(jnp.float32(oc))
    for _ in range(iters):
        v = wm.T @ u
        v = v / (jnp.linalg.norm(v) + eps)
        u = wm @ v
        u = u / (jnp.linalg.norm(u) + eps)
    sigma = u @ (wm @ v)
    return w / sigma


def make_params(key, ndf=8, nc=3):
    nfc_multi = {4: 16, 8: 16, 16: 8, 32: 4, 64: 2, 128: 1, 256: 0.5, 512: 0.25, 1024: 0.125}
    nfc = {k: int(v * ndf) for k, v in nfc_multi.items()}
    keys = iter(jax.random.split(key, 64))

    def cw(oc, ic, k):
        std = 1.0 / ((ic * k * k) ** 0.5)
        w = jax.random.normal(next(keys), (oc, ic, k, k), jnp.float32) * std
        return spectral_normalize(w)

    def bn(c):
        return jnp.ones((c,), jnp.float32), jnp.zeros((c,), jnp.float32)

    def dbc(ci, co):
        g1, b1 = bn(co); g2, b2 = bn(co); g3, b3 = bn(co)
        return dict(w_m1=cw(co, ci, 4), g1=g1, b1=b1,
                    w_m2=cw(co, co, 3), g2=g2, b2=b2,
                    w_d=cw(co, ci, 1), g3=g3, b3=b3)

    def db(ci, co):
        g, b = bn(co)
        return dict(w=cw(co, ci, 4), g=g, b=b)

    def se(ci, co):
        return dict(w1=cw(co, ci, 4), w2=cw(co, co, 1))

    g_rf, b_rf = bn(nfc[8])
    params = dict(
        dfb_w=cw(nfc[512], nc, 3),                   # down_from_big (im_size=256 branch)
        d4=dbc(nfc[512], nfc[256]),
        d8=dbc(nfc[256], nfc[128]),
        d16=dbc(nfc[128], nfc[64]),
        d32=dbc(nfc[64], nfc[32]),
        d64=dbc(nfc[32], nfc[16]),
        rfb=dict(w1=cw(nfc[8], nfc[16], 1), g=g_rf, b=b_rf, w2=cw(1, nfc[8], 4)),
        se16=se(nfc[512], nfc[64]),
        se32=se(nfc[256], nfc[32]),
        se64=se(nfc[128], nfc[16]),
        dfs=dict(w0=cw(nfc[256], nc, 4),
                 db1=db(nfc[256], nfc[128]),
                 db2=db(nfc[128], nfc[64]),
                 db3=db(nfc[64], nfc[32])),
        rfs_w=cw(1, nfc[32], 4),
    )
    # TODO(synk): decoder_big / decoder_small / decoder_part params exist in the
    # PyTorch __init__ but are only used in the (unimplemented) 'real' path.
    return params


def prepare_plans(params, big_hw=128, small_hw=64):
    plans = {}
    plans["stem"] = _plan_conv(params["dfb_w"], big_hw, big_hw,
                               stride=1, pad=1, out_act="leaky")

    def dbc(p, H):
        return dict(m1=_plan_conv(p["w_m1"], H, H, stride=2, pad=1),
                    m2=_plan_conv(p["w_m2"], H // 2, H // 2, stride=1, pad=1),
                    d=_plan_conv(p["w_d"], H // 2, H // 2, stride=1, pad=0))

    plans["d4"] = dbc(params["d4"], big_hw)
    plans["d8"] = dbc(params["d8"], big_hw // 2)
    plans["d16"] = dbc(params["d16"], big_hw // 4)
    plans["d32"] = dbc(params["d32"], big_hw // 8)
    plans["d64"] = dbc(params["d64"], big_hw // 16)
    plans["dfs0"] = _plan_conv(params["dfs"]["w0"], small_hw, small_hw,
                               stride=2, pad=1, out_act="leaky")
    plans["dfs1"] = _plan_conv(params["dfs"]["db1"]["w"], small_hw // 2, small_hw // 2,
                               stride=2, pad=1)
    plans["dfs2"] = _plan_conv(params["dfs"]["db2"]["w"], small_hw // 4, small_hw // 4,
                               stride=2, pad=1)
    plans["dfs3"] = _plan_conv(params["dfs"]["db3"]["w"], small_hw // 8, small_hw // 8,
                               stride=2, pad=1)
    return plans


# ----------------------------------------------------------------------------------
# Forward (label != 'real' path of Discriminator4.forward)
# ----------------------------------------------------------------------------------

def discriminator4_forward(params, plans, imgs_nchw, label="fake"):
    if label == "real":
        # TODO(synk): Gaussian-pyramid decomposition + decoder reconstructions.
        raise NotImplementedError("'real' path not implemented")
    minuends = [jnp.transpose(x, (0, 2, 3, 1)) for x in imgs_nchw]   # NCHW -> NHWC
    rf_list = []
    for big in minuends[:-5]:
        feat_2 = run_conv_act(big, plans["stem"])
        feat_4 = down_block_comp(feat_2, plans["d4"], params["d4"])
        feat_8 = down_block_comp(feat_4, plans["d8"], params["d8"])
        feat_16 = down_block_comp(feat_8, plans["d16"], params["d16"])
        feat_16 = se_block(feat_2, feat_16, params["se16"])
        feat_32 = down_block_comp(feat_16, plans["d32"], params["d32"])
        feat_32 = se_block(feat_4, feat_32, params["se32"])
        feat_last = down_block_comp(feat_32, plans["d64"], params["d64"])
        feat_last = se_block(feat_8, feat_last, params["se64"])
        rf_list.append(rf_big(feat_last, params["rfb"]))
    for small in minuends[-5:-3]:
        f = run_conv_act(small, plans["dfs0"])
        f = run_conv_bn_act(f, plans["dfs1"], params["dfs"]["db1"]["g"], params["dfs"]["db1"]["b"])
        f = run_conv_bn_act(f, plans["dfs2"], params["dfs"]["db2"]["g"], params["dfs"]["db2"]["b"])
        f = run_conv_bn_act(f, plans["dfs3"], params["dfs"]["db3"]["g"], params["dfs"]["db3"]["b"])
        rf_list.append(rf_small(f, params["rfs_w"]))
    return jnp.concatenate(rf_list)


# ----------------------------------------------------------------------------------
if __name__ == "__main__":
    key = jax.random.PRNGKey(0)
    pkey, dkey = jax.random.split(key)
    params = make_params(pkey, ndf=8, nc=3)
    plans = prepare_plans(params, big_hw=128, small_hw=64)

    # Fake-label path: imgs is a list (pyramid-like) of images.  minuends[:-5] goes
    # through the big branch, minuends[-5:-3] through the small branch.
    shapes = [(2, 3, 128, 128), (2, 3, 64, 64), (2, 3, 64, 64),
              (2, 3, 32, 32), (2, 3, 16, 16), (2, 3, 8, 8)]
    ikeys = jax.random.split(dkey, len(shapes))
    imgs = [jax.random.normal(k, s, jnp.float32) for k, s in zip(ikeys, shapes)]

    out = discriminator4_forward(params, plans, imgs, label="fake")
    out = jax.block_until_ready(out)
    assert out.shape == (6,) and bool(jnp.all(jnp.isfinite(out)))
    print("KERNEL_OK")
</pallas_src>

<mosaic_0001>
module attributes {stable_mosaic.version = 11 : i64} {
  func.func @_conv_kernel(%arg0: i32, %arg1: memref<144x390xbf16, #tpu.memory_space<vmem>>, %arg2: memref<3x390x256xbf16, #tpu.memory_space<vmem>>, %arg3: memref<128x256xbf16, #tpu.memory_space<vmem>>, %arg4: memref<1x1x256xf32, #tpu.memory_space<vmem>>, %arg5: memref<1x1x256xf32, #tpu.memory_space<vmem>>) attributes {dimension_semantics = [#tpu.dimension_semantics<parallel>], iteration_bounds = array<i64: 2>, scalar_prefetch = 0 : i64, scratch_operands = 0 : i64, tpu.core_type = #tpu.core_type<tc>, window_params = [{transform_indices = @transform_0, window_bounds = array<i64: 144, 390>}, {pipeline_mode = #tpu.pipeline_mode<synchronous>, transform_indices = @transform_1, window_bounds = array<i64: 3, 390, 256>}, {transform_indices = @transform_2, window_bounds = array<i64: 128, 256>}, {transform_indices = @transform_3, window_bounds = array<i64: 1, 1, 256>}, {transform_indices = @transform_4, window_bounds = array<i64: 1, 1, 256>}]} {
    %c0 = arith.constant 0 : index
    %c0_0 = arith.constant 0 : index
    %0 = vector.load %arg1[%c0, %c0_0] : memref<144x390xbf16, #tpu.memory_space<vmem>>, vector<128x390xbf16>
    %c0_1 = arith.constant 0 : index
    %c0_2 = arith.constant 0 : index
    %c0_3 = arith.constant 0 : index
    %1 = vector.load %arg2[%c0_1, %c0_2, %c0_3] : memref<3x390x256xbf16, #tpu.memory_space<vmem>>, vector<1x390x256xbf16>
    %2 = vector.shape_cast %1 : vector<1x390x256xbf16> to vector<390x256xbf16>
    %cst = arith.constant dense<0.000000e+00> : vector<128x256xf32>
    %3 = tpu.matmul %0, %2, %cst {dimension_numbers = #tpu.dot_dimension_numbers<[1], [0], [0], [1], [0, 0, 1, 1], [], []>} : vector<128x390xbf16>, vector<390x256xbf16>, vector<128x256xf32> -> vector<128x256xf32>
    %c1 = arith.constant 1 : index
    %c0_4 = arith.constant 0 : index
    %4 = vector.load %arg1[%c1, %c0_4] : memref<144x390xbf16, #tpu.memory_space<vmem>>, vector<128x390xbf16>
    %c1_5 = arith.constant 1 : index
    %c0_6 = arith.constant 0 : index
    %c0_7 = arith.constant 0 : index
    %5 = vector.load %arg2[%c1_5, %c0_6, %c0_7] : memref<3x390x256xbf16, #tpu.memory_space<vmem>>, vector<1x390x256xbf16>
    %6 = vector.shape_cast %5 : vector<1x390x256xbf16> to vector<390x256xbf16>
    %cst_8 = arith.constant dense<0.000000e+00> : vector<128x256xf32>
    %7 = tpu.matmul %4, %6, %cst_8 {dimension_numbers = #tpu.dot_dimension_numbers<[1], [0], [0], [1], [0, 0, 1, 1], [], []>} : vector<128x390xbf16>, vector<390x256xbf16>, vector<128x256xf32> -> vector<128x256xf32>
    %8 = arith.addf %3, %7 : vector<128x256xf32>
    %c2 = arith.constant 2 : index
    %c0_9 = arith.constant 0 : index
    %9 = vector.load %arg1[%c2, %c0_9] : memref<144x390xbf16, #tpu.memory_space<vmem>>, vector<128x390xbf16>
    %c2_10 = arith.constant 2 : index
    %c0_11 = arith.constant 0 : index
    %c0_12 = arith.constant 0 : index
    %10 = vector.load %arg2[%c2_10, %c0_11, %c0_12] : memref<3x390x256xbf16, #tpu.memory_space<vmem>>, vector<1x390x256xbf16>
    %11 = vector.shape_cast %10 : vector<1x390x256xbf16> to vector<390x256xbf16>
    %cst_13 = arith.constant dense<0.000000e+00> : vector<128x256xf32>
    %12 = tpu.matmul %9, %11, %cst_13 {dimension_numbers = #tpu.dot_dimension_numbers<[1], [0], [0], [1], [0, 0, 1, 1], [], []>} : vector<128x390xbf16>, vector<390x256xbf16>, vector<128x256xf32> -> vector<128x256xf32>
    %13 = arith.addf %8, %12 : vector<128x256xf32>
    %cst_14 = arith.constant dense<0.000000e+00> : vector<256xf32>
    %14 = vector.multi_reduction <add>, %13, %cst_14 [0] : vector<128x256xf32> to vector<256xf32>
    %15 = vector.shape_cast %14 : vector<256xf32> to vector<1x256xf32>
    %c0_15 = arith.constant 0 : index
    %c0_16 = arith.constant 0 : index
    %c0_17 = arith.constant 0 : index
    %16 = vector.load %arg4[%c0_15, %c0_16, %c0_17] : memref<1x1x256xf32, #tpu.memory_space<vmem>>, vector<1x1x256xf32>
    %17 = vector.shape_cast %16 : vector<1x1x256xf32> to vector<1x256xf32>
    %18 = vector.shape_cast %15 : vector<1x256xf32> to vector<1x1x256xf32>
    tpu.vector_store %arg4[%c0_15, %c0_16, %c0_17], %18 {strides = array<i32>} : memref<1x1x256xf32, #tpu.memory_space<vmem>>, vector<1x1x256xf32>,
    %19 = arith.mulf %13, %13 : vector<128x256xf32>
    %cst_18 = arith.constant dense<0.000000e+00> : vector<256xf32>
    %20 = vector.multi_reduction <add>, %19, %cst_18 [0] : vector<128x256xf32> to vector<256xf32>
    %21 = vector.shape_cast %20 : vector<256xf32> to vector<1x256xf32>
    %c0_19 = arith.constant 0 : index
    %c0_20 = arith.constant 0 : index
    %c0_21 = arith.constant 0 : index
    %22 = vector.load %arg5[%c0_19, %c0_20, %c0_21] : memref<1x1x256xf32, #tpu.memory_space<vmem>>, vector<1x1x256xf32>
    %23 = vector.shape_cast %22 : vector<1x1x256xf32> to vector<1x256xf32>
    %24 = vector.shape_cast %21 : vector<1x256xf32> to vector<1x1x256xf32>
    tpu.vector_store %arg5[%c0_19, %c0_20, %c0_21], %24 {strides = array<i32>} : memref<1x1x256xf32, #tpu.memory_space<vmem>>, vector<1x1x256xf32>,
    %cst_22 = arith.constant 0.000000e+00 : f32
    %25 = vector.broadcast %cst_22 : f32 to vector<128x256xf32>
    %26 = arith.cmpf oge, %13, %25 : vector<128x256xf32>
    %cst_23 = arith.constant 2.000000e-01 : f32
    %27 = vector.broadcast %cst_23 : f32 to vector<128x256xf32>
    %28 = arith.mulf %27, %13 : vector<128x256xf32>
    %29 = arith.select %26, %13, %28 : vector<128x256xi1>, vector<128x256xf32>
    %30 = arith.truncf %29 : vector<128x256xf32> to vector<128x256xbf16>
    %c0_24 = arith.constant 0 : index
    %c0_25 = arith.constant 0 : index
    %31 = vector.load %arg3[%c0_24, %c0_25] : memref<128x256xbf16, #tpu.memory_space<vmem>>, vector<128x256xbf16>
    tpu.vector_store %arg3[%c0_24, %c0_25], %30 {strides = array<i32>} : memref<128x256xbf16, #tpu.memory_space<vmem>>, vector<128x256xbf16>,
    return
  }
  func.func @transform_0(%arg0: i32) -> (i32, i32) {
    %c0_i32 = arith.constant 0 : i32
    %c0_i32_0 = arith.constant 0 : i32
    return %arg0, %c0_i32 : i32, i32
  }
  func.func @transform_1(%arg0: i32) -> (i32, i32, i32) {
    %c0_i32 = arith.constant 0 : i32
    %c0_i32_0 = arith.constant 0 : i32
    %c0_i32_1 = arith.constant 0 : i32
    %c0_i32_2 = arith.constant 0 : i32
    return %c0_i32, %c0_i32_0, %c0_i32_1 : i32, i32, i32
  }
  func.func @transform_2(%arg0: i32) -> (i32, i32) {
    %c0_i32 = arith.constant 0 : i32
    %c0_i32_0 = arith.constant 0 : i32
    return %arg0, %c0_i32 : i32, i32
  }
  func.func @transform_3(%arg0: i32) -> (i32, i32, i32) {
    %c0_i32 = arith.constant 0 : i32
    %c0_i32_0 = arith.constant 0 : i32
    %c0_i32_1 = arith.constant 0 : i32
    return %arg0, %c0_i32, %c0_i32_0 : i32, i32, i32
  }
  func.func @transform_4(%arg0: i32) -> (i32, i32, i32) {
    %c0_i32 = arith.constant 0 : i32
    %c0_i32_0 = arith.constant 0 : i32
    %c0_i32_1 = arith.constant 0 : i32
    return %arg0, %c0_i32, %c0_i32_0 : i32, i32, i32
  }
}

</mosaic_0001>

<bundles_post_ra>
// kernel: tpu_custom_call.1
= control target key start
LH: loop header
LB: loop body
LE: loop exit
PB: predicated region body
PF: predicated region fallthrough
CT: control target
= control target key end

     0   :  { %10 = vsyncpa [#allocation3], 0  ;;  %s6029_s0 = inlined_call_operand.hbm [shape: bf16[288,390], index: 0, kind: input, shape index: {}]   ;;  %s6030_s1 = inlined_call_operand.hbm [shape: bf16[3,390,256], index: 1, kind: input, shape index: {}]   ;;  %s6031_s2 = inlined_call_operand.hbm [shape: bf16[256,256], index: 2, kind: output, shape index: {0}]   ;;  %s6032_s3 = inlined_call_operand.hbm [shape: f32[2,1,256], index: 3, kind: output, shape index: {1}]   ;;  %s6033_s4 = inlined_call_operand.hbm [shape: f32[2,1,256], index: 4, kind: output, shape index: {2}]  }
   0x1   :  { %12 = vsyncpa [#allocation3 + $0x1], 0 }
   0x2   :  { %13 = vsyncpa [#allocation6], 0 }
   0x3   :  { %14 = vsyncpa [#allocation4], 0 }
   0x4   :  { %16 = vsyncpa [#allocation4 + $0x1], 0 }
   0x5   :  { %17 = vsyncpa [#allocation9], 0 }
   0x6   :  { %19 = vsyncpa [#allocation9 + $0x1], 0  ;;  %s4726_s15 = smov 0   ;;  %s4728_s16 = smov 0  }
   0x7   :  { %s4730_s17 = smov 0   ;;  %s4732_s18 = smov 0  }
   0x8 LB: > { %s4747_s19 = sadd.s32 4294967295, %s4692_s18   ;;  %s6034_s20 = sadd.s32 4294967294, %s4692_s18   ;;  %s4692_s18 = sphi %s4732_s18, %s6239_s18   ;;  %s4688_s17 = sphi %s4730_s17, %s6238_s17   ;;  %s4684_s16 = sphi %s4728_s16, %s6237_s16   ;;  %s4680_s15 = sphi %s4726_s15, %s6236_s15  }
   0x9   : > { %p45_p0 = scmp.ne.s32.totalorder %s4684_s16, %s4680_s15  ;;  %p46_p1 = scmp.eq.s32.totalorder %s4747_s19, 0 }
   0xa   : > { %p90_p2 = scmp.eq.s32.totalorder %s4747_s19, 1  ;;  %p96_p3 = scmp.eq.s32.totalorder %s6034_s20, 1 }
   0xb   : > { %p4758_p4 = por %p46_p1, %p45_p0  ;;  %p3494_p5 = scmp.ge.s32.totalorder %s4692_s18, 1 }
   0xc   : > { %p4763_p6 = por %p96_p3, %p45_p0  ;;  %p155_p7 = scmp.lt.s32.totalorder %s4692_s18, 3 }
   0xd   : > { %s166_s25 = sshll.u32 %s6030_s1, 4  ;;  %s4694_s27 = smov [#allocation5]   ;;  %s167_s25 = int_to_ptr.hbm [resolvable:$true] %s166_s25 }
   0xe   : > { %p4771_p8 = pnand %p3494_p5, %p155_p7  ;;  %s168_s28 = sshll.u32 %s4694_s27, 4  ;;  %s169_s28 = int_to_ptr.vmem [resolvable:$true] %s168_s28 }
   0xf   : > { %s4781_s29 = sadd.s32 1, %s4692_s18   ;;  %s4695_s30 = smov 128  }
  0x10   : > { %p4441_p9 = pneg %p4771_p8  ;;  %s4696_s5 = smov 8  }
  0x11   : > { %s29_s6 = ssub.s32 %s4692_s18, %s4781_s29  ;;  %s32_s7 = sadd.s32 1, %s4688_s17 }
  0x12   : > { %p4442_p10 = pnand %p4441_p9, %p46_p1  ;;  %p30_p12 = scmp.eq.s32.totalorder %s29_s6, 0 }
  0x13   : > { %p39_p13 = scmp.ne.s32.totalorder %s4688_s17, %s4684_s16  ;;  %p40_p0 = scmp.eq.s32.totalorder %s4692_s18, 0 }
  0x14   : > { %4444 = dma.hbm_to_vmem [thread:$0]  (!%p4442_p10), %s167_s25, 18816, %s169_s28, [#allocation6], %s4695_s30, %s4695_s30, %s4696_s5  }
  0x15   : > { %p4460_p3 = scmp.lt.s32.totalorder %s4692_s18, 2  ;;  %p41_p5 = por %p40_p0, %p39_p13 }
  0x16   : > { %s4791_s8 = scalar_select %p30_p12, %s4688_s17, %s32_s7  }
  0x17   : > { %p4795_p7 = por %p90_p2, %p39_p13  ;;  %s182_s10 = sand.u32 1, %s4688_s17  }
  0x18   : > { %s4426_s11 = smul.u32 288, %s4692_s18  ;;  %p4804_p9 = pnand %p4460_p3, %p41_p5 }
  0x19   : > { %s4427_s12 = smul.u32 288, %s182_s10  ;;  %s183_s30 = scalar_lea.sflag [#allocation3], %s182_s10 }
  0x1a   : > { %s192_s23 = scalar_lea.hbm %s6029_s0, %s4426_s11  ;;  %p4536_p10 = pneg %p4804_p9 }
  0x1b   : > { %s193_s25 = sshll.u32 %s192_s23, 4  ;;  %s186_s27 = scalar_lea.vmem [#allocation2], %s4427_s12  ;;  %s194_s25 = int_to_ptr.hbm [resolvable:$true] %s193_s25 }
  0x1c   : > { %s195_s28 = sshll.u32 %s186_s27, 4  ;;  %s4532_s5 = sshra.s32 %s194_s25, 4  ;;  %s196_s28 = int_to_ptr.vmem [resolvable:$true] %s195_s28  ;;  %s4533_s5 = int_to_ptr.hbm [resolvable:$true] %s4532_s5 }
  0x1d   : > { %s4534_s6 = scalar_lea.hbm %s4533_s5, 288  ;;  %s4539_s13 = scalar_lea.hbm %s6029_s0, 576 }
  0x1e   : > { %p4535_p2 = scmp.ne.s32.totalorder %s4533_s5, %s4534_s6  ;;  %p4540_p0 = scmp.lt.s32.totalorder %s4533_s5, %s6029_s0 }
  0x1f   : > { %p4541_p3 = scmp.lt.s32.totalorder %s4539_s13, %s4534_s6 }
  0x20   : > { %p4537_p12 = pnand %p4536_p10, %p4535_p2 }
  0x21   : > { %p4542_p5 = por %p4541_p3, %p4540_p0 }
  0x22   : > { %p4538_p13 = pneg %p4537_p12 }
  0x24   : > { %p4543_p11 = pnand %p4542_p5, %p4538_p13 }
  0x26   : > { %4546 = shalt.err (!%p4543_p11)
}
  0x27   : > { %s4697_s10 = smov 256   ;;  %s4698_s12 = smov 16  }
  0x28   : > { %4448 = dma.hbm_to_vmem [thread:$0]  (!%p4804_p9), %s194_s25, 4608, %s196_s28, %s183_s30, %s4697_s10, %s4697_s10, %s4698_s12  }
  0x29   : > { %207 = sbr.rel (%p4771_p8) target bundleno = 1024 (0x400), region = 28 }
  0x2e   : > { %s4821_s23 = sand.u32 1, %s4684_s16  }
  0x2f   : > { %s4428_s20 = smul.u32 288, %s4821_s23  ;;  %s210_s27 = scalar_lea.sflag [#allocation3], %s4821_s23 }
  0x31   : > { %s4825_s5 = scalar_lea.vmem [#allocation2], %s4428_s20 }
  0x32   : > { %4663 = dma.done.wait (%p4758_p4), %s210_s27, 4608  }
  0x33   : > { %4665 = vsyncadd (%p4758_p4), %s210_s27, 4294962688 }
  0x34   : > { %4667 = dma.done.wait (%p46_p1), [#allocation6], 18816  }
  0x35   : > { %4669 = vsyncadd (%p46_p1), [#allocation6], 4294948480  ;;  %v3674_v0 = vld [vmem:[#allocation5 + $0x1f8] sm:$0xf]  ;;  %v4343_v1 = vld [vmem:[#allocation5 + $0x1fc] sm:$0xf0] }
  0x36   : > { %v3738_v2 = vld [vmem:[#allocation5 + $0x278] sm:$0xf]  ;;  %v3675_v3 = vor.u32 %v4343_v1, %v3674_v0  ;;  %v4359_v4 = vld [vmem:[#allocation5 + $0x27c] sm:$0xf0]  ;;  %v3666_v9 = vld [vmem:[#allocation5 + $0x1e8] sm:$0xf] }
  0x37   : > { %v3802_v5 = vld [vmem:[#allocation5 + $0x2f8] sm:$0xf]  ;;  %v4375_v6 = vld [vmem:[#allocation5 + $0x2fc] sm:$0xf0]  ;;  %v3739_v7 = vor.u32 %v4359_v4, %v3738_v2  ;;  %v4341_v10 = vld [vmem:[#allocation5 + $0x1ec] sm:$0xf0] }
  0x38   : > { %v3803_v8 = vor.u32 %v4375_v6, %v3802_v5  ;;  %v3730_v11 = vld [vmem:[#allocation5 + $0x268] sm:$0xf]  ;;  %1102 = vmatpush.bf16.msra.mxu0 %v3675_v3  ;;  %v3667_v12 = vor.u32 %v4341_v10, %v3666_v9  ;;  %v4357_v13 = vld [vmem:[#allocation5 + $0x26c] sm:$0xf0]  ;;  %v3658_v19 = vld [vmem:[#allocation5 + $0x1d8] sm:$0xf] }
  0x39   : > { %v3794_v14 = vld [vmem:[#allocation5 + $0x2e8] sm:$0xf]  ;;  %v4373_v15 = vld [vmem:[#allocation5 + $0x2ec] sm:$0xf0]  ;;  %1151 = vmatpush.bf16.msra.mxu1 %v3739_v7  ;;  %v3731_v16 = vor.u32 %v4357_v13, %v3730_v11  ;;  %v4339_v20 = vld [vmem:[#allocation5 + $0x1dc] sm:$0xf0] }
  0x3a   : > { %1200 = vmatpush.bf16.msra.mxu2 %v3803_v8  ;;  %v3795_v17 = vor.u32 %v4373_v15, %v3794_v14  ;;  %v4835_v18 = vld [vmem:[#allocation5 + $0x308] sm:$0x77]  ;;  %v3722_v22 = vld [vmem:[#allocation5 + $0x258] sm:$0xf]  ;;  %v4355_v23 = vld [vmem:[#allocation5 + $0x25c] sm:$0xf0]  ;;  %v3659_v29 = vor.u32 %v4339_v20, %v3658_v19 }
  0x3b   : > { %v970_v21 = vunpack.c.l.b16 %v4835_v18  ;;  %v3786_v24 = vld [vmem:[#allocation5 + $0x2d8] sm:$0xf]  ;;  %vm1095_vm0 = vcmask 1042432   ;;  %v4371_v25 = vld [vmem:[#allocation5 + $0x2dc] sm:$0xf0]  ;;  %v4839_v26 = vld [vmem:[%s4825_s5 + $0x8] sm:$0xff]  ;;  %v3723_v35 = vor.u32 %v4355_v23, %v3722_v22 }
  0x3c   : > { %v4842_v27 = vld [vmem:[%s4825_s5 + $0x18] sm:$0xff]  ;;  %1103 = vmatpush.bf16.msra.mxu0 %v3667_v12  ;;  %v4253_v30 = vld [vmem:[%s4825_s5 + $0x2c] sm:$0xf]  ;;  %v427_v32 = vunpack.c.h.b16 %v4839_v26  ;;  %v3650_v34 = vld [vmem:[#allocation5 + $0x1c8] sm:$0xf]  ;;  %v3787_v36 = vor.u32 %v4371_v25, %v3786_v24  ;;  %vm1070_vm2 = vcmask 48128  }
  0x3d   : > { %6099 = vst [vmem:[#allocation15_spill] sm:$0xff] %v4842_v27  ;;  %v1020_v28 = vpack.c.b16 %v970_v21, %v970_v21  ;;  %v3516_v31 = vld [vmem:[%s4825_s5 + $0x38] sm:$0xf0]  ;;  %v6035_v33 = vunpack.c.h.b16 %v4842_v27  ;;  %1152 = vmatpush.bf16.msra.mxu1 %v3731_v16  ;;  %v4337_v38 = vld [vmem:[#allocation5 + $0x1cc] sm:$0xf0]  ;;  %v257_v46 = vld [vmem:[%s4825_s5] sm:$0xff]  ;;  %v426_v16 = vunpack.c.l.b16 %v4839_v26 }
  0x3e   : > { %1201 = vmatpush.bf16.msra.mxu2 %v3795_v17  ;;  %v4848_v37 = vor.u32 %v4253_v30, %v3516_v31  ;;  %v3714_v39 = vld [vmem:[#allocation5 + $0x248] sm:$0xf]  ;;  %v4353_v40 = vld [vmem:[#allocation5 + $0x24c] sm:$0xf0]  ;;  %v3651_v49 = vor.u32 %v4337_v38, %v3650_v34  ;;  %v3642_v50 = vld [vmem:[#allocation5 + $0x1b8] sm:$0xf]  ;;  %v424_v61 = vunpack.c.l.b16 %v257_v46  ;;  %v425_v63 = vunpack.c.h.b16 %v257_v46 }
  0x3f   : > { %v1097_v41 = vsel %vm1095_vm0, %v1020_v28, 0  ;;  %v4853_v42 = vpack.c.b16 %v6035_v33, %v427_v32  ;;  %v3778_v43 = vld [vmem:[#allocation5 + $0x2c8] sm:$0xf]  ;;  %v4369_v44 = vld [vmem:[#allocation5 + $0x2cc] sm:$0xf0]  ;;  %v3715_v52 = vor.u32 %v4353_v40, %v3714_v39  ;;  %v6036_v17 = vunpack.c.l.b16 %v4842_v27  ;;  %s3501_s21 = sshll.u32 %s4821_s23, 7 }
  0x40   : > { %6100 = vst [vmem:[#allocation16_spill] sm:$0xff] %v4848_v37  ;;  %1256 = vmatpush.bf16.msra.mxu3 %v1097_v41  ;;  %v573_v45 = vshll.u32 %v4848_v37, 16  ;;  %1104 = vmatpush.bf16.msra.mxu0 %v3659_v29  ;;  %v4335_v51 = vld [vmem:[#allocation5 + $0x1bc] sm:$0xf0]  ;;  %v3779_v53 = vor.u32 %v4369_v44, %v3778_v43  ;;  %v3706_v54 = vld [vmem:[#allocation5 + $0x238] sm:$0xf]  ;;  %v971_v34 = vunpack.c.h.b16 %v4835_v18 }
  0x41   : > { %v566_v47 = vshrl.u32 %v4853_v42, 16  ;;  %v568_v48 = vshll.u32 %v4853_v42, 16  ;;  %1153 = vmatpush.bf16.msra.mxu1 %v3723_v35  ;;  %v4351_v55 = vld [vmem:[#allocation5 + $0x23c] sm:$0xf0]  ;;  %v4860_v56 = vld [vmem:[%s4825_s5 + $0x10] sm:$0xff]  ;;  %v3643_v2 = vor.u32 %v4335_v51, %v3642_v50  ;;  %v4902_v18 = vpack.c.b16 %v6036_v17, %v426_v16  ;;  %s5846_s26 = scalar_lea.vmem [#allocation7], %s3501_s21 }
  0x42   : > { %1202 = vmatpush.bf16.msra.mxu2 %v3787_v36  ;;  %6101 = vst [vmem:[#allocation17_spill] sm:$0xff] %v4860_v56  ;;  %v4862_v58 = vrot.slane %v573_v45, 1  ;;  %v3770_v59 = vld [vmem:[#allocation5 + $0x2b8] sm:$0xf]  ;;  %v4367_v60 = vld [vmem:[#allocation5 + $0x2bc] sm:$0xf0]  ;;  %v6038_v62 = vunpack.c.l.b16 %v4860_v56  ;;  %v6037_v0 = vunpack.c.h.b16 %v4860_v56  ;;  %v3707_v6 = vor.u32 %v4351_v55, %v3706_v54 }
  0x43   : > { %v570_v57 = vrot.slane %v568_v48, 1  ;;  %vm528_vm1 = vsmask.f32 7424  ;;  %v3634_v3 = vld [vmem:[#allocation5 + $0x1a8] sm:$0xf]  ;;  %v3771_v7 = vor.u32 %v4367_v60, %v3770_v59  ;;  %v601_v36 = vshrl.u32 %v4848_v37, 16 }
  0x44   : > { %1105 = vmatpush.bf16.msra.mxu0 %v3651_v49  ;;  %v4333_v4 = vld [vmem:[#allocation5 + $0x1ac] sm:$0xf0]  ;;  %v3698_v5 = vld [vmem:[#allocation5 + $0x228] sm:$0xf]  ;;  %v4870_v12 = vld [vmem:[#allocation5 + $0x198] sm:$0xf]  ;;  %v4876_v15 = vpack.c.b16 %v6038_v62, %v424_v61  ;;  %v4886_v23 = vpack.c.b16 %v6037_v0, %v425_v63 }
  0x45   : > { %v571_v1 = vor.u32 %v570_v57, %v566_v47  ;;  %1154 = vmatpush.bf16.msra.mxu1 %v3715_v52  ;;  %v4349_v8 = vld [vmem:[#allocation5 + $0x22c] sm:$0xf0]  ;;  %v3762_v9 = vld [vmem:[#allocation5 + $0x2a8] sm:$0xf]  ;;  %v4257_v13 = vld [vmem:[%s4825_s5 + $0x4c] sm:$0xf]  ;;  %v3635_v24 = vor.u32 %v4333_v4, %v3634_v3 }
  0x46   : > { %1203 = vmatpush.bf16.msra.mxu2 %v3779_v53  ;;  %v4365_v10 = vld [vmem:[#allocation5 + $0x2ac] sm:$0xf0]  ;;  %v3532_v14 = vld [vmem:[%s4825_s5 + $0x58] sm:$0xf0]  ;;  %v4331_v19 = vld [vmem:[#allocation5 + $0x19c] sm:$0xf0]  ;;  %v3699_v29 = vor.u32 %v4349_v8, %v3698_v5  ;;  %v603_v8 = vor.u32 %v601_v36, %v4862_v58 }
  0x47   : > { %v4868_v11 = vsel %vm528_vm1, %v571_v1, %v4862_v58  ;;  %v4882_v20 = vor.u32 %v4257_v13, %v3532_v14  ;;  %v4342_v21 = vld [vmem:[#allocation5 + $0x1fc] sm:$0xf]  ;;  %v3676_v22 = vld [vmem:[#allocation5 + $0x200] sm:$0xf0]  ;;  %v3690_v25 = vld [vmem:[#allocation5 + $0x218] sm:$0xf]  ;;  %v3763_v30 = vor.u32 %v4365_v10, %v3762_v9  ;;  %v3627_v35 = vor.u32 %v4331_v19, %v4870_v12 }
  0x48   : > { %3808 = vmatmul.msk.bf16.vlgmr.msra.gmra.mxu3 %vm1070_vm2, %v4868_v11  ;;  %1106 = vmatpush.bf16.msra.mxu0 %v3643_v2  ;;  %v4347_v28 = vld [vmem:[#allocation5 + $0x21c] sm:$0xf0]  ;;  %v3679_v26 = vor.u32 %v4342_v21, %v3676_v22  ;;  %v3754_v31 = vld [vmem:[#allocation5 + $0x298] sm:$0xf]  ;;  %v4891_v38 = vld [vmem:[#allocation5 + $0x188] sm:$0xf] }
  0x49   : > { %6102 = vst [vmem:[#allocation18_spill] sm:$0xff] %v4882_v20  ;;  %1155 = vmatpush.bf16.msra.mxu1 %v3707_v6  ;;  %v4363_v32 = vld [vmem:[#allocation5 + $0x29c] sm:$0xf0]  ;;  %v4329_v39 = vld [vmem:[#allocation5 + $0x18c] sm:$0xf0]  ;;  %v532_v45 = vshll.u32 %v4876_v15, 16  ;;  %v3691_v46 = vor.u32 %v4347_v28, %v3690_v25 }
  0x4a   : > { %1204 = vmatpush.bf16.msra.mxu2 %v3771_v7  ;;  %1298 = vmatpush.bf16.msrb.mxu3 %v3679_v26  ;;  %v4893_v40 = vld [vmem:[#allocation5 + $0x208] sm:$0xf]  ;;  %v4895_v41 = vld [vmem:[#allocation5 + $0x20c] sm:$0xf0]  ;;  %v3506_v43 = vld [vmem:[%s4825_s5 + $0x20] sm:$0xf]  ;;  %v3755_v52 = vor.u32 %v4363_v32, %v3754_v31  ;;  %v1021_v7 = vpack.c.b16 %v971_v34, %v971_v34  ;;  %v3619_v9 = vor.u32 %v4329_v39, %v4891_v38 }
  0x4b   : > { %v4254_v44 = vld [vmem:[%s4825_s5 + $0x2c] sm:$0xf0]  ;;  %v605_v47 = vshll.u32 %v4882_v20, 16  ;;  %v4252_v49 = vld [vmem:[%s4825_s5 + $0x24] sm:$0xf]  ;;  %v544_v51 = vshll.u32 %v4886_v23, 16  ;;  %v3683_v10 = vor.u32 %v4895_v41, %v4893_v40 }
  0x4c   : > { %v4905_v48 = vor.u32 %v4254_v44, %v3506_v43  ;;  %v3508_v50 = vld [vmem:[%s4825_s5 + $0x30] sm:$0xf0]  ;;  %1107 = vmatpush.bf16.msra.mxu0 %v3635_v24  ;;  %v530_v53 = vshrl.u32 %v4876_v15, 16  ;;  %v534_v54 = vrot.slane %v532_v45, 1  ;;  %v3514_v57 = vld [vmem:[%s4825_s5 + $0x28] sm:$0xf] }
  0x4d   : > { %v4911_v55 = vor.u32 %v4252_v49, %v3508_v50  ;;  %v4255_v59 = vld [vmem:[%s4825_s5 + $0x34] sm:$0xf0]  ;;  %1156 = vmatpush.bf16.msra.mxu1 %v3699_v29  ;;  %v3746_v60 = vld [vmem:[#allocation5 + $0x288] sm:$0xf]  ;;  %v542_v63 = vshrl.u32 %v4886_v23, 16  ;;  %v546_v1 = vrot.slane %v544_v51, 1 }
  0x4e   : > { %1205 = vmatpush.bf16.msra.mxu2 %v3763_v30  ;;  %v537_v61 = vshll.u32 %v4905_v48, 16  ;;  %v4917_v2 = vor.u32 %v4255_v59, %v3514_v57  ;;  %v4361_v3 = vld [vmem:[#allocation5 + $0x28c] sm:$0xf0]  ;;  %v554_v5 = vshrl.u32 %v4902_v18, 16  ;;  %v556_v6 = vshll.u32 %v4902_v18, 16  ;;  %s4425_s24 = sshll.u32 %s4747_s19, 7 }
  0x4f   : > { %v549_v4 = vshll.u32 %v4911_v55, 16  ;;  %v4358_v13 = vld [vmem:[#allocation5 + $0x27c] sm:$0xf]  ;;  %v3740_v14 = vld [vmem:[#allocation5 + $0x280] sm:$0xf0]  ;;  %v4927_v16 = vrot.slane %v605_v47, 1  ;;  %v535_v19 = vor.u32 %v534_v54, %v530_v53  ;;  %v3747_v58 = vor.u32 %v4361_v3, %v3746_v60  ;;  %s3315_s30 = scalar_lea.hbm %s6031_s2, %s4425_s24 }
  0x50   : > { %v561_v12 = vshll.u32 %v4917_v2, 16  ;;  %1108 = vmatpush.bf16.msra.mxu0 %v3627_v35  ;;  %v4929_v21 = vrot.slane %v537_v61, 1  ;;  %v558_v22 = vrot.slane %v556_v6, 1  ;;  %v547_v24 = vor.u32 %v546_v1, %v542_v63  ;;  %v4340_v26 = vld [vmem:[#allocation5 + $0x1ec] sm:$0xf]  ;;  %s3316_s6 = sshll.u32 %s5846_s26, 4  ;;  %s5932_s6 = int_to_ptr.vmem [resolvable:$true] %s3316_s6 }
  0x51   : > { %1157 = vmatpush.bf16.msra.mxu1 %v3691_v46  ;;  %v4931_v25 = vrot.slane %v549_v4, 1  ;;  %v3668_v29 = vld [vmem:[#allocation5 + $0x1f0] sm:$0xf0]  ;;  %v1100_v31 = vsel %vm1095_vm0, %v1021_v7, 0  ;;  %v3743_v32 = vor.u32 %v4358_v13, %v3740_v14  ;;  %v4374_v34 = vld [vmem:[#allocation5 + $0x2fc] sm:$0xf]  ;;  %v4941_v41 = vsel %vm528_vm1, %v603_v8, %v4927_v16 }
  0x52   : > { %1206 = vmatpush.bf16.msra.mxu2 %v3755_v52  ;;  %v4933_v28 = vrot.slane %v561_v12, 1  ;;  %v559_v30 = vor.u32 %v558_v22, %v554_v5  ;;  %v3804_v35 = vld [vmem:[#allocation5 + $0x300] sm:$0xf0]  ;;  %v3671_v36 = vor.u32 %v4340_v26, %v3668_v29  ;;  %v4261_v38 = vld [vmem:[%s4825_s5 + $0x6c] sm:$0xf]  ;;  %v4945_v43 = vsel %vm528_vm1, %v535_v19, %v4929_v21  ;;  %s3318_s7 = sshll.u32 %s3315_s30, 4  ;;  %s5934_s7 = int_to_ptr.hbm [resolvable:$true] %s3318_s7 }
  0x53   : > { %v3548_v39 = vld [vmem:[%s4825_s5 + $0x78] sm:$0xf0]  ;;  %v3522_v40 = vld [vmem:[%s4825_s5 + $0x40] sm:$0xf]  ;;  %v4258_v44 = vld [vmem:[%s4825_s5 + $0x4c] sm:$0xf0]  ;;  %v4951_v47 = vsel %vm528_vm1, %v547_v24, %v4931_v25  ;;  %v3807_v50 = vor.u32 %v4374_v34, %v3804_v35 }
  0x54   : > { %1109 = vmatpush.bf16.msra.mxu0 %v3619_v9  ;;  %1299 = vmatpush.bf16.msrb.mxu3 %v3671_v36  ;;  %v4256_v45 = vld [vmem:[%s4825_s5 + $0x44] sm:$0xf]  ;;  %v4356_v46 = vld [vmem:[#allocation5 + $0x26c] sm:$0xf]  ;;  %v4955_v49 = vsel %vm528_vm1, %v559_v30, %v4933_v28  ;;  %v3524_v51 = vld [vmem:[%s4825_s5 + $0x50] sm:$0xf0]  ;;  %v4963_v61 = vor.u32 %v4261_v38, %v3548_v39  ;;  %v4967_v1 = vor.u32 %v4258_v44, %v3522_v40 }
  0x55   : > { %1158 = vmatpush.bf16.msra.mxu1 %v3683_v10  ;;  %v3530_v52 = vld [vmem:[%s4825_s5 + $0x48] sm:$0xf]  ;;  %v3732_v53 = vld [vmem:[#allocation5 + $0x270] sm:$0xf0]  ;;  %v4259_v54 = vld [vmem:[%s4825_s5 + $0x54] sm:$0xf0]  ;;  %v4969_v4 = vor.u32 %v4256_v45, %v3524_v51 }
  0x56   : > { %1207 = vmatpush.bf16.msra.mxu2 %v3747_v58  ;;  %v3735_v57 = vor.u32 %v4356_v46, %v3732_v53  ;;  %v4372_v59 = vld [vmem:[#allocation5 + $0x2ec] sm:$0xf]  ;;  %v3796_v60 = vld [vmem:[#allocation5 + $0x2f0] sm:$0xf0]  ;;  %6103 = vst [vmem:[#allocation19_spill] sm:$0xff] %v4963_v61  ;;  %v4971_v5 = vor.u32 %v4259_v54, %v3530_v52  ;;  %v633_v8 = vshrl.u32 %v4882_v20, 16 }
  0x57   : > { %1110 = vmatmul.bf16.vlgmr.msra.gmra.mxu0 %v4945_v43  ;;  %v4338_v63 = vld [vmem:[#allocation5 + $0x1dc] sm:$0xf]  ;;  %v3660_v3 = vld [vmem:[#allocation5 + $0x1e0] sm:$0xf0]  ;;  %6104 = vst [vmem:[#allocation20_spill] sm:$0xff] %v4969_v4  ;;  %v3799_v6 = vor.u32 %v4372_v59, %v3796_v60  ;;  %v637_v9 = vshll.u32 %v4963_v61, 16 }
  0x58   : > { %1347 = vmatpush.bf16.msrb.mxu0 %v3743_v32  ;;  %3809 = vmatmul.msk.bf16.gmra.mxu3 %vm1070_vm2, %v4941_v41  ;;  %6105 = vst [vmem:[#allocation21_spill] sm:$0xff] %v4971_v5  ;;  %v3663_v7 = vor.u32 %v4338_v63, %v3660_v3  ;;  %v577_v10 = vshrl.u32 %v4905_v48, 16  ;;  %v4354_v12 = vld [vmem:[#allocation5 + $0x25c] sm:$0xf]  ;;  %v581_v13 = vshll.u32 %v4967_v1, 16  ;;  %v585_v14 = vshrl.u32 %v4911_v55, 16 }
  0x59   : > { %1159 = vmatmul.bf16.vlgmr.msra.gmra.mxu1 %v4951_v47  ;;  %1208 = vmatmul.bf16.vlgmr.msra.gmra.mxu2 %v4955_v49  ;;  %v3724_v19 = vld [vmem:[#allocation5 + $0x260] sm:$0xf0]  ;;  %v4370_v22 = vld [vmem:[#allocation5 + $0x2dc] sm:$0xf]  ;;  %v589_v58 = vshll.u32 %v4969_v4, 16  ;;  %v593_v24 = vshrl.u32 %v4917_v2, 16  ;;  %v635_v32 = vor.u32 %v633_v8, %v4927_v16 }
  0x5a   : > { %1452 = vmatpush.bf16.msrb.mxu2 %v1100_v31  ;;  %1396 = vmatpush.bf16.msrb.mxu1 %v3807_v50  ;;  %v597_v26 = vshll.u32 %v4971_v5, 16  ;;  %v3727_v29 = vor.u32 %v4354_v12, %v3724_v19  ;;  %v3788_v30 = vld [vmem:[#allocation5 + $0x2e0] sm:$0xf0]  ;;  %v639_v34 = vrot.slane %v637_v9, 1  ;;  %v579_v35 = vor.u32 %v577_v10, %v4929_v21  ;;  %v4265_v46 = vld [vmem:[%s4825_s5 + $0x8c] sm:$0xf] }
  0x5b   : > { %1300 = vmatpush.bf16.msrb.mxu3 %v3663_v7  ;;  %v3791_v31 = vor.u32 %v4370_v22, %v3788_v30  ;;  %v583_v36 = vrot.slane %v581_v13, 1  ;;  %v587_v38 = vor.u32 %v585_v14, %v4931_v25  ;;  %v591_v39 = vrot.slane %v589_v58, 1  ;;  %v3564_v50 = vld [vmem:[%s4825_s5 + $0x98] sm:$0xf0]  ;;  %v3538_v25 = vld [vmem:[%s4825_s5 + $0x60] sm:$0xf] }
  0x5c   : > { %1348 = vmatpush.bf16.msrb.mxu0 %v3735_v57  ;;  %v595_v40 = vor.u32 %v593_v24, %v4933_v28  ;;  %v599_v44 = vrot.slane %v597_v26, 1  ;;  %v4986_v45 = vsel %vm528_vm1, %v635_v32, %v639_v34  ;;  %v4262_v52 = vld [vmem:[%s4825_s5 + $0x6c] sm:$0xf0]  ;;  %v4260_v53 = vld [vmem:[%s4825_s5 + $0x64] sm:$0xf]  ;;  %v5010_v63 = vor.u32 %v4265_v46, %v3564_v50  ;;  %s3502_s11 = sshll.u32 %s4821_s23, 1 }
  0x5d   : > { %v4989_v16 = vsel %vm528_vm1, %v579_v35, %v583_v36  ;;  %v4994_v21 = vsel %vm528_vm1, %v587_v38, %v591_v39  ;;  %v3540_v28 = vld [vmem:[%s4825_s5 + $0x70] sm:$0xf0]  ;;  %v3546_v54 = vld [vmem:[%s4825_s5 + $0x68] sm:$0xf]  ;;  %v4263_v57 = vld [vmem:[%s4825_s5 + $0x74] sm:$0xf0]  ;;  %v5012_v3 = vor.u32 %v4262_v52, %v3538_v25 }
  0x5e   : > { %1397 = vmatpush.bf16.msrb.mxu1 %v3799_v6  ;;  %v4997_v51 = vsel %vm528_vm1, %v595_v40, %v599_v44  ;;  %v4336_v59 = vld [vmem:[#allocation5 + $0x1cc] sm:$0xf]  ;;  %v3652_v60 = vld [vmem:[#allocation5 + $0x1d0] sm:$0xf0]  ;;  %6106 = vst [vmem:[#allocation22_spill] sm:$0xff] %v5010_v63  ;;  %v5014_v9 = vor.u32 %v4260_v53, %v3540_v28  ;;  %v5016_v10 = vor.u32 %v4263_v57, %v3546_v54  ;;  %v665_v22 = vshrl.u32 %v4963_v61, 16 }
  0x5f   : > { %6107 = vst [vmem:[#allocation23_spill] sm:$0xff] %v5012_v3  ;;  %v3655_v6 = vor.u32 %v4336_v59, %v3652_v60  ;;  %v4352_v7 = vld [vmem:[#allocation5 + $0x24c] sm:$0xf]  ;;  %v3716_v8 = vld [vmem:[#allocation5 + $0x250] sm:$0xf0]  ;;  %v669_v58 = vshll.u32 %v5010_v63, 16 }
  0x60   : > { %1349 = vmatpush.bf16.msrb.mxu0 %v3727_v29  ;;  %6108 = vst [vmem:[#allocation24_spill] sm:$0xff] %v5014_v9  ;;  %v4368_v12 = vld [vmem:[#allocation5 + $0x2cc] sm:$0xf]  ;;  %v3780_v13 = vld [vmem:[#allocation5 + $0x2d0] sm:$0xf0]  ;;  %v3719_v14 = vor.u32 %v4352_v7, %v3716_v8  ;;  %v609_v24 = vshrl.u32 %v4967_v1, 16  ;;  %v667_v35 = vor.u32 %v665_v22, %v639_v34 }
  0x61   : > { %6109 = vst [vmem:[#allocation25_spill] sm:$0xff] %v5016_v10  ;;  %1301 = vmatpush.bf16.msrb.mxu3 %v3655_v6  ;;  %v3783_v19 = vor.u32 %v4368_v12, %v3780_v13  ;;  %v613_v26 = vshll.u32 %v5012_v3, 16  ;;  %v617_v29 = vshrl.u32 %v4969_v4, 16  ;;  %v621_v30 = vshll.u32 %v5014_v9, 16  ;;  %v4269_v57 = vld [vmem:[%s4825_s5 + $0xac] sm:$0xf] }
  0x62   : > { %1398 = vmatpush.bf16.msrb.mxu1 %v3791_v31  ;;  %v625_v31 = vshrl.u32 %v4971_v5, 16  ;;  %v629_v32 = vshll.u32 %v5016_v10, 16  ;;  %v671_v38 = vrot.slane %v669_v58, 1  ;;  %v611_v40 = vor.u32 %v609_v24, %v583_v36  ;;  %v3580_v59 = vld [vmem:[%s4825_s5 + $0xb8] sm:$0xf0]  ;;  %s4246_s13 = sshll.u32 %s4747_s19, 1 }
  0x63   : > { %v615_v46 = vrot.slane %v613_v26, 1  ;;  %v619_v50 = vor.u32 %v617_v29, %v591_v39  ;;  %v623_v25 = vrot.slane %v621_v30, 1  ;;  %v3554_v60 = vld [vmem:[%s4825_s5 + $0x80] sm:$0xf]  ;;  %v4266_v6 = vld [vmem:[%s4825_s5 + $0x8c] sm:$0xf0] }
  0x64   : > { %1350 = vmatpush.bf16.msrb.mxu0 %v3719_v14  ;;  %v627_v52 = vor.u32 %v625_v31, %v599_v44  ;;  %v631_v53 = vrot.slane %v629_v32, 1  ;;  %v5027_v28 = vsel %vm528_vm1, %v667_v35, %v671_v38  ;;  %v4264_v39 = vld [vmem:[%s4825_s5 + $0x84] sm:$0xf]  ;;  %v3556_v7 = vld [vmem:[%s4825_s5 + $0x90] sm:$0xf0]  ;;  %v5051_v14 = vor.u32 %v4269_v57, %v3580_v59  ;;  %s3293_s14 = scalar_lea.sflag [#allocation4], %s4821_s23 }
  0x65   : > { %v5030_v54 = vsel %vm528_vm1, %v611_v40, %v615_v46  ;;  %v5035_v34 = vsel %vm528_vm1, %v619_v50, %v623_v25  ;;  %v3562_v44 = vld [vmem:[%s4825_s5 + $0x88] sm:$0xf]  ;;  %v4267_v8 = vld [vmem:[%s4825_s5 + $0x94] sm:$0xf0]  ;;  %v4334_v12 = vld [vmem:[#allocation5 + $0x1bc] sm:$0xf]  ;;  %v5055_v26 = vor.u32 %v4264_v39, %v3556_v7 }
  0x66   : > { %1399 = vmatpush.bf16.msrb.mxu1 %v3783_v19  ;;  %v5038_v36 = vsel %vm528_vm1, %v627_v52, %v631_v53  ;;  %v3644_v13 = vld [vmem:[#allocation5 + $0x1c0] sm:$0xf0]  ;;  %6110 = vst [vmem:[#allocation26_spill] sm:$0xff] %v5051_v14  ;;  %v5053_v19 = vor.u32 %v4266_v6, %v3554_v60  ;;  %v4350_v58 = vld [vmem:[#allocation5 + $0x23c] sm:$0xf]  ;;  %v5057_v29 = vor.u32 %v4267_v8, %v3562_v44  ;;  %v697_v40 = vshrl.u32 %v5010_v63, 16 }
  0x67   : > { %1115 = vmatmul.bf16.gmra.mxu0 %v4989_v16  ;;  %v3647_v22 = vor.u32 %v4334_v12, %v3644_v13  ;;  %v3708_v24 = vld [vmem:[#allocation5 + $0x240] sm:$0xf0]  ;;  %6112 = vst [vmem:[#allocation28_spill] sm:$0xff] %v5055_v26  ;;  %v4366_v30 = vld [vmem:[#allocation5 + $0x2bc] sm:$0xf]  ;;  %v701_v50 = vshll.u32 %v5051_v14, 16 }
  0x68   : > { %3810 = vmatmul.msk.bf16.gmra.mxu3 %vm1070_vm2, %v4986_v45  ;;  %6111 = vst [vmem:[#allocation27_spill] sm:$0xff] %v5053_v19  ;;  %v3772_v31 = vld [vmem:[#allocation5 + $0x2c0] sm:$0xf0]  ;;  %v3711_v32 = vor.u32 %v4350_v58, %v3708_v24  ;;  %v641_v52 = vshrl.u32 %v5012_v3, 16  ;;  %v645_v57 = vshll.u32 %v5053_v19, 16  ;;  %v649_v59 = vshrl.u32 %v5014_v9, 16 }
  0x69   : > { %1164 = vmatmul.bf16.gmra.mxu1 %v4994_v21  ;;  %1213 = vmatmul.bf16.gmra.mxu2 %v4997_v51  ;;  %6113 = vst [vmem:[#allocation29_spill] sm:$0xff] %v5057_v29  ;;  %v3775_v35 = vor.u32 %v4366_v30, %v3772_v31  ;;  %v653_v60 = vshll.u32 %v5055_v26, 16  ;;  %v657_v6 = vshrl.u32 %v5016_v10, 16  ;;  %v661_v39 = vshll.u32 %v5057_v29, 16  ;;  %v4364_v17 = vld [vmem:[#allocation5 + $0x2ac] sm:$0xf] }
  0x6a   : > { %1302 = vmatpush.bf16.msrb.mxu3 %v3647_v22  ;;  %1351 = vmatpush.bf16.msrb.mxu0 %v3711_v32  ;;  %v699_v7 = vor.u32 %v697_v40, %v671_v38  ;;  %v703_v44 = vrot.slane %v701_v50, 1  ;;  %v643_v8 = vor.u32 %v641_v52, %v615_v46  ;;  %v647_v12 = vrot.slane %v645_v57, 1  ;;  %v4273_v32 = vld [vmem:[%s4825_s5 + $0xcc] sm:$0xf]  ;;  %v3570_v40 = vld [vmem:[%s4825_s5 + $0xa0] sm:$0xf] }
  0x6b   : > { %1400 = vmatpush.bf16.msrb.mxu1 %v3775_v35  ;;  %v651_v13 = vor.u32 %v649_v59, %v623_v25  ;;  %v655_v22 = vrot.slane %v653_v60, 1  ;;  %v659_v58 = vor.u32 %v657_v6, %v631_v53  ;;  %v663_v24 = vrot.slane %v661_v39, 1  ;;  %v3596_v35 = vld [vmem:[%s4825_s5 + $0xd8] sm:$0xf0]  ;;  %v4270_v50 = vld [vmem:[%s4825_s5 + $0xac] sm:$0xf0] }
  0x6c   : > { %v5068_v30 = vsel %vm528_vm1, %v699_v7, %v703_v44  ;;  %v5071_v31 = vsel %vm528_vm1, %v643_v8, %v647_v12  ;;  %v4268_v25 = vld [vmem:[%s4825_s5 + $0xa4] sm:$0xf]  ;;  %v3572_v52 = vld [vmem:[%s4825_s5 + $0xb0] sm:$0xf0]  ;;  %v3578_v53 = vld [vmem:[%s4825_s5 + $0xa8] sm:$0xf]  ;;  %v5092_v6 = vor.u32 %v4273_v32, %v3596_v35  ;;  %v5094_v39 = vor.u32 %v4270_v50, %v3570_v40 }
  0x6d   : > { %v5076_v38 = vsel %vm528_vm1, %v651_v13, %v655_v22  ;;  %v5079_v46 = vsel %vm528_vm1, %v659_v58, %v663_v24  ;;  %v4271_v57 = vld [vmem:[%s4825_s5 + $0xb4] sm:$0xf0]  ;;  %v4332_v59 = vld [vmem:[#allocation5 + $0x1ac] sm:$0xf]  ;;  %v3636_v60 = vld [vmem:[#allocation5 + $0x1b0] sm:$0xf0]  ;;  %v5096_v58 = vor.u32 %v4268_v25, %v3572_v52 }
  0x6e   : > { %6114 = vst [vmem:[#allocation30_spill] sm:$0xff] %v5092_v6  ;;  %v3639_v7 = vor.u32 %v4332_v59, %v3636_v60  ;;  %v4348_v8 = vld [vmem:[#allocation5 + $0x22c] sm:$0xf]  ;;  %v3700_v13 = vld [vmem:[#allocation5 + $0x230] sm:$0xf0]  ;;  %v5098_v33 = vor.u32 %v4271_v57, %v3578_v53  ;;  %v729_v56 = vshrl.u32 %v5051_v14, 16 }
  0x6f   : > { %6115 = vst [vmem:[#allocation31_spill] sm:$0xff] %v5094_v39  ;;  %v3764_v0 = vld [vmem:[#allocation5 + $0x2b0] sm:$0xf0]  ;;  %v3703_v62 = vor.u32 %v4348_v8, %v3700_v13  ;;  %v733_v63 = vshll.u32 %v5092_v6, 16  ;;  %v673_v32 = vshrl.u32 %v5053_v19, 16  ;;  %v677_v35 = vshll.u32 %v5094_v39, 16 }
  0x70   : > { %6116 = vst [vmem:[#allocation32_spill] sm:$0xff] %v5096_v58  ;;  %1303 = vmatpush.bf16.msrb.mxu3 %v3639_v7  ;;  %v3767_v27 = vor.u32 %v4364_v17, %v3764_v0  ;;  %v681_v40 = vshrl.u32 %v5055_v26, 16  ;;  %v685_v50 = vshll.u32 %v5096_v58, 16  ;;  %v689_v25 = vshrl.u32 %v5057_v29, 16  ;;  %v4277_v13 = vld [vmem:[%s4825_s5 + $0xec] sm:$0xf] }
  0x71   : > { %6117 = vst [vmem:[#allocation33_spill] sm:$0xff] %v5098_v33  ;;  %1352 = vmatpush.bf16.msrb.mxu0 %v3703_v62  ;;  %v693_v0 = vshll.u32 %v5098_v33, 16  ;;  %v731_v17 = vor.u32 %v729_v56, %v703_v44  ;;  %v735_v52 = vrot.slane %v733_v63, 1  ;;  %v675_v53 = vor.u32 %v673_v32, %v647_v12  ;;  %v3612_v14 = vld [vmem:[%s4825_s5 + $0xf8] sm:$0xf0]  ;;  %s4576_s10 = sshra.s32 %s5934_s7, 4  ;;  %s4577_s10 = int_to_ptr.hbm [resolvable:$true] %s4576_s10 }
  0x72   : > { %1401 = vmatpush.bf16.msrb.mxu1 %v3767_v27  ;;  %v679_v62 = vrot.slane %v677_v35, 1  ;;  %v683_v27 = vor.u32 %v681_v40, %v655_v22  ;;  %v687_v57 = vrot.slane %v685_v50, 1  ;;  %v691_v59 = vor.u32 %v689_v25, %v663_v24  ;;  %v3586_v44 = vld [vmem:[%s4825_s5 + $0xc0] sm:$0xf]  ;;  %v4274_v12 = vld [vmem:[%s4825_s5 + $0xcc] sm:$0xf0]  ;;  %p4583_p11 = scmp.lt.s32.totalorder %s4577_s10, %s6031_s2 }
  0x73   : > { %v695_v60 = vrot.slane %v693_v0, 1  ;;  %v5109_v7 = vsel %vm528_vm1, %v731_v17, %v735_v52  ;;  %v4272_v22 = vld [vmem:[%s4825_s5 + $0xc4] sm:$0xf]  ;;  %v3588_v32 = vld [vmem:[%s4825_s5 + $0xd0] sm:$0xf0]  ;;  %v5133_v25 = vor.u32 %v4277_v13, %v3612_v14  ;;  %v5135_v0 = vor.u32 %v4274_v12, %v3586_v44  ;;  %s4578_s12 = scalar_lea.hbm %s4577_s10, 128 }
  0x74   : > { %v5112_v8 = vsel %vm528_vm1, %v675_v53, %v679_v62  ;;  %v5117_v56 = vsel %vm528_vm1, %v683_v27, %v687_v57  ;;  %v3594_v24 = vld [vmem:[%s4825_s5 + $0xc8] sm:$0xf]  ;;  %v4275_v35 = vld [vmem:[%s4825_s5 + $0xd4] sm:$0xf0]  ;;  %v4330_v40 = vld [vmem:[#allocation5 + $0x19c] sm:$0xf]  ;;  %p4579_p1 = scmp.ne.s32.totalorder %s4577_s10, %s4578_s12 }
  0x75   : > { %v5120_v63 = vsel %vm528_vm1, %v691_v59, %v695_v60  ;;  %v3628_v50 = vld [vmem:[#allocation5 + $0x1a0] sm:$0xf0]  ;;  %6118 = vst [vmem:[#allocation34_spill] sm:$0xff] %v5133_v25  ;;  %v4346_v53 = vld [vmem:[#allocation5 + $0x21c] sm:$0xf]  ;;  %v5137_v59 = vor.u32 %v4272_v22, %v3588_v32  ;;  %v5139_v29 = vor.u32 %v4275_v35, %v3594_v24  ;;  %v761_v14 = vshrl.u32 %v5092_v6, 16 }
  0x76   : > { %6119 = vst [vmem:[#allocation35_spill] sm:$0xff] %v5135_v0  ;;  %v3631_v17 = vor.u32 %v4330_v40, %v3628_v50  ;;  %v3692_v27 = vld [vmem:[#allocation5 + $0x220] sm:$0xf0]  ;;  %v4362_v26 = vld [vmem:[#allocation5 + $0x29c] sm:$0xf]  ;;  %v765_v13 = vshll.u32 %v5133_v25, 16  ;;  %p4580_p4 = pnand %p4579_p1, %p4795_p7 }
  0x77   : > { %1120 = vmatmul.bf16.gmra.mxu0 %v5030_v54  ;;  %6120 = vst [vmem:[#allocation36_spill] sm:$0xff] %v5137_v59  ;;  %v3756_v61 = vld [vmem:[#allocation5 + $0x2a0] sm:$0xf0]  ;;  %v3695_v10 = vor.u32 %v4346_v53, %v3692_v27  ;;  %v4328_v19 = vld [vmem:[#allocation5 + $0x18c] sm:$0xf]  ;;  %v705_v44 = vshrl.u32 %v5094_v39, 16 }
  0x78   : > { %3811 = vmatmul.msk.bf16.gmra.mxu3 %vm1070_vm2, %v5027_v28  ;;  %6121 = vst [vmem:[#allocation37_spill] sm:$0xff] %v5139_v29  ;;  %v3759_v9 = vor.u32 %v4362_v26, %v3756_v61  ;;  %v3620_v20 = vld [vmem:[#allocation5 + $0x190] sm:$0xf0]  ;;  %v709_v12 = vshll.u32 %v5135_v0, 16  ;;  %v713_v22 = vshrl.u32 %v5096_v58, 16  ;;  %v717_v32 = vshll.u32 %v5137_v59, 16  ;;  %p4581_p8 = pneg %p4580_p4 }
  0x79   : > { %1169 = vmatmul.bf16.gmra.mxu1 %v5035_v34  ;;  %1218 = vmatmul.bf16.gmra.mxu2 %v5038_v36  ;;  %v3623_v5 = vor.u32 %v4328_v19, %v3620_v20  ;;  %v721_v61 = vshrl.u32 %v5098_v33, 16  ;;  %v725_v26 = vshll.u32 %v5139_v29, 16  ;;  %v763_v20 = vor.u32 %v761_v14, %v735_v52  ;;  %v3602_v14 = vld [vmem:[%s4825_s5 + $0xe0] sm:$0xf]  ;;  %v4360_v6 = vld [vmem:[#allocation5 + $0x28c] sm:$0xf] }
  0x7a   : > { %1304 = vmatpush.bf16.msrb.mxu3 %v3631_v17  ;;  %1353 = vmatpush.bf16.msrb.mxu0 %v3695_v10  ;;  %v767_v19 = vrot.slane %v765_v13, 1  ;;  %v707_v24 = vor.u32 %v705_v44, %v679_v62  ;;  %v711_v35 = vrot.slane %v709_v12, 1  ;;  %v719_v10 = vrot.slane %v717_v32, 1  ;;  %v339_v17 = vld [vmem:[%s4825_s5 + $0x108] sm:$0x11] }
  0x7b   : > { %1402 = vmatpush.bf16.msrb.mxu1 %v3759_v9  ;;  %v715_v9 = vor.u32 %v713_v22, %v687_v57  ;;  %v723_v40 = vor.u32 %v721_v61, %v695_v60  ;;  %v727_v50 = vrot.slane %v725_v26, 1  ;;  %v4278_v13 = vld [vmem:[%s4825_s5 + $0xec] sm:$0xf0]  ;;  %v4276_v57 = vld [vmem:[%s4825_s5 + $0xe4] sm:$0xf]  ;;  %v737_v39 = vshrl.u32 %v5135_v0, 16 }
  0x7c   : > { %v5151_v53 = vsel %vm528_vm1, %v763_v20, %v767_v19  ;;  %v5154_v27 = vsel %vm528_vm1, %v707_v24, %v711_v35  ;;  %v3604_v44 = vld [vmem:[%s4825_s5 + $0xf0] sm:$0xf0]  ;;  %v3610_v60 = vld [vmem:[%s4825_s5 + $0xe8] sm:$0xf]  ;;  %v4279_v12 = vld [vmem:[%s4825_s5 + $0xf4] sm:$0xf0]  ;;  %v5175_v32 = vor.u32 %v4278_v13, %v3602_v14 }
  0x7d   : > { %v5157_v52 = vsel %vm528_vm1, %v715_v9, %v719_v10  ;;  %v5160_v62 = vsel %vm528_vm1, %v723_v40, %v727_v50  ;;  %v5177_v61 = vor.u32 %v4276_v57, %v3604_v44  ;;  %v5179_v26 = vor.u32 %v4279_v12, %v3610_v60  ;;  %v4344_v20 = vld [vmem:[#allocation5 + $0x20c] sm:$0xf]  ;;  %v3684_v24 = vld [vmem:[#allocation5 + $0x210] sm:$0xf0] }
  0x7e   : > { %1305 = vmatpush.bf16.msrb.mxu3 %v3623_v5  ;;  %v491_v5 = vunpack.c.h.b16 %v339_v17  ;;  %v793_v9 = vshrl.u32 %v5133_v25, 16  ;;  %v3687_v40 = vor.u32 %v4344_v20, %v3684_v24  ;;  %v3748_v33 = vld [vmem:[#allocation5 + $0x290] sm:$0xf0]  ;;  %v745_v13 = vshrl.u32 %v5137_v59, 16 }
  0x7f   : > { %6123 = vst [vmem:[#allocation39_spill] sm:$0xff] %v5177_v61  ;;  %v3751_v14 = vor.u32 %v4360_v6, %v3748_v33  ;;  %v749_v57 = vshll.u32 %v5177_v61, 16  ;;  %v753_v44 = vshrl.u32 %v5139_v29, 16  ;;  %v757_v60 = vshll.u32 %v5179_v26, 16 }
  0x80   : > { %v5173_v22 = vpack.c.b16 %v491_v5, %v491_v5  ;;  %6124 = vst [vmem:[#allocation40_spill] sm:$0xff] %v5179_v26  ;;  %v741_v5 = vshll.u32 %v5175_v32, 16  ;;  %1354 = vmatpush.bf16.msrb.mxu0 %v3687_v40  ;;  %v795_v12 = vor.u32 %v793_v9, %v767_v19  ;;  %v739_v24 = vor.u32 %v737_v39, %v711_v35  ;;  %v3882_v35 = vld [vmem:[#allocation5 + $0x70] sm:$0xf]  ;;  %v4311_v9 = vld [vmem:[#allocation5 + $0xf4] sm:$0xf0] }
  0x81   : > { %1403 = vmatpush.bf16.msrb.mxu1 %v3751_v14  ;;  %v747_v4 = vor.u32 %v745_v13, %v719_v10  ;;  %v751_v0 = vrot.slane %v749_v57, 1  ;;  %v755_v3 = vor.u32 %v753_v44, %v727_v50  ;;  %v759_v37 = vrot.slane %v757_v60, 1  ;;  %v4295_v10 = vld [vmem:[#allocation5 + $0x74] sm:$0xf0]  ;;  %v4010_v60 = vld [vmem:[#allocation5 + $0x170] sm:$0xf] }
  0x82   : > { %6122 = vst [vmem:[#allocation38_spill] sm:$0xff] %v5173_v22  ;;  %v797_v58 = vshll.u32 %v5173_v22, 16  ;;  %v743_v25 = vrot.slane %v741_v5, 1  ;;  %v338_v22 = vld [vmem:[%s4825_s5 + $0x100] sm:$0x11]  ;;  %v490_v39 = vunpack.c.l.b16 %v339_v17  ;;  %v769_v5 = vshrl.u32 %v5175_v32, 16 }
  0x83   : > { %v488_v33 = vunpack.c.l.b16 %v338_v22  ;;  %v489_v29 = vunpack.c.h.b16 %v338_v22  ;;  %v5197_v40 = vsel %vm528_vm1, %v747_v4, %v751_v0  ;;  %v3883_v4 = vor.u32 %v4295_v10, %v3882_v35  ;;  %v3946_v17 = vld [vmem:[#allocation5 + $0xf0] sm:$0xf] }
  0x84   : > { %v799_v20 = vrot.slane %v797_v58, 1  ;;  %v5194_v59 = vsel %vm528_vm1, %v739_v24, %v743_v25  ;;  %v5200_v58 = vsel %vm528_vm1, %v755_v3, %v759_v37  ;;  %v5211_v22 = vpack.c.b16 %v490_v39, %v490_v39  ;;  %v5213_v3 = vld [vmem:[#allocation5 + $0x180] sm:$0x77] }
  0x85   : > { %v5205_v19 = vpack.c.b16 %v488_v33, %v488_v33  ;;  %v5209_v50 = vpack.c.b16 %v489_v29, %v489_v29  ;;  %1785 = vmatpush.bf16.msra.mxu3 %v3883_v4  ;;  %v1663_v13 = vunpack.c.l.b16 %v5213_v3  ;;  %v3947_v57 = vor.u32 %v4311_v9, %v3946_v17 }
  0x86   : > { %v5191_v6 = vsel %vm528_vm1, %v795_v12, %v799_v20  ;;  %6127 = vst [vmem:[#allocation43_spill] sm:$0xff] %v5211_v22  ;;  %v777_v44 = vshrl.u32 %v5177_v61, 16  ;;  %v4327_v12 = vld [vmem:[#allocation5 + $0x174] sm:$0xf0]  ;;  %v785_v20 = vshrl.u32 %v5179_v26, 16  ;;  %v789_v24 = vshll.u32 %v5211_v22, 16 }
  0x87   : > { %1125 = vmatmul.bf16.gmra.mxu0 %v5071_v31  ;;  %6125 = vst [vmem:[#allocation41_spill] sm:$0xff] %v5205_v19  ;;  %v773_v14 = vshll.u32 %v5205_v19, 16  ;;  %v781_v29 = vshll.u32 %v5209_v50, 16  ;;  %v1713_v33 = vpack.c.b16 %v1663_v13, %v1663_v13  ;;  %v4011_v39 = vor.u32 %v4327_v12, %v4010_v60  ;;  %v4325_v60 = vld [vmem:[#allocation5 + $0x164] sm:$0xf0] }
  0x88   : > { %3812 = vmatmul.msk.bf16.gmra.mxu3 %vm1070_vm2, %v5068_v30  ;;  %6126 = vst [vmem:[#allocation42_spill] sm:$0xff] %v5209_v50  ;;  %1834 = vmatpush.bf16.msra.mxu0 %v3947_v57  ;;  %v771_v10 = vor.u32 %v769_v5, %v743_v25  ;;  %v779_v17 = vor.u32 %v777_v44, %v751_v0  ;;  %v791_v61 = vrot.slane %v789_v24, 1  ;;  %v3874_v25 = vld [vmem:[#allocation5 + $0x60] sm:$0xf]  ;;  %v4293_v5 = vld [vmem:[#allocation5 + $0x64] sm:$0xf0] }
  0x89   : > { %1174 = vmatmul.bf16.gmra.mxu1 %v5076_v38  ;;  %1223 = vmatmul.bf16.gmra.mxu2 %v5079_v46  ;;  %v1780_v35 = vsel %vm1095_vm0, %v1713_v33, 0  ;;  %v775_v4 = vrot.slane %v773_v14, 1  ;;  %v783_v9 = vrot.slane %v781_v29, 1  ;;  %v787_v19 = vor.u32 %v785_v20, %v759_v37  ;;  %v3938_v14 = vld [vmem:[#allocation5 + $0xe0] sm:$0xf] }
  0x8a   : > { %1883 = vmatpush.bf16.msra.mxu1 %v4011_v39  ;;  %1939 = vmatpush.bf16.msra.mxu2 %v1780_v35  ;;  %v3875_v37 = vor.u32 %v4293_v5, %v3874_v25  ;;  %v4309_v57 = vld [vmem:[#allocation5 + $0xe4] sm:$0xf0]  ;;  %v4002_v29 = vld [vmem:[#allocation5 + $0x160] sm:$0xf]  ;;  %v3866_v24 = vld [vmem:[#allocation5 + $0x50] sm:$0xf] }
  0x8b   : > { %v5224_v50 = vsel %vm528_vm1, %v771_v10, %v775_v4  ;;  %v5227_v26 = vsel %vm528_vm1, %v779_v17, %v783_v9  ;;  %v5230_v13 = vsel %vm528_vm1, %v787_v19, %v791_v61  ;;  %v3939_v44 = vor.u32 %v4309_v57, %v3938_v14  ;;  %v4291_v33 = vld [vmem:[#allocation5 + $0x54] sm:$0xf0]  ;;  %v3930_v10 = vld [vmem:[#allocation5 + $0xd0] sm:$0xf] }
  0x8c   : > { %1786 = vmatpush.bf16.msra.mxu3 %v3875_v37  ;;  %v4003_v61 = vor.u32 %v4325_v60, %v4002_v29  ;;  %v3867_v39 = vor.u32 %v4291_v33, %v3866_v24  ;;  %v4307_v4 = vld [vmem:[#allocation5 + $0xd4] sm:$0xf0]  ;;  %v3994_v37 = vld [vmem:[#allocation5 + $0x150] sm:$0xf]  ;;  %v4289_v24 = vld [vmem:[#allocation5 + $0x44] sm:$0xf0] }
  0x8d   : > { %1835 = vmatpush.bf16.msra.mxu0 %v3939_v44  ;;  %v3931_v9 = vor.u32 %v4307_v4, %v3930_v10  ;;  %v4305_v10 = vld [vmem:[#allocation5 + $0xc4] sm:$0xf0]  ;;  %vm2239_vm3 = vcmask 1046528  }
  0x8e   : > { %1884 = vmatpush.bf16.msra.mxu1 %v4003_v61 }
  0x90   : > { %1787 = vmatpush.bf16.msra.mxu3 %v3867_v39  ;;  %v3922_v39 = vld [vmem:[#allocation5 + $0xc0] sm:$0xf] }
  0x91   : > { %1836 = vmatpush.bf16.msra.mxu0 %v3931_v9 }
  0x97   : > { %1130 = vmatmul.bf16.gmra.mxu0 %v5112_v8 }
  0x98   : > { %3813 = vmatmul.msk.bf16.gmra.mxu3 %vm1070_vm2, %v5109_v7 }
  0x99   : > { %1179 = vmatmul.bf16.gmra.mxu1 %v5117_v56  ;;  %1228 = vmatmul.bf16.gmra.mxu2 %v5120_v63 }
  0xa7   : > { %1135 = vmatmul.bf16.gmra.mxu0 %v5154_v27 }
  0xa8   : > { %3814 = vmatmul.msk.bf16.gmra.mxu3 %vm1070_vm2, %v5151_v53 }
  0xa9   : > { %1184 = vmatmul.bf16.gmra.mxu1 %v5157_v52  ;;  %1233 = vmatmul.bf16.gmra.mxu2 %v5160_v62 }
  0xb7   : > { %1140 = vmatmul.bf16.gmra.mxu0 %v5194_v59 }
  0xb8   : > { %3815 = vmatmul.msk.bf16.gmra.mxu3 %vm1070_vm2, %v5191_v6 }
  0xb9   : > { %1189 = vmatmul.bf16.gmra.mxu1 %v5197_v40  ;;  %1238 = vmatmul.bf16.gmra.mxu2 %v5200_v58 }
  0xc7   : > { %1145 = vmatmul.bf16.gmra.mxu0 %v5224_v50 }
  0xc8   : > { %1306 = vmatmul.bf16.vlgmr.msrb.gmra.mxu3 %v4945_v43 }
  0xc9   : > { %1194 = vmatmul.bf16.gmra.mxu1 %v5227_v26  ;;  %1243 = vmatmul.bf16.gmra.mxu2 %v5230_v13 }
  0xcb   : > { %v1258_v0 = vpop.f32.mrf.mxu3 }
  0xd3   : > { %v1260_v43 = vpop.f32.mrf.mxu3 }
  0xd4   : > { %v1111_v19 = vpop.f32.mrf.mxu0 }
  0xd6   : > { %v1160_v12 = vpop.f32.mrf.mxu1 }
  0xd7   : > { %v1161_v20 = vadd.f32 %v1160_v12, %v1111_v19  ;;  %1355 = vmatmul.bf16.vlgmr.msrb.gmra.mxu0 %v4951_v47 }
  0xd8   : > { %1311 = vmatmul.bf16.gmra.mxu3 %v4989_v16  ;;  %v4323_v16 = vld [vmem:[#allocation5 + $0x154] sm:$0xf0] }
  0xd9   : > { %1404 = vmatmul.bf16.vlgmr.msrb.gmra.mxu1 %v4955_v49  ;;  %3816 = vmatmul.msk.bf16.vlgmr.msrb.gmra.mxu2 %vm1070_vm2, %v4868_v11  ;;  %v3995_v47 = vor.u32 %v4323_v16, %v3994_v37 }
  0xdb   : > { %v1263_v35 = vpop.f32.mrf.mxu3  ;;  %1885 = vmatpush.bf16.msra.mxu1 %v3995_v47 }
  0xdc   : > { %v1209_v17 = vpop.f32.mrf.mxu2  ;;  %v1113_v5 = vpop.f32.mrf.mxu0 }
  0xdd   : > { %v1210_v25 = vadd.f32 %v1209_v17, %v1161_v20  ;;  %v3858_v20 = vld [vmem:[#allocation5 + $0x40] sm:$0xf]  ;;  %v3923_v17 = vor.u32 %v4305_v10, %v3922_v39 }
  0xde   : > { %v1162_v14 = vpop.f32.mrf.mxu1 }
  0xdf   : > { %v1163_v57 = vadd.f32 %v1162_v14, %v1113_v5  ;;  %v5241_v44 = vadd.f32 %v1258_v0, %v1210_v25  ;;  %v3859_v0 = vor.u32 %v4289_v24, %v3858_v20  ;;  %v3986_v25 = vld [vmem:[#allocation5 + $0x140] sm:$0xf]  ;;  %1837 = vmatpush.bf16.msra.mxu0 %v3923_v17  ;;  %v3914_v20 = vld [vmem:[#allocation5 + $0xb0] sm:$0xf]  ;;  %v4303_v24 = vld [vmem:[#allocation5 + $0xb4] sm:$0xf0] }
  0xe0   : > { %v3915_v39 = vor.u32 %v4303_v24, %v3914_v20  ;;  %v3970_v20 = vld [vmem:[#allocation5 + $0x120] sm:$0xf] }
  0xe1   : > { %1788 = vmatpush.bf16.msra.mxu3 %v3859_v0 }
  0xe3   : > { %v1265_v49 = vpop.f32.mrf.mxu3  ;;  %1838 = vmatpush.bf16.msra.mxu0 %v3915_v39 }
  0xe4   : > { %v1211_v11 = vpop.f32.mrf.mxu2  ;;  %v1116_v60 = vpop.f32.mrf.mxu0 }
  0xe5   : > { %v1212_v29 = vadd.f32 %v1211_v11, %v1163_v57 }
  0xe6   : > { %v1165_v61 = vpop.f32.mrf.mxu1 }
  0xe7   : > { %v1166_v19 = vadd.f32 %v1165_v61, %v1116_v60  ;;  %v5243_v12 = vadd.f32 %v1260_v43, %v1212_v29  ;;  %1360 = vmatmul.bf16.gmra.mxu0 %v4994_v21  ;;  %v3850_v60 = vld [vmem:[#allocation5 + $0x30] sm:$0xf]  ;;  %v4287_v61 = vld [vmem:[#allocation5 + $0x34] sm:$0xf0] }
  0xe8   : > { %1316 = vmatmul.bf16.gmra.mxu3 %v5030_v54  ;;  %v4321_v54 = vld [vmem:[#allocation5 + $0x144] sm:$0xf0] }
  0xe9   : > { %1409 = vmatmul.bf16.gmra.mxu1 %v4997_v51  ;;  %3817 = vmatmul.msk.bf16.gmra.mxu2 %vm1070_vm2, %v4941_v41  ;;  %v3987_v21 = vor.u32 %v4321_v54, %v3986_v25 }
  0xeb   : > { %v1268_v33 = vpop.f32.mrf.mxu3  ;;  %1886 = vmatpush.bf16.msra.mxu1 %v3987_v21 }
  0xec   : > { %v1214_v4 = vpop.f32.mrf.mxu2  ;;  %v1118_v9 = vpop.f32.mrf.mxu0 }
  0xed   : > { %v1215_v43 = vadd.f32 %v1214_v4, %v1166_v19  ;;  %v3978_v4 = vld [vmem:[#allocation5 + $0x130] sm:$0xf] }
  0xee   : > { %v1167_v5 = vpop.f32.mrf.mxu1 }
  0xef   : > { %v1168_v37 = vadd.f32 %v1167_v5, %v1118_v9  ;;  %v5250_v16 = vadd.f32 %v1263_v35, %v1215_v43  ;;  %v3851_v35 = vor.u32 %v4287_v61, %v3850_v60 }
  0xf1   : > { %1789 = vmatpush.bf16.msra.mxu3 %v3851_v35 }
  0xf3   : > { %v1270_v51 = vpop.f32.mrf.mxu3 }
  0xf4   : > { %v1216_v41 = vpop.f32.mrf.mxu2  ;;  %v1121_v47 = vpop.f32.mrf.mxu0 }
  0xf5   : > { %v1217_v14 = vadd.f32 %v1216_v41, %v1168_v37  ;;  %v3842_v41 = vld [vmem:[#allocation5 + $0x20] sm:$0xf] }
  0xf6   : > { %v1170_v57 = vpop.f32.mrf.mxu1 }
  0xf7   : > { %v1171_v11 = vadd.f32 %v1170_v57, %v1121_v47  ;;  %v5252_v29 = vadd.f32 %v1265_v49, %v1217_v14  ;;  %1365 = vmatmul.bf16.gmra.mxu0 %v5035_v34  ;;  %v4285_v14 = vld [vmem:[#allocation5 + $0x24] sm:$0xf0]  ;;  %v3906_v57 = vld [vmem:[#allocation5 + $0xa0] sm:$0xf] }
  0xf8   : > { %1321 = vmatmul.bf16.gmra.mxu3 %v5071_v31  ;;  %v4319_v31 = vld [vmem:[#allocation5 + $0x134] sm:$0xf0] }
  0xf9   : > { %1414 = vmatmul.bf16.gmra.mxu1 %v5038_v36  ;;  %3818 = vmatmul.msk.bf16.gmra.mxu2 %vm1070_vm2, %v4986_v45  ;;  %v3979_v34 = vor.u32 %v4319_v31, %v3978_v4 }
  0xfb   : > { %v1273_v19 = vpop.f32.mrf.mxu3  ;;  %1887 = vmatpush.bf16.msra.mxu1 %v3979_v34  ;;  %v3834_v34 = vld [vmem:[#allocation5 + $0x10] sm:$0xf] }
  0xfc   : > { %v1219_v0 = vpop.f32.mrf.mxu2  ;;  %v1123_v10 = vpop.f32.mrf.mxu0 }
  0xfd   : > { %v1220_v49 = vadd.f32 %v1219_v0, %v1171_v11  ;;  %v4301_v11 = vld [vmem:[#allocation5 + $0xa4] sm:$0xf0] }
  0xfe   : > { %v1172_v17 = vpop.f32.mrf.mxu1  ;;  %v3907_v61 = vor.u32 %v4301_v11, %v3906_v57 }
  0xff   : > { %v1173_v43 = vadd.f32 %v1172_v17, %v1123_v10  ;;  %v5259_v9 = vadd.f32 %v1268_v33, %v1220_v49  ;;  %v3843_v33 = vor.u32 %v4285_v14, %v3842_v41  ;;  %v3962_v14 = vld [vmem:[#allocation5 + $0x110] sm:$0xf] }
 0x100   : > { %1839 = vmatpush.bf16.msra.mxu0 %v3907_v61 }
 0x101   : > { %1790 = vmatpush.bf16.msra.mxu3 %v3843_v33 }
 0x103   : > { %v1275_v36 = vpop.f32.mrf.mxu3 }
 0x104   : > { %v1221_v45 = vpop.f32.mrf.mxu2  ;;  %v1126_v54 = vpop.f32.mrf.mxu0 }
 0x105   : > { %v1222_v25 = vadd.f32 %v1221_v45, %v1173_v43  ;;  %v4283_v43 = vld [vmem:[#allocation5 + $0x14] sm:$0xf0] }
 0x106   : > { %v1175_v5 = vpop.f32.mrf.mxu1 }
 0x107   : > { %v1176_v21 = vadd.f32 %v1175_v5, %v1126_v54  ;;  %v5261_v37 = vadd.f32 %v1270_v51, %v1222_v25  ;;  %1370 = vmatmul.bf16.gmra.mxu0 %v5076_v38  ;;  %v3898_v25 = vld [vmem:[#allocation5 + $0x90] sm:$0xf]  ;;  %v4299_v54 = vld [vmem:[#allocation5 + $0x94] sm:$0xf0] }
 0x108   : > { %1326 = vmatmul.bf16.gmra.mxu3 %v5112_v8  ;;  %v4317_v8 = vld [vmem:[#allocation5 + $0x124] sm:$0xf0] }
 0x109   : > { %1419 = vmatmul.bf16.gmra.mxu1 %v5079_v46  ;;  %3819 = vmatmul.msk.bf16.gmra.mxu2 %vm1070_vm2, %v5027_v28  ;;  %v3971_v38 = vor.u32 %v4317_v8, %v3970_v20 }
 0x10b   : > { %v1278_v47 = vpop.f32.mrf.mxu3  ;;  %1888 = vmatpush.bf16.msra.mxu1 %v3971_v38 }
 0x10c   : > { %v1224_v60 = vpop.f32.mrf.mxu2  ;;  %v1128_v35 = vpop.f32.mrf.mxu0 }
 0x10d   : > { %v1225_v51 = vadd.f32 %v1224_v60, %v1176_v21  ;;  %v3899_v21 = vor.u32 %v4299_v54, %v3898_v25 }
 0x10e   : > { %v1177_v24 = vpop.f32.mrf.mxu1 }
 0x10f   : > { %v1178_v0 = vadd.f32 %v1177_v24, %v1128_v35  ;;  %v5268_v39 = vadd.f32 %v1273_v19, %v1225_v51  ;;  %v3835_v19 = vor.u32 %v4283_v43, %v3834_v34  ;;  %1840 = vmatpush.bf16.msra.mxu0 %v3899_v21  ;;  %v3954_v34 = vld [vmem:[#allocation5 + $0x100] sm:$0xf]  ;;  %v4313_v43 = vld [vmem:[#allocation5 + $0x104] sm:$0xf0] }
 0x111   : > { %1791 = vmatpush.bf16.msra.mxu3 %v3835_v19  ;;  %v3955_v19 = vor.u32 %v4313_v43, %v3954_v34  ;;  %v3876_v34 = vld [vmem:[#allocation5 + $0x68] sm:$0xf0] }
 0x113   : > { %v1280_v46 = vpop.f32.mrf.mxu3 }
 0x114   : > { %v1226_v28 = vpop.f32.mrf.mxu2  ;;  %v1131_v10 = vpop.f32.mrf.mxu0 }
 0x115   : > { %v1227_v49 = vadd.f32 %v1226_v28, %v1178_v0  ;;  %v3890_v0 = vld [vmem:[#allocation5 + $0x80] sm:$0xf]  ;;  %v4297_v28 = vld [vmem:[#allocation5 + $0x84] sm:$0xf0] }
 0x116   : > { %v1180_v4 = vpop.f32.mrf.mxu1 }
 0x117   : > { %v1181_v31 = vadd.f32 %v1180_v4, %v1131_v10  ;;  %v5270_v17 = vadd.f32 %v1275_v36, %v1227_v49  ;;  %1375 = vmatmul.bf16.gmra.mxu0 %v5117_v56  ;;  %v3891_v10 = vor.u32 %v4297_v28, %v3890_v0 }
 0x118   : > { %1331 = vmatmul.bf16.gmra.mxu3 %v5154_v27  ;;  %v4315_v27 = vld [vmem:[#allocation5 + $0x114] sm:$0xf0] }
 0x119   : > { %1424 = vmatmul.bf16.gmra.mxu1 %v5120_v63  ;;  %3820 = vmatmul.msk.bf16.gmra.mxu2 %vm1070_vm2, %v5068_v30  ;;  %v3963_v56 = vor.u32 %v4315_v27, %v3962_v14  ;;  %v3826_v63 = vld [vmem:[#allocation5] sm:$0xf]  ;;  %v4281_v30 = vld [vmem:[#allocation5 + $0x4] sm:$0xf0]  ;;  %v3884_v14 = vld [vmem:[#allocation5 + $0x78] sm:$0xf0] }
 0x11a   : > { %v3827_v61 = vor.u32 %v4281_v30, %v3826_v63  ;;  %1841 = vmatpush.bf16.msra.mxu0 %v3891_v10 }
 0x11b   : > { %v1283_v45 = vpop.f32.mrf.mxu3  ;;  %1889 = vmatpush.bf16.msra.mxu1 %v3963_v56  ;;  %v4310_v56 = vld [vmem:[#allocation5 + $0xf4] sm:$0xf] }
 0x11c   : > { %v1229_v5 = vpop.f32.mrf.mxu2  ;;  %v1133_v41 = vpop.f32.mrf.mxu0  ;;  %1792 = vmatpush.bf16.msra.mxu3 %v3827_v61 }
 0x11d   : > { %v1230_v36 = vadd.f32 %v1229_v5, %v1181_v31 }
 0x11e   : > { %v1182_v33 = vpop.f32.mrf.mxu1 }
 0x11f   : > { %v1183_v57 = vadd.f32 %v1182_v33, %v1133_v41  ;;  %v5277_v11 = vadd.f32 %v1278_v47, %v1230_v36  ;;  %1890 = vmatpush.bf16.msra.mxu1 %v3955_v19  ;;  %v4294_v41 = vld [vmem:[#allocation5 + $0x74] sm:$0xf]  ;;  %v1664_v33 = vunpack.c.h.b16 %v5213_v3  ;;  %v3940_v19 = vld [vmem:[#allocation5 + $0xe8] sm:$0xf0] }
 0x121   : > { %v1714_v61 = vpack.c.b16 %v1664_v33, %v1664_v33 }
 0x123   : > { %v1285_v60 = vpop.f32.mrf.mxu3 }
 0x124   : > { %v1231_v51 = vpop.f32.mrf.mxu2  ;;  %v1136_v20 = vpop.f32.mrf.mxu0 }
 0x125   : > { %v1232_v35 = vadd.f32 %v1231_v51, %v1183_v57  ;;  %v3948_v57 = vld [vmem:[#allocation5 + $0xf8] sm:$0xf0] }
 0x126   : > { %v1185_v8 = vpop.f32.mrf.mxu1  ;;  %v3951_v30 = vor.u32 %v4310_v56, %v3948_v57  ;;  %v4012_v51 = vld [vmem:[#allocation5 + $0x178] sm:$0xf0] }
 0x127   : > { %v1186_v24 = vadd.f32 %v1185_v8, %v1136_v20  ;;  %v5279_v38 = vadd.f32 %v1280_v46, %v1232_v35  ;;  %1380 = vmatmul.bf16.gmra.mxu0 %v5157_v52 }
 0x128   : > { %1336 = vmatmul.bf16.gmra.mxu3 %v5194_v59  ;;  %2030 = vmatpush.bf16.msrb.mxu0 %v3951_v30 }
 0x129   : > { %1429 = vmatmul.bf16.gmra.mxu1 %v5160_v62  ;;  %3821 = vmatmul.msk.bf16.gmra.mxu2 %vm1070_vm2, %v5109_v7 }
 0x12b   : > { %v1288_v47 = vpop.f32.mrf.mxu3 }
 0x12c   : > { %v1234_v49 = vpop.f32.mrf.mxu2  ;;  %v1138_v31 = vpop.f32.mrf.mxu0 }
 0x12d   : > { %v1235_v4 = vadd.f32 %v1234_v49, %v1186_v24 }
 0x12e   : > { %v1187_v46 = vpop.f32.mrf.mxu1 }
 0x12f   : > { %v1188_v59 = vadd.f32 %v1187_v46, %v1138_v31  ;;  %v5286_v25 = vadd.f32 %v1283_v45, %v1235_v4  ;;  %v3887_v45 = vor.u32 %v4294_v41, %v3884_v14  ;;  %v4292_v31 = vld [vmem:[#allocation5 + $0x64] sm:$0xf] }
 0x130   : > { %v4308_v46 = vld [vmem:[#allocation5 + $0xe4] sm:$0xf] }
 0x131   : > { %1981 = vmatpush.bf16.msrb.mxu3 %v3887_v45 }
 0x133   : > { %v1290_v52 = vpop.f32.mrf.mxu3 }
 0x134   : > { %v1236_v62 = vpop.f32.mrf.mxu2  ;;  %v1141_v7 = vpop.f32.mrf.mxu0 }
 0x135   : > { %v1237_v54 = vadd.f32 %v1236_v62, %v1188_v59  ;;  %v3943_v62 = vor.u32 %v4308_v46, %v3940_v19 }
 0x136   : > { %v1190_v5 = vpop.f32.mrf.mxu1 }
 0x137   : > { %v1191_v21 = vadd.f32 %v1190_v5, %v1141_v7  ;;  %v5288_v36 = vadd.f32 %v1285_v60, %v1237_v54  ;;  %1385 = vmatmul.bf16.gmra.mxu0 %v5197_v40  ;;  %v4326_v40 = vld [vmem:[#allocation5 + $0x174] sm:$0xf]  ;;  %v4324_v7 = vld [vmem:[#allocation5 + $0x164] sm:$0xf]  ;;  %v4004_v5 = vld [vmem:[#allocation5 + $0x168] sm:$0xf0] }
 0x138   : > { %1341 = vmatmul.bf16.gmra.mxu3 %v5224_v50  ;;  %2031 = vmatpush.bf16.msrb.mxu0 %v3943_v62  ;;  %v4288_v62 = vld [vmem:[#allocation5 + $0x44] sm:$0xf] }
 0x139   : > { %1434 = vmatmul.bf16.gmra.mxu1 %v5200_v58  ;;  %3822 = vmatmul.msk.bf16.gmra.mxu2 %vm1070_vm2, %v5151_v53  ;;  %v4015_v58 = vor.u32 %v4326_v40, %v4012_v51  ;;  %v1783_v53 = vsel %vm1095_vm0, %v1714_v61, 0  ;;  %v4306_v40 = vld [vmem:[#allocation5 + $0xd4] sm:$0xf]  ;;  %v3932_v51 = vld [vmem:[#allocation5 + $0xd8] sm:$0xf0] }
 0x13a   : > { %2135 = vmatpush.bf16.msrb.mxu2 %v1783_v53 }
 0x13b   : > { %v1293_v27 = vpop.f32.mrf.mxu3  ;;  %2079 = vmatpush.bf16.msrb.mxu1 %v4015_v58  ;;  %v3935_v58 = vor.u32 %v4306_v40, %v3932_v51 }
 0x13c   : > { %v1239_v63 = vpop.f32.mrf.mxu2  ;;  %v1143_v50 = vpop.f32.mrf.mxu0 }
 0x13d   : > { %v1240_v60 = vadd.f32 %v1239_v63, %v1191_v21  ;;  %2032 = vmatpush.bf16.msrb.mxu0 %v3935_v58 }
 0x13e   : > { %v1192_v35 = vpop.f32.mrf.mxu1 }
 0x13f   : > { %v1193_v20 = vadd.f32 %v1192_v35, %v1143_v50  ;;  %v5297_v8 = vadd.f32 %v1288_v47, %v1240_v60  ;;  %v3879_v47 = vor.u32 %v4292_v31, %v3876_v34  ;;  %v4290_v60 = vld [vmem:[#allocation5 + $0x54] sm:$0xf]  ;;  %v3868_v50 = vld [vmem:[#allocation5 + $0x58] sm:$0xf0] }
 0x141   : > { %1982 = vmatpush.bf16.msrb.mxu3 %v3879_v47 }
 0x143   : > { %v1295_v3 = vpop.f32.mrf.mxu3 }
 0x144   : > { %v1241_v24 = vpop.f32.mrf.mxu2  ;;  %v1146_v28 = vpop.f32.mrf.mxu0 }
 0x145   : > { %v1242_v0 = vadd.f32 %v1241_v24, %v1193_v20  ;;  %v3996_v24 = vld [vmem:[#allocation5 + $0x158] sm:$0xf0] }
 0x146   : > { %v1195_v49 = vpop.f32.mrf.mxu1 }
 0x147   : > { %v1196_v10 = vadd.f32 %v1195_v49, %v1146_v28  ;;  %v5299_v4 = vadd.f32 %v1290_v52, %v1242_v0  ;;  %1390 = vmatmul.bf16.gmra.mxu0 %v5227_v26  ;;  %v4007_v26 = vor.u32 %v4324_v7, %v4004_v5 }
 0x148   : > { %1793 = vmatmul.bf16.vlgmr.msra.gmra.mxu3 %v4876_v15 }
 0x149   : > { %1439 = vmatmul.bf16.gmra.mxu1 %v5230_v13  ;;  %3823 = vmatmul.msk.bf16.gmra.mxu2 %vm1070_vm2, %v5191_v6 }
 0x14a   : > { %2080 = vmatpush.bf16.msrb.mxu1 %v4007_v26  ;;  %v3924_v26 = vld [vmem:[#allocation5 + $0xc8] sm:$0xf0] }
 0x14b   : > { %v1307_v43 = vpop.f32.mrf.mxu3 }
 0x14c   : > { %v1244_v59 = vpop.f32.mrf.mxu2  ;;  %v1148_v54 = vpop.f32.mrf.mxu0 }
 0x14d   : > { %v1245_v52 = vadd.f32 %v1244_v59, %v1196_v10 }
 0x14e   : > { %v1197_v21 = vpop.f32.mrf.mxu1 }
 0x14f   : > { %v1198_v41 = vadd.f32 %v1197_v21, %v1148_v54  ;;  %v5306_v14 = vadd.f32 %v1293_v27, %v1245_v52  ;;  %v3871_v27 = vor.u32 %v4290_v60, %v3868_v50  ;;  %v3860_v52 = vld [vmem:[#allocation5 + $0x48] sm:$0xf0]  ;;  %v4304_v21 = vld [vmem:[#allocation5 + $0xc4] sm:$0xf] }
 0x150   : > { %v6132_v54 = vld [vmem:[#allocation16_spill] sm:$0xff]  ;;  %v3863_v7 = vor.u32 %v4288_v62, %v3860_v52 }
 0x151   : > { %6128 = vst [vmem:[#allocation44_spill] sm:$0xff] %v5306_v14  ;;  %1983 = vmatpush.bf16.msrb.mxu3 %v3871_v27 }
 0x153   : > { %v1309_v13 = vpop.f32.mrf.mxu3 }
 0x154   : > { %v1246_v6 = vpop.f32.mrf.mxu2  ;;  %v1356_v33 = vpop.f32.mrf.mxu0 }
 0x155   : > { %v1247_v45 = vadd.f32 %v1246_v6, %v1198_v41  ;;  %v1357_v56 = vadd.f32 %v1356_v33, %v1307_v43  ;;  %1984 = vmatpush.bf16.msrb.mxu3 %v3863_v7  ;;  %v4320_v33 = vld [vmem:[#allocation5 + $0x144] sm:$0xf]  ;;  %v4318_v7 = vld [vmem:[#allocation5 + $0x134] sm:$0xf] }
 0x156   : > { %v1405_v57 = vpop.f32.mrf.mxu1 }
 0x157   : > { %v5308_v63 = vadd.f32 %v1295_v3, %v1247_v45  ;;  %v1406_v30 = vadd.f32 %v1405_v57, %v1357_v56  ;;  %1842 = vmatmul.bf16.vlgmr.msra.gmra.mxu0 %v4886_v23  ;;  %v4322_v3 = vld [vmem:[#allocation5 + $0x154] sm:$0xf]  ;;  %v3988_v56 = vld [vmem:[#allocation5 + $0x148] sm:$0xf0] }
 0x158   : > { %1798 = vmatmul.bf16.gmra.mxu3 %v4905_v48  ;;  %v3999_v49 = vor.u32 %v4322_v3, %v3996_v24  ;;  %v3991_v60 = vor.u32 %v4320_v33, %v3988_v56  ;;  %v6136_v24 = vld [vmem:[#allocation20_spill] sm:$0xff] }
 0x159   : > { %6129 = vst [vmem:[#allocation45_spill] sm:$0xff] %v5308_v63  ;;  %1891 = vmatmul.bf16.vlgmr.msra.gmra.mxu1 %v4902_v18  ;;  %4016 = vmatmul.msk.bf16.vlgmr.msra.gmra.mxu2 %vm1070_vm2, %v4853_v42 }
 0x15a   : > { %2081 = vmatpush.bf16.msrb.mxu1 %v3999_v49  ;;  %v6137_v49 = vld [vmem:[#allocation21_spill] sm:$0xff] }
 0x15b   : > { %v1312_v61 = vpop.f32.mrf.mxu3 }
 0x15c   : > { %v1454_v35 = vpop.f32.mrf.mxu2  ;;  %v1358_v53 = vpop.f32.mrf.mxu0 }
 0x15d   : > { %v5315_v20 = vadd.f32 %v1454_v35, %v1406_v30  ;;  %v1359_v0 = vadd.f32 %v1358_v53, %v1309_v13  ;;  %v3927_v13 = vor.u32 %v4304_v21, %v3924_v26  ;;  %v6135_v53 = vld [vmem:[#allocation23_spill] sm:$0xff] }
 0x15e   : > { %v1407_v28 = vpop.f32.mrf.mxu1  ;;  %2082 = vmatpush.bf16.msrb.mxu1 %v3991_v60 }
 0x15f   : > { %6130 = vst [vmem:[#allocation46_spill] sm:$0xff] %v5315_v20  ;;  %v1408_v10 = vadd.f32 %v1407_v28, %v1359_v0  ;;  %2033 = vmatpush.bf16.msrb.mxu0 %v3927_v13  ;;  %v4286_v0 = vld [vmem:[#allocation5 + $0x34] sm:$0xf]  ;;  %v3852_v28 = vld [vmem:[#allocation5 + $0x38] sm:$0xf0] }
 0x163   : > { %v1314_v31 = vpop.f32.mrf.mxu3 }
 0x164   : > { %v1456_v34 = vpop.f32.mrf.mxu2  ;;  %v1361_v43 = vpop.f32.mrf.mxu0 }
 0x165   : > { %v5317_v47 = vadd.f32 %v1456_v34, %v1408_v10  ;;  %v1362_v46 = vadd.f32 %v1361_v43, %v1312_v61  ;;  %v6138_v10 = vld [vmem:[#allocation18_spill] sm:$0xff]  ;;  %v4302_v43 = vld [vmem:[#allocation5 + $0xb4] sm:$0xf] }
 0x166   : > { %v1410_v19 = vpop.f32.mrf.mxu1 }
 0x167   : > { %6131 = vst [vmem:[#allocation47_spill] sm:$0xff] %v5317_v47  ;;  %v1411_v59 = vadd.f32 %v1410_v19, %v1362_v46  ;;  %1847 = vmatmul.bf16.gmra.mxu0 %v4911_v55  ;;  %v3916_v46 = vld [vmem:[#allocation5 + $0xb8] sm:$0xf0] }
 0x168   : > { %1803 = vmatmul.bf16.gmra.mxu3 %v4967_v1 }
 0x169   : > { %1896 = vmatmul.bf16.gmra.mxu1 %v4917_v2  ;;  %4017 = vmatmul.msk.bf16.gmra.mxu2 %vm1070_vm2, %v6132_v54 }
 0x16b   : > { %v1317_v5 = vpop.f32.mrf.mxu3 }
 0x16c   : > { %v1459_v41 = vpop.f32.mrf.mxu2  ;;  %v1363_v45 = vpop.f32.mrf.mxu0 }
 0x16d   : > { %v5324_v6 = vadd.f32 %v1459_v41, %v1411_v59  ;;  %v1364_v57 = vadd.f32 %v1363_v45, %v1314_v31  ;;  %v3855_v31 = vor.u32 %v4286_v0, %v3852_v28  ;;  %v3919_v59 = vor.u32 %v4302_v43, %v3916_v46  ;;  %v3908_v43 = vld [vmem:[#allocation5 + $0xa8] sm:$0xf0] }
 0x16e   : > { %v1412_v30 = vpop.f32.mrf.mxu1 }
 0x16f   : > { %6133 = vst [vmem:[#allocation16_spill] sm:$0xff] %v5324_v6  ;;  %v1413_v50 = vadd.f32 %v1412_v30, %v1364_v57  ;;  %1985 = vmatpush.bf16.msrb.mxu3 %v3855_v31  ;;  %2034 = vmatpush.bf16.msrb.mxu0 %v3919_v59  ;;  %v4300_v31 = vld [vmem:[#allocation5 + $0xa4] sm:$0xf] }
 0x173   : > { %v1319_v27 = vpop.f32.mrf.mxu3 }
 0x174   : > { %v1461_v61 = vpop.f32.mrf.mxu2  ;;  %v1366_v51 = vpop.f32.mrf.mxu0 }
 0x175   : > { %v5326_v40 = vadd.f32 %v1461_v61, %v1413_v50  ;;  %v1367_v35 = vadd.f32 %v1366_v51, %v1317_v5  ;;  %v3980_v5 = vld [vmem:[#allocation5 + $0x138] sm:$0xf0]  ;;  %v6141_v50 = vld [vmem:[#allocation27_spill] sm:$0xff]  ;;  %v6142_v51 = vld [vmem:[#allocation24_spill] sm:$0xff] }
 0x176   : > { %v1415_v58 = vpop.f32.mrf.mxu1  ;;  %v3983_v41 = vor.u32 %v4318_v7, %v3980_v5  ;;  %v3972_v7 = vld [vmem:[#allocation5 + $0x128] sm:$0xf0] }
 0x177   : > { %6134 = vst [vmem:[#allocation48_spill] sm:$0xff] %v5326_v40  ;;  %v1416_v3 = vadd.f32 %v1415_v58, %v1367_v35  ;;  %1852 = vmatmul.bf16.gmra.mxu0 %v6136_v24  ;;  %v4284_v35 = vld [vmem:[#allocation5 + $0x24] sm:$0xf]  ;;  %v3844_v58 = vld [vmem:[#allocation5 + $0x28] sm:$0xf0] }
 0x178   : > { %1808 = vmatmul.bf16.gmra.mxu3 %v6135_v53  ;;  %2083 = vmatpush.bf16.msrb.mxu1 %v3983_v41  ;;  %v3847_v0 = vor.u32 %v4284_v35, %v3844_v58  ;;  %v6147_v58 = vld [vmem:[#allocation31_spill] sm:$0xff] }
 0x179   : > { %1901 = vmatmul.bf16.gmra.mxu1 %v6137_v49  ;;  %4018 = vmatmul.msk.bf16.gmra.mxu2 %vm1070_vm2, %v6138_v10 }
 0x17a   : > { %1986 = vmatpush.bf16.msrb.mxu3 %v3847_v0  ;;  %v6148_v0 = vld [vmem:[#allocation28_spill] sm:$0xff] }
 0x17b   : > { %v1322_v34 = vpop.f32.mrf.mxu3 }
 0x17c   : > { %v1464_v19 = vpop.f32.mrf.mxu2  ;;  %v1368_v52 = vpop.f32.mrf.mxu0 }
 0x17d   : > { %v5333_v62 = vadd.f32 %v1464_v19, %v1416_v3  ;;  %v1369_v21 = vadd.f32 %v1368_v52, %v1319_v27  ;;  %v6143_v27 = vld [vmem:[#allocation25_spill] sm:$0xff]  ;;  %v6144_v3 = vld [vmem:[#allocation19_spill] sm:$0xff] }
 0x17e   : > { %v1417_v26 = vpop.f32.mrf.mxu1  ;;  %v4316_v52 = vld [vmem:[#allocation5 + $0x124] sm:$0xf] }
 0x17f   : > { %6139 = vst [vmem:[#allocation23_spill] sm:$0xff] %v5333_v62  ;;  %v1418_v13 = vadd.f32 %v1417_v26, %v1369_v21  ;;  %v3975_v26 = vor.u32 %v4316_v52, %v3972_v7  ;;  %v4298_v52 = vld [vmem:[#allocation5 + $0x94] sm:$0xf]  ;;  %v3900_v7 = vld [vmem:[#allocation5 + $0x98] sm:$0xf0] }
 0x181   : > { %2084 = vmatpush.bf16.msrb.mxu1 %v3975_v26 }
 0x183   : > { %v1324_v45 = vpop.f32.mrf.mxu3 }
 0x184   : > { %v1466_v33 = vpop.f32.mrf.mxu2  ;;  %v1371_v57 = vpop.f32.mrf.mxu0 }
 0x185   : > { %v5335_v56 = vadd.f32 %v1466_v33, %v1418_v13  ;;  %v1372_v30 = vadd.f32 %v1371_v57, %v1322_v34  ;;  %v3911_v34 = vor.u32 %v4300_v31, %v3908_v43  ;;  %v4282_v31 = vld [vmem:[#allocation5 + $0x14] sm:$0xf]  ;;  %v3836_v43 = vld [vmem:[#allocation5 + $0x18] sm:$0xf0] }
 0x186   : > { %v1420_v60 = vpop.f32.mrf.mxu1 }
 0x187   : > { %6140 = vst [vmem:[#allocation20_spill] sm:$0xff] %v5335_v56  ;;  %v1421_v61 = vadd.f32 %v1420_v60, %v1372_v30  ;;  %1857 = vmatmul.bf16.gmra.mxu0 %v6142_v51 }
 0x188   : > { %1813 = vmatmul.bf16.gmra.mxu3 %v6141_v50  ;;  %2035 = vmatpush.bf16.msrb.mxu0 %v3911_v34  ;;  %v3839_v34 = vor.u32 %v4282_v31, %v3836_v43 }
 0x189   : > { %1906 = vmatmul.bf16.gmra.mxu1 %v6143_v27  ;;  %4019 = vmatmul.msk.bf16.gmra.mxu2 %vm1070_vm2, %v6144_v3 }
 0x18a   : > { %1987 = vmatpush.bf16.msrb.mxu3 %v3839_v34 }
 0x18b   : > { %v1327_v28 = vpop.f32.mrf.mxu3 }
 0x18c   : > { %v1469_v46 = vpop.f32.mrf.mxu2  ;;  %v1373_v59 = vpop.f32.mrf.mxu0 }
 0x18d   : > { %v5342_v19 = vadd.f32 %v1469_v46, %v1421_v61  ;;  %v1374_v5 = vadd.f32 %v1373_v59, %v1324_v45  ;;  %v6149_v45 = vld [vmem:[#allocation29_spill] sm:$0xff]  ;;  %v6150_v46 = vld [vmem:[#allocation22_spill] sm:$0xff] }
 0x18e   : > { %v1422_v21 = vpop.f32.mrf.mxu1 }
 0x18f   : > { %6145 = vst [vmem:[#allocation21_spill] sm:$0xff] %v5342_v19  ;;  %v1423_v41 = vadd.f32 %v1422_v21, %v1374_v5  ;;  %v3828_v19 = vld [vmem:[#allocation5 + $0x8] sm:$0xf0] }
 0x193   : > { %v1329_v13 = vpop.f32.mrf.mxu3 }
 0x194   : > { %v1471_v33 = vpop.f32.mrf.mxu2  ;;  %v1376_v30 = vpop.f32.mrf.mxu0 }
 0x195   : > { %v5344_v57 = vadd.f32 %v1471_v33, %v1423_v41  ;;  %v1377_v60 = vadd.f32 %v1376_v30, %v1327_v28  ;;  %v3903_v28 = vor.u32 %v4298_v52, %v3900_v7  ;;  %v4314_v41 = vld [vmem:[#allocation5 + $0x114] sm:$0xf]  ;;  %v3964_v33 = vld [vmem:[#allocation5 + $0x118] sm:$0xf0]  ;;  %v6153_v7 = vld [vmem:[#allocation35_spill] sm:$0xff] }
 0x196   : > { %v1425_v35 = vpop.f32.mrf.mxu1 }
 0x197   : > { %6146 = vst [vmem:[#allocation18_spill] sm:$0xff] %v5344_v57  ;;  %v1426_v61 = vadd.f32 %v1425_v35, %v1377_v60  ;;  %1862 = vmatmul.bf16.gmra.mxu0 %v6148_v0  ;;  %v3967_v35 = vor.u32 %v4314_v41, %v3964_v33  ;;  %v4280_v57 = vld [vmem:[#allocation5 + $0x4] sm:$0xf] }
 0x198   : > { %1818 = vmatmul.bf16.gmra.mxu3 %v6147_v58  ;;  %2036 = vmatpush.bf16.msrb.mxu0 %v3903_v28  ;;  %v3831_v43 = vor.u32 %v4280_v57, %v3828_v19  ;;  %v6155_v28 = vld [vmem:[#allocation33_spill] sm:$0xff]  ;;  %v4296_v19 = vld [vmem:[#allocation5 + $0x84] sm:$0xf]  ;;  %v3892_v57 = vld [vmem:[#allocation5 + $0x88] sm:$0xf0] }
 0x199   : > { %1911 = vmatmul.bf16.gmra.mxu1 %v6149_v45  ;;  %4020 = vmatmul.msk.bf16.gmra.mxu2 %vm1070_vm2, %v6150_v46 }
 0x19a   : > { %2085 = vmatpush.bf16.msrb.mxu1 %v3967_v35  ;;  %1988 = vmatpush.bf16.msrb.mxu3 %v3831_v43 }
 0x19b   : > { %v1332_v59 = vpop.f32.mrf.mxu3 }
 0x19c   : > { %v1474_v5 = vpop.f32.mrf.mxu2  ;;  %v1378_v26 = vpop.f32.mrf.mxu0 }
 0x19d   : > { %v5351_v21 = vadd.f32 %v1474_v5, %v1426_v61  ;;  %v1379_v30 = vadd.f32 %v1378_v26, %v1329_v13  ;;  %v6154_v13 = vld [vmem:[#allocation32_spill] sm:$0xff]  ;;  %v6156_v26 = vld [vmem:[#allocation26_spill] sm:$0xff] }
 0x19e   : > { %v1427_v60 = vpop.f32.mrf.mxu1 }
 0x19f   : > { %6151 = vst [vmem:[#allocation27_spill] sm:$0xff] %v5351_v21  ;;  %v1428_v22 = vadd.f32 %v1427_v60, %v1379_v30  ;;  %v3895_v60 = vor.u32 %v4296_v19, %v3892_v57  ;;  %v4090_v19 = vld [vmem:[#allocation5 + $0x380] sm:$0xf]  ;;  %v4391_v57 = vld [vmem:[#allocation5 + $0x384] sm:$0xf0] }
 0x1a1   : > { %2037 = vmatpush.bf16.msrb.mxu0 %v3895_v60  ;;  %v4091_v60 = vor.u32 %v4391_v57, %v4090_v19 }
 0x1a3   : > { %v1334_v31 = vpop.f32.mrf.mxu3  ;;  %2607 = vmatpush.bf16.msra.mxu3 %v4091_v60 }
 0x1a4   : > { %v1476_v34 = vpop.f32.mrf.mxu2  ;;  %v1381_v62 = vpop.f32.mrf.mxu0 }
 0x1a5   : > { %v5353_v56 = vadd.f32 %v1476_v34, %v1428_v22  ;;  %v1382_v61 = vadd.f32 %v1381_v62, %v1332_v59  ;;  %v4312_v62 = vld [vmem:[#allocation5 + $0x104] sm:$0xf]  ;;  %v3956_v59 = vld [vmem:[#allocation5 + $0x108] sm:$0xf0] }
 0x1a6   : > { %v1430_v52 = vpop.f32.mrf.mxu1  ;;  %v3959_v34 = vor.u32 %v4312_v62, %v3956_v59  ;;  %v5369_v59 = vld [vmem:[#allocation5 + $0x490] sm:$0x77] }
 0x1a7   : > { %6152 = vst [vmem:[#allocation24_spill] sm:$0xff] %v5353_v56  ;;  %v1431_v5 = vadd.f32 %v1430_v52, %v1382_v61  ;;  %1867 = vmatmul.bf16.gmra.mxu0 %v6154_v13 }
 0x1a8   : > { %1823 = vmatmul.bf16.gmra.mxu3 %v6153_v7  ;;  %2086 = vmatpush.bf16.msrb.mxu1 %v3959_v34  ;;  %6162 = vst [vmem:[#allocation31_spill] sm:$0xff] %v5369_v59  ;;  %v4218_v34 = vld [vmem:[#allocation5 + $0x480] sm:$0xf] }
 0x1a9   : > { %1916 = vmatmul.bf16.gmra.mxu1 %v6155_v28  ;;  %4021 = vmatmul.msk.bf16.gmra.mxu2 %vm1070_vm2, %v6156_v26 }
 0x1ab   : > { %v1337_v41 = vpop.f32.mrf.mxu3 }
 0x1ac   : > { %v1479_v33 = vpop.f32.mrf.mxu2  ;;  %v1383_v30 = vpop.f32.mrf.mxu0 }
 0x1ad   : > { %v5360_v22 = vadd.f32 %v1479_v33, %v1431_v5  ;;  %v1384_v35 = vadd.f32 %v1383_v30, %v1334_v31  ;;  %v6159_v33 = vld [vmem:[#allocation36_spill] sm:$0xff]  ;;  %v6160_v31 = vld [vmem:[#allocation37_spill] sm:$0xff]  ;;  %v6161_v30 = vld [vmem:[#allocation30_spill] sm:$0xff] }
 0x1ae   : > { %v1432_v43 = vpop.f32.mrf.mxu1 }
 0x1af   : > { %6157 = vst [vmem:[#allocation25_spill] sm:$0xff] %v5360_v22  ;;  %v1433_v61 = vadd.f32 %v1432_v43, %v1384_v35 }
 0x1b3   : > { %v1339_v52 = vpop.f32.mrf.mxu3 }
 0x1b4   : > { %v1481_v56 = vpop.f32.mrf.mxu2  ;;  %v1386_v40 = vpop.f32.mrf.mxu0 }
 0x1b5   : > { %v5362_v21 = vadd.f32 %v1481_v56, %v1433_v61  ;;  %v1387_v6 = vadd.f32 %v1386_v40, %v1337_v41  ;;  %v4154_v40 = vld [vmem:[#allocation5 + $0x400] sm:$0xf]  ;;  %v4407_v41 = vld [vmem:[#allocation5 + $0x404] sm:$0xf0] }
 0x1b6   : > { %v1435_v47 = vpop.f32.mrf.mxu1  ;;  %v4155_v43 = vor.u32 %v4407_v41, %v4154_v40  ;;  %v4423_v61 = vld [vmem:[#allocation5 + $0x484] sm:$0xf0]  ;;  %v4082_v41 = vld [vmem:[#allocation5 + $0x370] sm:$0xf] }
 0x1b7   : > { %6158 = vst [vmem:[#allocation19_spill] sm:$0xff] %v5362_v21  ;;  %v1436_v5 = vadd.f32 %v1435_v47, %v1387_v6  ;;  %1872 = vmatmul.bf16.gmra.mxu0 %v6159_v33  ;;  %v2477_v6 = vunpack.c.l.b16 %v5369_v59  ;;  %v4219_v20 = vor.u32 %v4423_v61, %v4218_v34  ;;  %v4421_v61 = vld [vmem:[#allocation5 + $0x474] sm:$0xf0] }
 0x1b8   : > { %1828 = vmatmul.bf16.gmra.mxu3 %v5175_v32  ;;  %2656 = vmatpush.bf16.msra.mxu0 %v4155_v43  ;;  %v4405_v43 = vld [vmem:[#allocation5 + $0x3f4] sm:$0xf0] }
 0x1b9   : > { %1921 = vmatmul.bf16.gmra.mxu1 %v6160_v31  ;;  %4022 = vmatmul.msk.bf16.gmra.mxu2 %vm1070_vm2, %v6161_v30  ;;  %v2527_v63 = vpack.c.b16 %v2477_v6, %v2477_v6  ;;  %v6166_v6 = vld [vmem:[#allocation40_spill] sm:$0xff] }
 0x1ba   : > { %2705 = vmatpush.bf16.msra.mxu1 %v4219_v20  ;;  %v6167_v20 = vld [vmem:[#allocation34_spill] sm:$0xff] }
 0x1bb   : > { %v1342_v62 = vpop.f32.mrf.mxu3  ;;  %v2602_v57 = vsel %vm1095_vm0, %v2527_v63, 0 }
 0x1bc   : > { %v1484_v56 = vpop.f32.mrf.mxu2  ;;  %v1388_v47 = vpop.f32.mrf.mxu0  ;;  %2761 = vmatpush.bf16.msra.mxu2 %v2602_v57 }
 0x1bd   : > { %v5371_v35 = vadd.f32 %v1484_v56, %v1436_v5  ;;  %v1389_v21 = vadd.f32 %v1388_v47, %v1339_v52  ;;  %v6165_v52 = vld [vmem:[#allocation39_spill] sm:$0xff]  ;;  %v4389_v47 = vld [vmem:[#allocation5 + $0x374] sm:$0xf0] }
 0x1be   : > { %v1437_v22 = vpop.f32.mrf.mxu1  ;;  %v4083_v63 = vor.u32 %v4389_v47, %v4082_v41 }
 0x1bf   : > { %6163 = vst [vmem:[#allocation28_spill] sm:$0xff] %v5371_v35  ;;  %v1438_v19 = vadd.f32 %v1437_v22, %v1389_v21 }
 0x1c0   : > { %2608 = vmatpush.bf16.msra.mxu3 %v4083_v63 }
 0x1c3   : > { %v1344_v60 = vpop.f32.mrf.mxu3 }
 0x1c4   : > { %v1486_v14 = vpop.f32.mrf.mxu2  ;;  %v1391_v56 = vpop.f32.mrf.mxu0 }
 0x1c5   : > { %v5375_v5 = vadd.f32 %v1486_v14, %v1438_v19  ;;  %v1392_v35 = vadd.f32 %v1391_v56, %v1342_v62  ;;  %v4146_v62 = vld [vmem:[#allocation5 + $0x3f0] sm:$0xf] }
 0x1c6   : > { %v1440_v59 = vpop.f32.mrf.mxu1 }
 0x1c7   : > { %6164 = vst [vmem:[#allocation29_spill] sm:$0xff] %v5375_v5  ;;  %v1441_v40 = vadd.f32 %v1440_v59, %v1392_v35  ;;  %1877 = vmatmul.bf16.gmra.mxu0 %v6165_v52  ;;  %v4147_v59 = vor.u32 %v4405_v43, %v4146_v62  ;;  %v4210_v35 = vld [vmem:[#allocation5 + $0x470] sm:$0xf]  ;;  %v4387_v62 = vld [vmem:[#allocation5 + $0x364] sm:$0xf0] }
 0x1c8   : > { %1989 = vmatmul.bf16.vlgmr.msrb.gmra.mxu3 %v4876_v15  ;;  %v4211_v56 = vor.u32 %v4421_v61, %v4210_v35 }
 0x1c9   : > { %1926 = vmatmul.bf16.gmra.mxu1 %v6166_v6  ;;  %4023 = vmatmul.msk.bf16.gmra.mxu2 %vm1070_vm2, %v6167_v20 }
 0x1ca   : > { %2657 = vmatpush.bf16.msra.mxu0 %v4147_v59  ;;  %2706 = vmatpush.bf16.msra.mxu1 %v4211_v56  ;;  %v4403_v59 = vld [vmem:[#allocation5 + $0x3e4] sm:$0xf0] }
 0x1cb   : > { %v1794_v21 = vpop.f32.mrf.mxu3 }
 0x1cc   : > { %v1795_v14 = vadd.f32 %v1794_v21, %v5241_v44  ;;  %v1489_v22 = vpop.f32.mrf.mxu2  ;;  %v1393_v15 = vpop.f32.mrf.mxu0 }
 0x1cd   : > { %v5383_v34 = vadd.f32 %v1489_v22, %v1441_v40  ;;  %v1394_v19 = vadd.f32 %v1393_v15, %v1344_v60  ;;  %v4074_v60 = vld [vmem:[#allocation5 + $0x360] sm:$0xf] }
 0x1ce   : > { %v1442_v57 = vpop.f32.mrf.mxu1  ;;  %v4075_v43 = vor.u32 %v4387_v62, %v4074_v60 }
 0x1cf   : > { %v1443_v5 = vadd.f32 %v1442_v57, %v1394_v19  ;;  %v4419_v19 = vld [vmem:[#allocation5 + $0x464] sm:$0xf0] }
 0x1d0   : > { %2609 = vmatpush.bf16.msra.mxu3 %v4075_v43  ;;  %v4385_v43 = vld [vmem:[#allocation5 + $0x354] sm:$0xf0] }
 0x1d3   : > { %v1796_v41 = vpop.f32.mrf.mxu3 }
 0x1d4   : > { %v1797_v47 = vadd.f32 %v1796_v41, %v5243_v12  ;;  %v1491_v63 = vpop.f32.mrf.mxu2  ;;  %v1843_v21 = vpop.f32.mrf.mxu0 }
 0x1d5   : > { %v5386_v44 = vadd.f32 %v1491_v63, %v1443_v5  ;;  %v1844_v20 = vadd.f32 %v1843_v21, %v1795_v14  ;;  %v4138_v14 = vld [vmem:[#allocation5 + $0x3e0] sm:$0xf] }
 0x1d6   : > { %v1892_v40 = vpop.f32.mrf.mxu1  ;;  %v4139_v61 = vor.u32 %v4403_v59, %v4138_v14  ;;  %v4401_v59 = vld [vmem:[#allocation5 + $0x3d4] sm:$0xf0] }
 0x1d7   : > { %v1893_v22 = vadd.f32 %v1892_v40, %v1844_v20  ;;  %2038 = vmatmul.bf16.vlgmr.msrb.gmra.mxu0 %v4886_v23  ;;  %v4202_v23 = vld [vmem:[#allocation5 + $0x460] sm:$0xf] }
 0x1d8   : > { %1994 = vmatmul.bf16.gmra.mxu3 %v4905_v48  ;;  %2658 = vmatpush.bf16.msra.mxu0 %v4139_v61 }
 0x1d9   : > { %2087 = vmatmul.bf16.vlgmr.msrb.gmra.mxu1 %v4902_v18  ;;  %4024 = vmatmul.msk.bf16.vlgmr.msrb.gmra.mxu2 %vm1070_vm2, %v4853_v42  ;;  %v4203_v18 = vor.u32 %v4419_v19, %v4202_v23  ;;  %v4194_v19 = vld [vmem:[#allocation5 + $0x450] sm:$0xf] }
 0x1db   : > { %v1799_v12 = vpop.f32.mrf.mxu3  ;;  %2707 = vmatpush.bf16.msra.mxu1 %v4203_v18 }
 0x1dc   : > { %v1800_v5 = vadd.f32 %v1799_v12, %v5250_v16  ;;  %v1941_v15 = vpop.f32.mrf.mxu2  ;;  %v1845_v20 = vpop.f32.mrf.mxu0 }
 0x1dd   : > { %v5394_v35 = vadd.f32 %v1941_v15, %v1893_v22  ;;  %v1846_v57 = vadd.f32 %v1845_v20, %v1797_v47  ;;  %v4066_v47 = vld [vmem:[#allocation5 + $0x350] sm:$0xf] }
 0x1de   : > { %v1894_v56 = vpop.f32.mrf.mxu1  ;;  %v4067_v12 = vor.u32 %v4385_v43, %v4066_v47 }
 0x1df   : > { %v1895_v41 = vadd.f32 %v1894_v56, %v1846_v57  ;;  %v4417_v57 = vld [vmem:[#allocation5 + $0x454] sm:$0xf0] }
 0x1e0   : > { %2610 = vmatpush.bf16.msra.mxu3 %v4067_v12  ;;  %v4383_v12 = vld [vmem:[#allocation5 + $0x344] sm:$0xf0] }
 0x1e3   : > { %v1801_v42 = vpop.f32.mrf.mxu3 }
 0x1e4   : > { %v1802_v63 = vadd.f32 %v1801_v42, %v5252_v29  ;;  %v1943_v21 = vpop.f32.mrf.mxu2  ;;  %v1848_v40 = vpop.f32.mrf.mxu0 }
 0x1e5   : > { %v5397_v16 = vadd.f32 %v1943_v21, %v1895_v41  ;;  %v1849_v60 = vadd.f32 %v1848_v40, %v1800_v5  ;;  %v4130_v5 = vld [vmem:[#allocation5 + $0x3d0] sm:$0xf]  ;;  %v4195_v41 = vor.u32 %v4417_v57, %v4194_v19  ;;  %v4186_v57 = vld [vmem:[#allocation5 + $0x440] sm:$0xf] }
 0x1e6   : > { %v1897_v22 = vpop.f32.mrf.mxu1  ;;  %v4131_v23 = vor.u32 %v4401_v59, %v4130_v5  ;;  %v4399_v59 = vld [vmem:[#allocation5 + $0x3c4] sm:$0xf0] }
 0x1e7   : > { %v1898_v62 = vadd.f32 %v1897_v22, %v1849_v60  ;;  %2043 = vmatmul.bf16.gmra.mxu0 %v4911_v55  ;;  %2708 = vmatpush.bf16.msra.mxu1 %v4195_v41 }
 0x1e8   : > { %1999 = vmatmul.bf16.gmra.mxu3 %v4967_v1  ;;  %2659 = vmatpush.bf16.msra.mxu0 %v4131_v23 }
 0x1e9   : > { %2092 = vmatmul.bf16.gmra.mxu1 %v4917_v2  ;;  %4025 = vmatmul.msk.bf16.gmra.mxu2 %vm1070_vm2, %v6132_v54 }
 0x1eb   : > { %v1804_v29 = vpop.f32.mrf.mxu3 }
 0x1ec   : > { %v1805_v15 = vadd.f32 %v1804_v29, %v5259_v9  ;;  %v1946_v14 = vpop.f32.mrf.mxu2  ;;  %v1850_v61 = vpop.f32.mrf.mxu0 }
 0x1ed   : > { %v5405_v20 = vadd.f32 %v1946_v14, %v1898_v62  ;;  %v1851_v56 = vadd.f32 %v1850_v61, %v1802_v63  ;;  %v4058_v63 = vld [vmem:[#allocation5 + $0x340] sm:$0xf] }
 0x1ee   : > { %v1899_v18 = vpop.f32.mrf.mxu1  ;;  %v4059_v29 = vor.u32 %v4383_v12, %v4058_v63 }
 0x1ef   : > { %v1900_v42 = vadd.f32 %v1899_v18, %v1851_v56  ;;  %v4415_v56 = vld [vmem:[#allocation5 + $0x444] sm:$0xf0] }
 0x1f0   : > { %2611 = vmatpush.bf16.msra.mxu3 %v4059_v29  ;;  %v4381_v29 = vld [vmem:[#allocation5 + $0x334] sm:$0xf0] }
 0x1f3   : > { %v1806_v21 = vpop.f32.mrf.mxu3 }
 0x1f4   : > { %v1807_v40 = vadd.f32 %v1806_v21, %v5261_v37  ;;  %v1948_v60 = vpop.f32.mrf.mxu2  ;;  %v1853_v22 = vpop.f32.mrf.mxu0 }
 0x1f5   : > { %v5408_v9 = vadd.f32 %v1948_v60, %v1900_v42  ;;  %v1854_v47 = vadd.f32 %v1853_v22, %v1805_v15  ;;  %v4122_v15 = vld [vmem:[#allocation5 + $0x3c0] sm:$0xf]  ;;  %v4187_v42 = vor.u32 %v4415_v56, %v4186_v57  ;;  %v4178_v56 = vld [vmem:[#allocation5 + $0x430] sm:$0xf] }
 0x1f6   : > { %v1902_v62 = vpop.f32.mrf.mxu1  ;;  %v4123_v19 = vor.u32 %v4399_v59, %v4122_v15  ;;  %v4397_v59 = vld [vmem:[#allocation5 + $0x3b4] sm:$0xf0] }
 0x1f7   : > { %v1903_v43 = vadd.f32 %v1902_v62, %v1854_v47  ;;  %2048 = vmatmul.bf16.gmra.mxu0 %v6136_v24  ;;  %2709 = vmatpush.bf16.msra.mxu1 %v4187_v42 }
 0x1f8   : > { %2004 = vmatmul.bf16.gmra.mxu3 %v6135_v53  ;;  %2660 = vmatpush.bf16.msra.mxu0 %v4123_v19 }
 0x1f9   : > { %2097 = vmatmul.bf16.gmra.mxu1 %v6137_v49  ;;  %4026 = vmatmul.msk.bf16.gmra.mxu2 %vm1070_vm2, %v6138_v10 }
 0x1fb   : > { %v1809_v37 = vpop.f32.mrf.mxu3 }
 0x1fc   : > { %v1810_v14 = vadd.f32 %v1809_v37, %v5268_v39  ;;  %v1951_v5 = vpop.f32.mrf.mxu2  ;;  %v1855_v23 = vpop.f32.mrf.mxu0 }
 0x1fd   : > { %v5416_v61 = vadd.f32 %v1951_v5, %v1903_v43  ;;  %v1856_v18 = vadd.f32 %v1855_v23, %v1807_v40  ;;  %v4050_v40 = vld [vmem:[#allocation5 + $0x330] sm:$0xf] }
 0x1fe   : > { %v1904_v41 = vpop.f32.mrf.mxu1  ;;  %v4051_v37 = vor.u32 %v4381_v29, %v4050_v40 }
 0x1ff   : > { %v1905_v21 = vadd.f32 %v1904_v41, %v1856_v18  ;;  %v4413_v18 = vld [vmem:[#allocation5 + $0x434] sm:$0xf0] }
 0x200   : > { %2612 = vmatpush.bf16.msra.mxu3 %v4051_v37  ;;  %v4379_v37 = vld [vmem:[#allocation5 + $0x324] sm:$0xf0] }
 0x203   : > { %v1811_v60 = vpop.f32.mrf.mxu3 }
 0x204   : > { %v1812_v22 = vadd.f32 %v1811_v60, %v5270_v17  ;;  %v1953_v47 = vpop.f32.mrf.mxu2  ;;  %v1858_v62 = vpop.f32.mrf.mxu0 }
 0x205   : > { %v5419_v39 = vadd.f32 %v1953_v47, %v1905_v21  ;;  %v1859_v63 = vadd.f32 %v1858_v62, %v1810_v14  ;;  %v4114_v14 = vld [vmem:[#allocation5 + $0x3b0] sm:$0xf]  ;;  %v4179_v21 = vor.u32 %v4413_v18, %v4178_v56  ;;  %v4170_v18 = vld [vmem:[#allocation5 + $0x420] sm:$0xf] }
 0x206   : > { %v1907_v43 = vpop.f32.mrf.mxu1  ;;  %v4115_v57 = vor.u32 %v4397_v59, %v4114_v14  ;;  %v4395_v59 = vld [vmem:[#allocation5 + $0x3a4] sm:$0xf0] }
 0x207   : > { %v1908_v12 = vadd.f32 %v1907_v43, %v1859_v63  ;;  %2053 = vmatmul.bf16.gmra.mxu0 %v6142_v51  ;;  %2710 = vmatpush.bf16.msra.mxu1 %v4179_v21 }
 0x208   : > { %2009 = vmatmul.bf16.gmra.mxu3 %v6141_v50  ;;  %2661 = vmatpush.bf16.msra.mxu0 %v4115_v57 }
 0x209   : > { %2102 = vmatmul.bf16.gmra.mxu1 %v6143_v27  ;;  %4027 = vmatmul.msk.bf16.gmra.mxu2 %vm1070_vm2, %v6144_v3 }
 0x20b   : > { %v1814_v17 = vpop.f32.mrf.mxu3 }
 0x20c   : > { %v1815_v5 = vadd.f32 %v1814_v17, %v5277_v11  ;;  %v1956_v15 = vpop.f32.mrf.mxu2  ;;  %v1860_v19 = vpop.f32.mrf.mxu0 }
 0x20d   : > { %v5427_v23 = vadd.f32 %v1956_v15, %v1908_v12  ;;  %v1861_v41 = vadd.f32 %v1860_v19, %v1812_v22  ;;  %v4042_v22 = vld [vmem:[#allocation5 + $0x320] sm:$0xf] }
 0x20e   : > { %v1909_v42 = vpop.f32.mrf.mxu1  ;;  %v4043_v17 = vor.u32 %v4379_v37, %v4042_v22  ;;  %v4034_v22 = vld [vmem:[#allocation5 + $0x310] sm:$0xf] }
 0x20f   : > { %v1910_v60 = vadd.f32 %v1909_v42, %v1861_v41  ;;  %v4411_v41 = vld [vmem:[#allocation5 + $0x424] sm:$0xf0] }
 0x210   : > { %2613 = vmatpush.bf16.msra.mxu3 %v4043_v17 }
 0x213   : > { %v1816_v47 = vpop.f32.mrf.mxu3 }
 0x214   : > { %v1817_v62 = vadd.f32 %v1816_v47, %v5279_v38  ;;  %v1958_v63 = vpop.f32.mrf.mxu2  ;;  %v1863_v43 = vpop.f32.mrf.mxu0 }
 0x215   : > { %v5430_v11 = vadd.f32 %v1958_v63, %v1910_v60  ;;  %v1864_v40 = vadd.f32 %v1863_v43, %v1815_v5  ;;  %v4106_v5 = vld [vmem:[#allocation5 + $0x3a0] sm:$0xf]  ;;  %v4171_v60 = vor.u32 %v4411_v41, %v4170_v18  ;;  %v4162_v41 = vld [vmem:[#allocation5 + $0x410] sm:$0xf] }
 0x216   : > { %v1912_v12 = vpop.f32.mrf.mxu1  ;;  %v4107_v56 = vor.u32 %v4395_v59, %v4106_v5  ;;  %v4098_v59 = vld [vmem:[#allocation5 + $0x390] sm:$0xf] }
 0x217   : > { %6168 = vst [vmem:[#allocation22_spill] sm:$0xff] %v5430_v11  ;;  %v1913_v29 = vadd.f32 %v1912_v12, %v1864_v40  ;;  %2058 = vmatmul.bf16.gmra.mxu0 %v6148_v0  ;;  %2711 = vmatpush.bf16.msra.mxu1 %v4171_v60 }
 0x218   : > { %2014 = vmatmul.bf16.gmra.mxu3 %v6147_v58  ;;  %2662 = vmatpush.bf16.msra.mxu0 %v4107_v56 }
 0x219   : > { %2107 = vmatmul.bf16.gmra.mxu1 %v6149_v45  ;;  %4028 = vmatmul.msk.bf16.gmra.mxu2 %vm1070_vm2, %v6150_v46 }
 0x21b   : > { %v1819_v38 = vpop.f32.mrf.mxu3 }
 0x21c   : > { %v1820_v15 = vadd.f32 %v1819_v38, %v5286_v25  ;;  %v1961_v14 = vpop.f32.mrf.mxu2  ;;  %v1865_v57 = vpop.f32.mrf.mxu0 }
 0x21d   : > { %v5438_v19 = vadd.f32 %v1961_v14, %v1913_v29  ;;  %v1866_v42 = vadd.f32 %v1865_v57, %v1817_v62  ;;  %v4377_v29 = vld [vmem:[#allocation5 + $0x314] sm:$0xf0] }
 0x21e   : > { %v1914_v21 = vpop.f32.mrf.mxu1  ;;  %v4035_v38 = vor.u32 %v4377_v29, %v4034_v22  ;;  %v4393_v57 = vld [vmem:[#allocation5 + $0x394] sm:$0xf0] }
 0x21f   : > { %6169 = vst [vmem:[#allocation35_spill] sm:$0xff] %v5438_v19  ;;  %v1915_v47 = vadd.f32 %v1914_v21, %v1866_v42  ;;  %v4099_v18 = vor.u32 %v4393_v57, %v4098_v59  ;;  %v4409_v42 = vld [vmem:[#allocation5 + $0x414] sm:$0xf0]  ;;  %v6173_v57 = vld [vmem:[#allocation44_spill] sm:$0xff] }
 0x220   : > { %2614 = vmatpush.bf16.msra.mxu3 %v4035_v38 }
 0x221   : > { %2663 = vmatpush.bf16.msra.mxu0 %v4099_v18 }
 0x223   : > { %v1821_v63 = vpop.f32.mrf.mxu3 }
 0x224   : > { %v1822_v43 = vadd.f32 %v1821_v63, %v5288_v36  ;;  %v1963_v40 = vpop.f32.mrf.mxu2  ;;  %v1868_v12 = vpop.f32.mrf.mxu0 }
 0x225   : > { %v5441_v25 = vadd.f32 %v1963_v40, %v1915_v47  ;;  %v1869_v37 = vadd.f32 %v1868_v12, %v1820_v15  ;;  %v4163_v47 = vor.u32 %v4409_v42, %v4162_v41  ;;  %v4406_v42 = vld [vmem:[#allocation5 + $0x404] sm:$0xf] }
 0x226   : > { %v1917_v17 = vpop.f32.mrf.mxu1 }
 0x227   : > { %6170 = vst [vmem:[#allocation32_spill] sm:$0xff] %v5441_v25  ;;  %v1918_v62 = vadd.f32 %v1917_v17, %v1869_v37  ;;  %2063 = vmatmul.bf16.gmra.mxu0 %v6154_v13  ;;  %2712 = vmatpush.bf16.msra.mxu1 %v4163_v47  ;;  %v4390_v37 = vld [vmem:[#allocation5 + $0x384] sm:$0xf]  ;;  %v4092_v17 = vld [vmem:[#allocation5 + $0x388] sm:$0xf0] }
 0x228   : > { %2019 = vmatmul.bf16.gmra.mxu3 %v6153_v7 }
 0x229   : > { %2112 = vmatmul.bf16.gmra.mxu1 %v6155_v28  ;;  %4029 = vmatmul.msk.bf16.gmra.mxu2 %vm1070_vm2, %v6156_v26 }
 0x22b   : > { %v1824_v36 = vpop.f32.mrf.mxu3 }
 0x22c   : > { %v1825_v14 = vadd.f32 %v1824_v36, %v5297_v8  ;;  %v1966_v5 = vpop.f32.mrf.mxu2  ;;  %v1870_v56 = vpop.f32.mrf.mxu0  ;;  %v2177_v36 = vld [vmem:[%s4825_s5] sm:$0xee] }
 0x22d   : > { %v5449_v15 = vadd.f32 %v1966_v5, %v1918_v62  ;;  %v1871_v21 = vadd.f32 %v1870_v56, %v1822_v43  ;;  %v4095_v5 = vor.u32 %v4390_v37, %v4092_v17  ;;  %v4422_v37 = vld [vmem:[#allocation5 + $0x484] sm:$0xf]  ;;  %v4220_v17 = vld [vmem:[#allocation5 + $0x488] sm:$0xf0] }
 0x22e   : > { %v1919_v60 = vpop.f32.mrf.mxu1 }
 0x22f   : > { %6171 = vst [vmem:[#allocation33_spill] sm:$0xff] %v5449_v15  ;;  %v1920_v63 = vadd.f32 %v1919_v60, %v1871_v21  ;;  %2803 = vmatpush.bf16.msrb.mxu3 %v4095_v5  ;;  %v4156_v21 = vld [vmem:[#allocation5 + $0x408] sm:$0xf0]  ;;  %v4420_v15 = vld [vmem:[#allocation5 + $0x474] sm:$0xf] }
 0x233   : > { %v1826_v40 = vpop.f32.mrf.mxu3 }
 0x234   : > { %v1827_v12 = vadd.f32 %v1826_v40, %v5299_v4  ;;  %v1968_v8 = vpop.f32.mrf.mxu2  ;;  %v1873_v29 = vpop.f32.mrf.mxu0  ;;  %v2231_v4 = vunpack.c.l.b16 %v2177_v36 }
 0x235   : > { %v5452_v22 = vadd.f32 %v1968_v8, %v1920_v63  ;;  %v1874_v38 = vadd.f32 %v1873_v29, %v1825_v14  ;;  %v6174_v14 = vld [vmem:[#allocation31_spill] sm:$0xff]  ;;  %v6176_v63 = vld [vmem:[#allocation17_spill] sm:$0xff]  ;;  %v4159_v29 = vor.u32 %v4406_v42, %v4156_v21 }
 0x236   : > { %v1922_v62 = vpop.f32.mrf.mxu1  ;;  %v2478_v41 = vunpack.c.h.b16 %v6174_v14  ;;  %v6177_v40 = vunpack.c.l.b16 %v6176_v63 }
 0x237   : > { %6172 = vst [vmem:[#allocation26_spill] sm:$0xff] %v5452_v22  ;;  %v1923_v43 = vadd.f32 %v1922_v62, %v1874_v38  ;;  %2068 = vmatmul.bf16.gmra.mxu0 %v6159_v33  ;;  %v4223_v22 = vor.u32 %v4422_v37, %v4220_v17 }
 0x238   : > { %2024 = vmatmul.bf16.gmra.mxu3 %v5175_v32  ;;  %v2235_v8 = vpack.c.b16 %v6177_v40, %v2231_v4  ;;  %v2528_v5 = vpack.c.b16 %v2478_v41, %v2478_v41  ;;  %2852 = vmatpush.bf16.msrb.mxu0 %v4159_v29  ;;  %v6178_v4 = vld [vmem:[#allocation45_spill] sm:$0xff]  ;;  %v4084_v29 = vld [vmem:[#allocation5 + $0x378] sm:$0xf0] }
 0x239   : > { %2117 = vmatmul.bf16.gmra.mxu1 %v6160_v31  ;;  %4030 = vmatmul.msk.bf16.gmra.mxu2 %vm1070_vm2, %v6161_v30 }
 0x23a   : > { %v2240_v14 = vrot.slane %v2235_v8, 1  ;;  %2901 = vmatpush.bf16.msrb.mxu1 %v4223_v22  ;;  %v2178_v8 = vld [vmem:[%s4825_s5 + $0x8] sm:$0xee]  ;;  %v6180_v22 = vld [vmem:[#allocation34_spill] sm:$0xff]  ;;  %s4582_s5 = scalar_lea.hbm %s6031_s2, 256 }
 0x23b   : > { %v1829_v59 = vpop.f32.mrf.mxu3  ;;  %p4584_p9 = scmp.lt.s32.totalorder %s4582_s5, %s4578_s12 }
 0x23c   : > { %v1830_v56 = vadd.f32 %v1829_v59, %v6173_v57  ;;  %v1971_v18 = vpop.f32.mrf.mxu2  ;;  %v1875_v47 = vpop.f32.mrf.mxu0  ;;  %v2605_v57 = vsel %vm1095_vm0, %v2528_v5, 0  ;;  %v2233_v5 = vunpack.c.l.b16 %v2178_v8 }
 0x23d   : > { %v5462_v60 = vadd.f32 %v1971_v18, %v1923_v43  ;;  %v1876_v38 = vadd.f32 %v1875_v47, %v1827_v12  ;;  %v2241_v43 = vrot.slane %v4905_v48, 1  ;;  %2957 = vmatpush.bf16.msrb.mxu2 %v2605_v57  ;;  %v4388_v47 = vld [vmem:[#allocation5 + $0x374] sm:$0xf]  ;;  %p4585_p2 = por %p4584_p9, %p4583_p11 }
 0x23e   : > { %v1924_v62 = vpop.f32.mrf.mxu1 }
 0x23f   : > { %6175 = vst [vmem:[#allocation36_spill] sm:$0xff] %v5462_v60  ;;  %v1925_v59 = vadd.f32 %v1924_v62, %v1876_v38  ;;  %v5472_v41 = vsel %vm2239_vm3, %v2240_v14, %v2241_v43  ;;  %v4087_v38 = vor.u32 %v4388_v47, %v4084_v29  ;;  %v2232_v62 = vunpack.c.h.b16 %v2177_v36  ;;  %v6181_v14 = vld [vmem:[#allocation46_spill] sm:$0xff]  ;;  %p4586_p10 = pnand %p4585_p2, %p4581_p8 }
 0x240   : > { %v6182_v29 = vunpack.c.h.b16 %v6176_v63  ;;  %v4212_v36 = vld [vmem:[#allocation5 + $0x478] sm:$0xf0]  ;;  %v2252_v63 = vrot.slane %v4967_v1, 1  ;;  %v4386_v1 = vld [vmem:[#allocation5 + $0x364] sm:$0xf] }
 0x241   : > { %2804 = vmatpush.bf16.msrb.mxu3 %v4087_v38 }
 0x243   : > { %v1831_v18 = vpop.f32.mrf.mxu3 }
 0x244   : > { %v1832_v42 = vadd.f32 %v1831_v18, %v6178_v4  ;;  %v1973_v21 = vpop.f32.mrf.mxu2  ;;  %v1878_v12 = vpop.f32.mrf.mxu0  ;;  %v4404_v4 = vld [vmem:[#allocation5 + $0x3f4] sm:$0xf] }
 0x245   : > { %v5469_v40 = vadd.f32 %v1973_v21, %v1925_v59  ;;  %v1879_v37 = vadd.f32 %v1878_v12, %v1830_v56  ;;  %v2234_v59 = vunpack.c.h.b16 %v2178_v8  ;;  %v4148_v21 = vld [vmem:[#allocation5 + $0x3f8] sm:$0xf0] }
 0x246   : > { %v1927_v17 = vpop.f32.mrf.mxu1 }
 0x247   : > { %6179 = vst [vmem:[#allocation37_spill] sm:$0xff] %v5469_v40  ;;  %v1928_v48 = vadd.f32 %v1927_v17, %v1879_v37  ;;  %2073 = vmatmul.bf16.gmra.mxu0 %v6165_v52  ;;  %v2236_v37 = vpack.c.b16 %v6182_v29, %v2232_v62  ;;  %v6183_v17 = vld [vmem:[#allocation15_spill] sm:$0xff] }
 0x248   : > { %2615 = vmatmul.bf16.vlgmr.msra.gmra.mxu3 %v5472_v41  ;;  %v6184_v40 = vunpack.c.l.b16 %v6183_v17  ;;  %v6185_v38 = vunpack.c.h.b16 %v6183_v17  ;;  %v6186_v29 = vld [vmem:[#allocation47_spill] sm:$0xff] }
 0x249   : > { %2122 = vmatmul.bf16.gmra.mxu1 %v6166_v6  ;;  %4031 = vmatmul.msk.bf16.gmra.mxu2 %vm1070_vm2, %v6180_v22 }
 0x24a   : > { %v2237_v60 = vpack.c.b16 %v6184_v40, %v2233_v5  ;;  %v2238_v19 = vpack.c.b16 %v6185_v38, %v2234_v59  ;;  %v2247_v40 = vrot.slane %v4917_v2, 1  ;;  %v4402_v38 = vld [vmem:[#allocation5 + $0x3e4] sm:$0xf] }
 0x24b   : > { %v1990_v57 = vpop.f32.mrf.mxu3 }
 0x24c   : > { %v1991_v56 = vadd.f32 %v1990_v57, %v6181_v14  ;;  %v1976_v18 = vpop.f32.mrf.mxu2  ;;  %v1880_v47 = vpop.f32.mrf.mxu0  ;;  %v4151_v57 = vor.u32 %v4404_v4, %v4148_v21  ;;  %v4215_v14 = vor.u32 %v4420_v15, %v4212_v36  ;;  %v2246_v62 = vrot.slane %v2237_v60, 1  ;;  %v4076_v60 = vld [vmem:[#allocation5 + $0x368] sm:$0xf0] }
 0x24d   : > { %v5481_v12 = vadd.f32 %v1976_v18, %v1928_v48  ;;  %v1881_v25 = vadd.f32 %v1880_v47, %v1832_v42  ;;  %v2243_v48 = vrot.slane %v2236_v37, 1  ;;  %v2244_v18 = vrot.slane %v4911_v55, 1 }
 0x24e   : > { %v1929_v8 = vpop.f32.mrf.mxu1  ;;  %2853 = vmatpush.bf16.msrb.mxu0 %v4151_v57  ;;  %2902 = vmatpush.bf16.msrb.mxu1 %v4215_v14  ;;  %v2249_v5 = vrot.slane %v2238_v19, 1  ;;  %v2250_v42 = vrot.slane %v6132_v54, 1  ;;  %v5500_v55 = vsel %vm2239_vm3, %v2241_v43, %v2252_v63  ;;  %v5503_v19 = vsel %vm2239_vm3, %v2246_v62, %v2247_v40  ;;  %v4140_v57 = vld [vmem:[#allocation5 + $0x3e8] sm:$0xf0]  ;;  %v4418_v62 = vld [vmem:[#allocation5 + $0x464] sm:$0xf] }
 0x24f   : > { %v1930_v11 = vadd.f32 %v1929_v8, %v1881_v25  ;;  %v5497_v15 = vsel %vm2239_vm3, %v2243_v48, %v2244_v18  ;;  %v4079_v37 = vor.u32 %v4386_v1, %v4076_v60  ;;  %v2254_v60 = vrot.slane %v6136_v24, 1  ;;  %v4384_v24 = vld [vmem:[#allocation5 + $0x354] sm:$0xf] }
 0x250   : > { %v5506_v54 = vsel %vm2239_vm3, %v2249_v5, %v2250_v42  ;;  %v4204_v5 = vld [vmem:[#allocation5 + $0x468] sm:$0xf0] }
 0x251   : > { %2805 = vmatpush.bf16.msrb.mxu3 %v4079_v37  ;;  %v2258_v37 = vrot.slane %v6138_v10, 1 }
 0x253   : > { %v1992_v47 = vpop.f32.mrf.mxu3  ;;  %v5533_v10 = vsel %vm2239_vm3, %v2250_v42, %v2258_v37 }
 0x254   : > { %v1993_v17 = vadd.f32 %v1992_v47, %v6186_v29  ;;  %v1978_v59 = vpop.f32.mrf.mxu2  ;;  %v2039_v25 = vpop.f32.mrf.mxu0 }
 0x255   : > { %v5494_v4 = vadd.f32 %v1978_v59, %v1930_v11  ;;  %v2040_v21 = vadd.f32 %v2039_v25, %v1991_v56  ;;  %v6187_v56 = vld [vmem:[#allocation16_spill] sm:$0xff]  ;;  %v4143_v59 = vor.u32 %v4402_v38, %v4140_v57  ;;  %v4207_v25 = vor.u32 %v4418_v62, %v4204_v5 }
 0x256   : > { %v2088_v2 = vpop.f32.mrf.mxu1  ;;  %v5524_v38 = vsel %vm2239_vm3, %v2244_v18, %v2254_v60 }
 0x257   : > { %v2089_v11 = vadd.f32 %v2088_v2, %v2040_v21  ;;  %2664 = vmatmul.bf16.vlgmr.msra.gmra.mxu0 %v5497_v15  ;;  %2903 = vmatpush.bf16.msrb.mxu1 %v4207_v25  ;;  %v2260_v21 = vrot.slane %v6135_v53, 1  ;;  %v2256_v2 = vrot.slane %v6137_v49, 1 }
 0x258   : > { %2620 = vmatmul.bf16.gmra.mxu3 %v5500_v55  ;;  %2854 = vmatpush.bf16.msrb.mxu0 %v4143_v59  ;;  %v4132_v59 = vld [vmem:[#allocation5 + $0x3d8] sm:$0xf0] }
 0x259   : > { %2713 = vmatmul.bf16.vlgmr.msra.gmra.mxu1 %v5503_v19  ;;  %4224 = vmatmul.msk.bf16.vlgmr.msra.gmra.mxu2 %vm1070_vm2, %v5506_v54  ;;  %v5527_v57 = vsel %vm2239_vm3, %v2252_v63, %v2260_v21  ;;  %v5530_v49 = vsel %vm2239_vm3, %v2247_v40, %v2256_v2  ;;  %v6191_v63 = vld [vmem:[#allocation23_spill] sm:$0xff] }
 0x25b   : > { %v1995_v43 = vpop.f32.mrf.mxu3 }
 0x25c   : > { %v1996_v36 = vadd.f32 %v1995_v43, %v6187_v56  ;;  %v2137_v8 = vpop.f32.mrf.mxu2  ;;  %v2041_v48 = vpop.f32.mrf.mxu0  ;;  %v6189_v43 = vld [vmem:[#allocation48_spill] sm:$0xff] }
 0x25d   : > { %v5514_v14 = vadd.f32 %v2137_v8, %v2089_v11  ;;  %v2042_v47 = vadd.f32 %v2041_v48, %v1993_v17  ;;  %v4068_v48 = vld [vmem:[#allocation5 + $0x358] sm:$0xf0] }
 0x25e   : > { %v2090_v29 = vpop.f32.mrf.mxu1  ;;  %v4071_v5 = vor.u32 %v4384_v24, %v4068_v48 }
 0x25f   : > { %6188 = vst [vmem:[#allocation30_spill] sm:$0xff] %v5514_v14  ;;  %v2091_v1 = vadd.f32 %v2090_v29, %v2042_v47  ;;  %v4400_v29 = vld [vmem:[#allocation5 + $0x3d4] sm:$0xf] }
 0x260   : > { %2806 = vmatpush.bf16.msrb.mxu3 %v4071_v5  ;;  %v2264_v5 = vrot.slane %v6143_v27, 1 }
 0x262   : > { %v5557_v27 = vsel %vm2239_vm3, %v2256_v2, %v2264_v5 }
 0x263   : > { %v1997_v11 = vpop.f32.mrf.mxu3 }
 0x264   : > { %v1998_v56 = vadd.f32 %v1997_v11, %v6189_v43  ;;  %v2139_v8 = vpop.f32.mrf.mxu2  ;;  %v2044_v17 = vpop.f32.mrf.mxu0  ;;  %v4196_v11 = vld [vmem:[#allocation5 + $0x458] sm:$0xf0] }
 0x265   : > { %v5521_v14 = vadd.f32 %v2139_v8, %v2091_v1  ;;  %v2045_v53 = vadd.f32 %v2044_v17, %v1996_v36  ;;  %v4416_v1 = vld [vmem:[#allocation5 + $0x454] sm:$0xf]  ;;  %v4135_v17 = vor.u32 %v4400_v29, %v4132_v59 }
 0x266   : > { %v2093_v62 = vpop.f32.mrf.mxu1  ;;  %v4199_v24 = vor.u32 %v4416_v1, %v4196_v11 }
 0x267   : > { %6190 = vst [vmem:[#allocation39_spill] sm:$0xff] %v5521_v14  ;;  %v2094_v47 = vadd.f32 %v2093_v62, %v2045_v53  ;;  %2669 = vmatmul.bf16.gmra.mxu0 %v5524_v38  ;;  %v2262_v53 = vrot.slane %v6142_v51, 1  ;;  %v2268_v62 = vrot.slane %v6141_v50, 1  ;;  %v4382_v51 = vld [vmem:[#allocation5 + $0x344] sm:$0xf] }
 0x268   : > { %2625 = vmatmul.bf16.gmra.mxu3 %v5527_v57  ;;  %2855 = vmatpush.bf16.msrb.mxu0 %v4135_v17 }
 0x269   : > { %2718 = vmatmul.bf16.gmra.mxu1 %v5530_v49  ;;  %4225 = vmatmul.msk.bf16.gmra.mxu2 %vm1070_vm2, %v5533_v10  ;;  %v5551_v29 = vsel %vm2239_vm3, %v2254_v60, %v2262_v53  ;;  %v5554_v59 = vsel %vm2239_vm3, %v2260_v21, %v2268_v62  ;;  %v6195_v21 = vld [vmem:[#allocation21_spill] sm:$0xff] }
 0x26a   : > { %2904 = vmatpush.bf16.msrb.mxu1 %v4199_v24  ;;  %v4414_v24 = vld [vmem:[#allocation5 + $0x444] sm:$0xf] }
 0x26b   : > { %v2000_v18 = vpop.f32.mrf.mxu3 }
 0x26c   : > { %v2001_v36 = vadd.f32 %v2000_v18, %v6191_v63  ;;  %v2142_v40 = vpop.f32.mrf.mxu2  ;;  %v2046_v25 = vpop.f32.mrf.mxu0  ;;  %v2266_v18 = vrot.slane %v6144_v3, 1  ;;  %v6193_v63 = vld [vmem:[#allocation20_spill] sm:$0xff] }
 0x26d   : > { %v5541_v42 = vadd.f32 %v2142_v40, %v2094_v47  ;;  %v2047_v43 = vadd.f32 %v2046_v25, %v1998_v56  ;;  %v4060_v25 = vld [vmem:[#allocation5 + $0x348] sm:$0xf0] }
 0x26e   : > { %v2095_v8 = vpop.f32.mrf.mxu1  ;;  %v5560_v3 = vsel %vm2239_vm3, %v2258_v37, %v2266_v18  ;;  %v4063_v11 = vor.u32 %v4382_v51, %v4060_v25 }
 0x26f   : > { %6192 = vst [vmem:[#allocation40_spill] sm:$0xff] %v5541_v42  ;;  %v2096_v48 = vadd.f32 %v2095_v8, %v2047_v43  ;;  %v4398_v43 = vld [vmem:[#allocation5 + $0x3c4] sm:$0xf]  ;;  %v4124_v8 = vld [vmem:[#allocation5 + $0x3c8] sm:$0xf0] }
 0x270   : > { %2807 = vmatpush.bf16.msrb.mxu3 %v4063_v11  ;;  %v2272_v11 = vrot.slane %v6149_v45, 1 }
 0x272   : > { %v5584_v45 = vsel %vm2239_vm3, %v2264_v5, %v2272_v11 }
 0x273   : > { %v2002_v47 = vpop.f32.mrf.mxu3 }
 0x274   : > { %v2003_v40 = vadd.f32 %v2002_v47, %v6193_v63  ;;  %v2144_v42 = vpop.f32.mrf.mxu2  ;;  %v2049_v56 = vpop.f32.mrf.mxu0 }
 0x275   : > { %v5548_v14 = vadd.f32 %v2144_v42, %v2096_v48  ;;  %v2050_v50 = vadd.f32 %v2049_v56, %v2001_v36  ;;  %v4188_v48 = vld [vmem:[#allocation5 + $0x448] sm:$0xf0]  ;;  %v4127_v56 = vor.u32 %v4398_v43, %v4124_v8 }
 0x276   : > { %v2098_v1 = vpop.f32.mrf.mxu1  ;;  %v4191_v51 = vor.u32 %v4414_v24, %v4188_v48 }
 0x277   : > { %6194 = vst [vmem:[#allocation44_spill] sm:$0xff] %v5548_v14  ;;  %v2099_v42 = vadd.f32 %v2098_v1, %v2050_v50  ;;  %2674 = vmatmul.bf16.gmra.mxu0 %v5551_v29  ;;  %v2270_v50 = vrot.slane %v6148_v0, 1  ;;  %v2276_v1 = vrot.slane %v6147_v58, 1  ;;  %v4380_v0 = vld [vmem:[#allocation5 + $0x334] sm:$0xf] }
 0x278   : > { %2630 = vmatmul.bf16.gmra.mxu3 %v5554_v59  ;;  %2856 = vmatpush.bf16.msrb.mxu0 %v4127_v56 }
 0x279   : > { %2723 = vmatmul.bf16.gmra.mxu1 %v5557_v27  ;;  %4226 = vmatmul.msk.bf16.gmra.mxu2 %vm1070_vm2, %v5560_v3  ;;  %v5578_v43 = vsel %vm2239_vm3, %v2262_v53, %v2270_v50  ;;  %v5581_v8 = vsel %vm2239_vm3, %v2268_v62, %v2276_v1  ;;  %v6199_v62 = vld [vmem:[#allocation27_spill] sm:$0xff] }
 0x27a   : > { %2905 = vmatpush.bf16.msrb.mxu1 %v4191_v51  ;;  %v4412_v51 = vld [vmem:[#allocation5 + $0x434] sm:$0xf] }
 0x27b   : > { %v2005_v60 = vpop.f32.mrf.mxu3 }
 0x27c   : > { %v2006_v36 = vadd.f32 %v2005_v60, %v6195_v21  ;;  %v2147_v2 = vpop.f32.mrf.mxu2  ;;  %v2051_v17 = vpop.f32.mrf.mxu0  ;;  %v2274_v60 = vrot.slane %v6150_v46, 1  ;;  %v6197_v21 = vld [vmem:[#allocation18_spill] sm:$0xff] }
 0x27d   : > { %v5568_v37 = vadd.f32 %v2147_v2, %v2099_v42  ;;  %v2052_v47 = vadd.f32 %v2051_v17, %v2003_v40  ;;  %v4052_v17 = vld [vmem:[#allocation5 + $0x338] sm:$0xf0] }
 0x27e   : > { %v2100_v63 = vpop.f32.mrf.mxu1  ;;  %v5587_v46 = vsel %vm2239_vm3, %v2266_v18, %v2274_v60  ;;  %v4055_v48 = vor.u32 %v4380_v0, %v4052_v17 }
 0x27f   : > { %6196 = vst [vmem:[#allocation31_spill] sm:$0xff] %v5568_v37  ;;  %v2101_v25 = vadd.f32 %v2100_v63, %v2052_v47  ;;  %v4396_v47 = vld [vmem:[#allocation5 + $0x3b4] sm:$0xf]  ;;  %v4116_v63 = vld [vmem:[#allocation5 + $0x3b8] sm:$0xf0] }
 0x280   : > { %2808 = vmatpush.bf16.msrb.mxu3 %v4055_v48  ;;  %v2280_v48 = vrot.slane %v6155_v28, 1 }
 0x282   : > { %v5611_v28 = vsel %vm2239_vm3, %v2272_v11, %v2280_v48 }
 0x283   : > { %v2007_v42 = vpop.f32.mrf.mxu3 }
 0x284   : > { %v2008_v2 = vadd.f32 %v2007_v42, %v6197_v21  ;;  %v2149_v37 = vpop.f32.mrf.mxu2  ;;  %v2054_v40 = vpop.f32.mrf.mxu0 }
 0x285   : > { %v5575_v14 = vadd.f32 %v2149_v37, %v2101_v25  ;;  %v2055_v58 = vadd.f32 %v2054_v40, %v2006_v36  ;;  %v4180_v25 = vld [vmem:[#allocation5 + $0x438] sm:$0xf0]  ;;  %v4119_v40 = vor.u32 %v4396_v47, %v4116_v63 }
 0x286   : > { %v2103_v24 = vpop.f32.mrf.mxu1  ;;  %v4183_v0 = vor.u32 %v4412_v51, %v4180_v25 }
 0x287   : > { %6198 = vst [vmem:[#allocation17_spill] sm:$0xff] %v5575_v14  ;;  %v2104_v37 = vadd.f32 %v2103_v24, %v2055_v58  ;;  %2679 = vmatmul.bf16.gmra.mxu0 %v5578_v43  ;;  %v2278_v58 = vrot.slane %v6154_v13, 1  ;;  %v2284_v24 = vrot.slane %v6153_v7, 1  ;;  %v4378_v13 = vld [vmem:[#allocation5 + $0x324] sm:$0xf] }
 0x288   : > { %2635 = vmatmul.bf16.gmra.mxu3 %v5581_v8  ;;  %2857 = vmatpush.bf16.msrb.mxu0 %v4119_v40 }
 0x289   : > { %2728 = vmatmul.bf16.gmra.mxu1 %v5584_v45  ;;  %4227 = vmatmul.msk.bf16.gmra.mxu2 %vm1070_vm2, %v5587_v46  ;;  %v5605_v47 = vsel %vm2239_vm3, %v2270_v50, %v2278_v58  ;;  %v5608_v63 = vsel %vm2239_vm3, %v2276_v1, %v2284_v24  ;;  %v6203_v1 = vld [vmem:[#allocation25_spill] sm:$0xff] }
 0x28a   : > { %2906 = vmatpush.bf16.msrb.mxu1 %v4183_v0  ;;  %v4410_v0 = vld [vmem:[#allocation5 + $0x424] sm:$0xf] }
 0x28b   : > { %v2010_v53 = vpop.f32.mrf.mxu3 }
 0x28c   : > { %v2011_v36 = vadd.f32 %v2010_v53, %v6199_v62  ;;  %v2152_v5 = vpop.f32.mrf.mxu2  ;;  %v2056_v56 = vpop.f32.mrf.mxu0  ;;  %v2282_v53 = vrot.slane %v6156_v26, 1  ;;  %v6201_v62 = vld [vmem:[#allocation24_spill] sm:$0xff] }
 0x28d   : > { %v5595_v18 = vadd.f32 %v2152_v5, %v2104_v37  ;;  %v2057_v42 = vadd.f32 %v2056_v56, %v2008_v2  ;;  %v4044_v56 = vld [vmem:[#allocation5 + $0x328] sm:$0xf0] }
 0x28e   : > { %v2105_v21 = vpop.f32.mrf.mxu1  ;;  %v5614_v26 = vsel %vm2239_vm3, %v2274_v60, %v2282_v53  ;;  %v4047_v25 = vor.u32 %v4378_v13, %v4044_v56 }
 0x28f   : > { %6200 = vst [vmem:[#allocation45_spill] sm:$0xff] %v5595_v18  ;;  %v2106_v17 = vadd.f32 %v2105_v21, %v2057_v42  ;;  %v4394_v42 = vld [vmem:[#allocation5 + $0x3a4] sm:$0xf]  ;;  %v4108_v21 = vld [vmem:[#allocation5 + $0x3a8] sm:$0xf0] }
 0x290   : > { %2809 = vmatpush.bf16.msrb.mxu3 %v4047_v25  ;;  %v2288_v25 = vrot.slane %v6160_v31, 1 }
 0x292   : > { %v5638_v31 = vsel %vm2239_vm3, %v2280_v48, %v2288_v25 }
 0x293   : > { %v2012_v37 = vpop.f32.mrf.mxu3 }
 0x294   : > { %v2013_v5 = vadd.f32 %v2012_v37, %v6201_v62  ;;  %v2154_v18 = vpop.f32.mrf.mxu2  ;;  %v2059_v2 = vpop.f32.mrf.mxu0 }
 0x295   : > { %v5602_v14 = vadd.f32 %v2154_v18, %v2106_v17  ;;  %v2060_v7 = vadd.f32 %v2059_v2, %v2011_v36  ;;  %v4172_v17 = vld [vmem:[#allocation5 + $0x428] sm:$0xf0]  ;;  %v4111_v2 = vor.u32 %v4394_v42, %v4108_v21 }
 0x296   : > { %v2108_v51 = vpop.f32.mrf.mxu1  ;;  %v4175_v13 = vor.u32 %v4410_v0, %v4172_v17 }
 0x297   : > { %6202 = vst [vmem:[#allocation34_spill] sm:$0xff] %v5602_v14  ;;  %v2109_v18 = vadd.f32 %v2108_v51, %v2060_v7  ;;  %2684 = vmatmul.bf16.gmra.mxu0 %v5605_v47  ;;  %v2286_v7 = vrot.slane %v6159_v33, 1  ;;  %v2292_v51 = vrot.slane %v5175_v32, 1  ;;  %v4376_v33 = vld [vmem:[#allocation5 + $0x314] sm:$0xf] }
 0x298   : > { %2640 = vmatmul.bf16.gmra.mxu3 %v5608_v63  ;;  %2858 = vmatpush.bf16.msrb.mxu0 %v4111_v2 }
 0x299   : > { %2733 = vmatmul.bf16.gmra.mxu1 %v5611_v28  ;;  %4228 = vmatmul.msk.bf16.gmra.mxu2 %vm1070_vm2, %v5614_v26  ;;  %v5632_v42 = vsel %vm2239_vm3, %v2278_v58, %v2286_v7  ;;  %v5635_v21 = vsel %vm2239_vm3, %v2284_v24, %v2292_v51  ;;  %v4392_v58 = vld [vmem:[#allocation5 + $0x394] sm:$0xf]  ;;  %v4100_v24 = vld [vmem:[#allocation5 + $0x398] sm:$0xf0] }
 0x29a   : > { %2907 = vmatpush.bf16.msrb.mxu1 %v4175_v13 }
 0x29b   : > { %v2015_v50 = vpop.f32.mrf.mxu3 }
 0x29c   : > { %v2016_v36 = vadd.f32 %v2015_v50, %v6203_v1  ;;  %v2157_v11 = vpop.f32.mrf.mxu2  ;;  %v2061_v40 = vpop.f32.mrf.mxu0  ;;  %v2290_v50 = vrot.slane %v6161_v30, 1  ;;  %v6205_v1 = vld [vmem:[#allocation19_spill] sm:$0xff] }
 0x29d   : > { %v5622_v60 = vadd.f32 %v2157_v11, %v2109_v18  ;;  %v2062_v37 = vadd.f32 %v2061_v40, %v2013_v5  ;;  %v4036_v40 = vld [vmem:[#allocation5 + $0x318] sm:$0xf0] }
 0x29e   : > { %v2110_v62 = vpop.f32.mrf.mxu1  ;;  %v5641_v30 = vsel %vm2239_vm3, %v2282_v53, %v2290_v50  ;;  %v4039_v17 = vor.u32 %v4376_v33, %v4036_v40 }
 0x29f   : > { %6204 = vst [vmem:[#allocation46_spill] sm:$0xff] %v5622_v60  ;;  %v2111_v56 = vadd.f32 %v2110_v62, %v2062_v37  ;;  %v6206_v37 = vld [vmem:[#allocation28_spill] sm:$0xff] }
 0x2a0   : > { %2810 = vmatpush.bf16.msrb.mxu3 %v4039_v17 }
 0x2a3   : > { %v2017_v18 = vpop.f32.mrf.mxu3 }
 0x2a4   : > { %v2018_v11 = vadd.f32 %v2017_v18, %v6205_v1  ;;  %v2159_v60 = vpop.f32.mrf.mxu2  ;;  %v2064_v5 = vpop.f32.mrf.mxu0  ;;  %v4164_v18 = vld [vmem:[#allocation5 + $0x418] sm:$0xf0] }
 0x2a5   : > { %v5629_v14 = vadd.f32 %v2159_v60, %v2111_v56  ;;  %v2065_v32 = vadd.f32 %v2064_v5, %v2016_v36  ;;  %v4103_v36 = vor.u32 %v4392_v58, %v4100_v24  ;;  %v4408_v56 = vld [vmem:[#allocation5 + $0x414] sm:$0xf]  ;;  %v2296_v58 = vrot.slane %v6166_v6, 1 }
 0x2a6   : > { %v2113_v0 = vpop.f32.mrf.mxu1  ;;  %v4167_v33 = vor.u32 %v4408_v56, %v4164_v18  ;;  %v2298_v24 = vrot.slane %v6180_v22, 1 }
 0x2a7   : > { %v2114_v60 = vadd.f32 %v2113_v0, %v2065_v32  ;;  %2689 = vmatmul.bf16.gmra.mxu0 %v5632_v42  ;;  %v2294_v32 = vrot.slane %v6165_v52, 1  ;;  %v6208_v0 = vld [vmem:[#allocation41_spill] sm:$0xff]  ;;  %v5665_v18 = vsel %vm2239_vm3, %v2288_v25, %v2296_v58 }
 0x2a8   : > { %2645 = vmatmul.bf16.gmra.mxu3 %v5635_v21  ;;  %2859 = vmatpush.bf16.msrb.mxu0 %v4103_v36  ;;  %v2300_v17 = vrot.slane %v6208_v0, 1  ;;  %v6209_v36 = vld [vmem:[#allocation29_spill] sm:$0xff]  ;;  %v5668_v6 = vsel %vm2239_vm3, %v2290_v50, %v2298_v24  ;;  %v6212_v0 = vld [vmem:[#allocation43_spill] sm:$0xff] }
 0x2a9   : > { %2738 = vmatmul.bf16.gmra.mxu1 %v5638_v31  ;;  %4229 = vmatmul.msk.bf16.gmra.mxu2 %vm1070_vm2, %v5641_v30 }
 0x2aa   : > { %2908 = vmatpush.bf16.msrb.mxu1 %v4167_v33  ;;  %v6211_v33 = vld [vmem:[#allocation42_spill] sm:$0xff] }
 0x2ab   : > { %v2020_v48 = vpop.f32.mrf.mxu3 }
 0x2ac   : > { %v2021_v62 = vadd.f32 %v2020_v48, %v6206_v37  ;;  %v2162_v53 = vpop.f32.mrf.mxu2  ;;  %v2066_v13 = vpop.f32.mrf.mxu0 }
 0x2ad   : > { %v5649_v2 = vadd.f32 %v2162_v53, %v2114_v60  ;;  %v2067_v1 = vadd.f32 %v2066_v13, %v2018_v11  ;;  %v5659_v11 = vsel %vm2239_vm3, %v2286_v7, %v2294_v32  ;;  %v5662_v13 = vsel %vm2239_vm3, %v2292_v51, %v2300_v17 }
 0x2ae   : > { %v2115_v5 = vpop.f32.mrf.mxu1  ;;  %v2304_v17 = vrot.slane %v6212_v0, 1 }
 0x2af   : > { %6207 = vst [vmem:[#allocation15_spill] sm:$0xff] %v5649_v2  ;;  %v2116_v40 = vadd.f32 %v2115_v5, %v2067_v1 }
 0x2b3   : > { %v2022_v48 = vpop.f32.mrf.mxu3 }
 0x2b4   : > { %v2023_v60 = vadd.f32 %v2022_v48, %v6209_v36  ;;  %v2164_v37 = vpop.f32.mrf.mxu2  ;;  %v2069_v2 = vpop.f32.mrf.mxu0  ;;  %v6213_v48 = vld [vmem:[#allocation38_spill] sm:$0xff] }
 0x2b5   : > { %v5656_v53 = vadd.f32 %v2164_v37, %v2116_v40  ;;  %v2070_v52 = vadd.f32 %v2069_v2, %v2021_v62  ;;  %v2302_v40 = vrot.slane %v6211_v33, 1  ;;  %v2306_v36 = vrot.slane %v6213_v48, 1 }
 0x2b6   : > { %v2118_v56 = vpop.f32.mrf.mxu1 }
 0x2b7   : > { %6210 = vst [vmem:[#allocation47_spill] sm:$0xff] %v5656_v53  ;;  %v2119_v22 = vadd.f32 %v2118_v56, %v2070_v52  ;;  %2694 = vmatmul.bf16.gmra.mxu0 %v5659_v11 }
 0x2b8   : > { %2650 = vmatmul.bf16.gmra.mxu3 %v5662_v13 }
 0x2b9   : > { %2743 = vmatmul.bf16.gmra.mxu1 %v5665_v18  ;;  %4230 = vmatmul.msk.bf16.gmra.mxu2 %vm1070_vm2, %v5668_v6 }
 0x2bb   : > { %v2025_v7 = vpop.f32.mrf.mxu3 }
 0x2bc   : > { %v2026_v51 = vadd.f32 %v2025_v7, %v5383_v34  ;;  %v2167_v62 = vpop.f32.mrf.mxu2  ;;  %v2071_v25 = vpop.f32.mrf.mxu0 }
 0x2bd   : > { %v5676_v2 = vadd.f32 %v2167_v62, %v2119_v22  ;;  %v2072_v1 = vadd.f32 %v2071_v25, %v2023_v60  ;;  %v5685_v22 = vsel %vm2239_vm3, %v2294_v32, %v2302_v40  ;;  %v5688_v62 = vsel %vm2239_vm3, %v2296_v58, %v2304_v17 }
 0x2be   : > { %v2120_v50 = vpop.f32.mrf.mxu1  ;;  %v5691_v25 = vsel %vm2239_vm3, %v2298_v24, %v2306_v36 }
 0x2bf   : > { %v2121_v5 = vadd.f32 %v2120_v50, %v2072_v1 }
 0x2c3   : > { %v2027_v37 = vpop.f32.mrf.mxu3 }
 0x2c4   : > { %v2028_v52 = vadd.f32 %v2027_v37, %v5386_v44  ;;  %v2169_v56 = vpop.f32.mrf.mxu2  ;;  %v2074_v34 = vpop.f32.mrf.mxu0 }
 0x2c5   : > { %v5682_v53 = vadd.f32 %v2169_v56, %v2121_v5  ;;  %v2075_v7 = vadd.f32 %v2074_v34, %v2026_v51 }
 0x2c6   : > { %v2123_v60 = vpop.f32.mrf.mxu1 }
 0x2c7   : > { %v2124_v1 = vadd.f32 %v2123_v60, %v2075_v7  ;;  %2699 = vmatmul.bf16.gmra.mxu0 %v5685_v22 }
 0x2c8   : > { %2811 = vmatmul.bf16.vlgmr.msrb.gmra.mxu3 %v5472_v41 }
 0x2c9   : > { %2748 = vmatmul.bf16.gmra.mxu1 %v5688_v62  ;;  %4231 = vmatmul.msk.bf16.gmra.mxu2 %vm1070_vm2, %v5691_v25 }
 0x2cb   : > { %v2616_v44 = vpop.f32.mrf.mxu3 }
 0x2cc   : > { %v2172_v32 = vpop.f32.mrf.mxu2  ;;  %v2076_v50 = vpop.f32.mrf.mxu0 }
 0x2cd   : > { %v5698_v51 = vadd.f32 %v2172_v32, %v2124_v1  ;;  %v2077_v58 = vadd.f32 %v2076_v50, %v2028_v52 }
 0x2ce   : > { %v2125_v5 = vpop.f32.mrf.mxu1 }
 0x2cf   : > { %v2126_v33 = vadd.f32 %v2125_v5, %v2077_v58 }
 0x2d3   : > { %v2618_v24 = vpop.f32.mrf.mxu3 }
 0x2d4   : > { %v2174_v40 = vpop.f32.mrf.mxu2  ;;  %v2665_v17 = vpop.f32.mrf.mxu0 }
 0x2d5   : > { %v5700_v0 = vadd.f32 %v2174_v40, %v2126_v33  ;;  %v2666_v48 = vadd.f32 %v2665_v17, %v2616_v44 }
 0x2d6   : > { %v2714_v41 = vpop.f32.mrf.mxu1 }
 0x2d7   : > { %v2715_v36 = vadd.f32 %v2714_v41, %v2666_v48  ;;  %2860 = vmatmul.bf16.vlgmr.msrb.gmra.mxu0 %v5497_v15 }
 0x2d8   : > { %2816 = vmatmul.bf16.gmra.mxu3 %v5500_v55 }
 0x2d9   : > { %2909 = vmatmul.bf16.vlgmr.msrb.gmra.mxu1 %v5503_v19  ;;  %4232 = vmatmul.msk.bf16.vlgmr.msrb.gmra.mxu2 %vm1070_vm2, %v5506_v54 }
 0x2db   : > { %v2621_v37 = vpop.f32.mrf.mxu3 }
 0x2dc   : > { %v2763_v52 = vpop.f32.mrf.mxu2  ;;  %v2667_v34 = vpop.f32.mrf.mxu0 }
 0x2dd   : > { %v2764_v56 = vadd.f32 %v2763_v52, %v2715_v36  ;;  %v2668_v7 = vadd.f32 %v2667_v34, %v2618_v24 }
 0x2de   : > { %v2716_v60 = vpop.f32.mrf.mxu1 }
 0x2df   : > { %v5708_v1 = vadd.f32 %v2764_v56, %v5394_v35  ;;  %v2717_v44 = vadd.f32 %v2716_v60, %v2668_v7 }
 0x2e1   : > { %v3084_v33 = vmul.f32 %v5708_v1, %v5708_v1  ;;  %vm3164_vm4 = vcmp.ge.f32.partialorder %v5708_v1, 0.0 }
 0x2e3   : > { %v2623_v32 = vpop.f32.mrf.mxu3 }
 0x2e4   : > { %v2765_v50 = vpop.f32.mrf.mxu2  ;;  %v2670_v58 = vpop.f32.mrf.mxu0 }
 0x2e5   : > { %v2766_v15 = vadd.f32 %v2765_v50, %v2717_v44  ;;  %v2671_v55 = vadd.f32 %v2670_v58, %v2621_v37 }
 0x2e6   : > { %v2719_v5 = vpop.f32.mrf.mxu1 }
 0x2e7   : > { %v5711_v19 = vadd.f32 %v2766_v15, %v5397_v16  ;;  %v2720_v54 = vadd.f32 %v2719_v5, %v2671_v55  ;;  %2865 = vmatmul.bf16.gmra.mxu0 %v5524_v38 }
 0x2e8   : > { %2821 = vmatmul.bf16.gmra.mxu3 %v5527_v57 }
 0x2e9   : > { %v3031_v35 = vadd.f32 %v5711_v19, %v5708_v1  ;;  %v3086_v24 = vmul.f32 %v5711_v19, %v5711_v19  ;;  %2914 = vmatmul.bf16.gmra.mxu1 %v5530_v49  ;;  %4233 = vmatmul.msk.bf16.gmra.mxu2 %vm1070_vm2, %v5533_v10  ;;  %vm3166_vm6 = vcmp.ge.f32.partialorder %v5711_v19, 0.0 }
 0x2eb   : > { %v3116_v16 = vadd.f32 %v3086_v24, %v3084_v33  ;;  %v2626_v40 = vpop.f32.mrf.mxu3 }
 0x2ec   : > { %v2768_v17 = vpop.f32.mrf.mxu2  ;;  %v2672_v48 = vpop.f32.mrf.mxu0 }
 0x2ed   : > { %v2769_v38 = vadd.f32 %v2768_v17, %v2720_v54  ;;  %v2673_v57 = vadd.f32 %v2672_v48, %v2623_v32 }
 0x2ee   : > { %v2721_v41 = vpop.f32.mrf.mxu1 }
 0x2ef   : > { %v5725_v36 = vadd.f32 %v2769_v38, %v5405_v20  ;;  %v2722_v37 = vadd.f32 %v2721_v41, %v2673_v57 }
 0x2f1   : > { %v3032_v52 = vadd.f32 %v3031_v35, %v5725_v36  ;;  %v3088_v56 = vmul.f32 %v5725_v36, %v5725_v36  ;;  %vm3168_vm8 = vcmp.ge.f32.partialorder %v5725_v36, 0.0 }
 0x2f3   : > { %v3117_v49 = vadd.f32 %v3116_v16, %v3088_v56  ;;  %v2628_v34 = vpop.f32.mrf.mxu3 }
 0x2f4   : > { %v2770_v7 = vpop.f32.mrf.mxu2  ;;  %v2675_v60 = vpop.f32.mrf.mxu0 }
 0x2f5   : > { %v2771_v10 = vadd.f32 %v2770_v7, %v2722_v37  ;;  %v2676_v44 = vadd.f32 %v2675_v60, %v2626_v40 }
 0x2f6   : > { %v2724_v50 = vpop.f32.mrf.mxu1 }
 0x2f7   : > { %v5731_v15 = vadd.f32 %v2771_v10, %v5408_v9  ;;  %v2725_v32 = vadd.f32 %v2724_v50, %v2676_v44  ;;  %2870 = vmatmul.bf16.gmra.mxu0 %v5551_v29 }
 0x2f8   : > { %2826 = vmatmul.bf16.gmra.mxu3 %v5554_v59 }
 0x2f9   : > { %v3033_v20 = vadd.f32 %v3032_v52, %v5731_v15  ;;  %v3090_v58 = vmul.f32 %v5731_v15, %v5731_v15  ;;  %2919 = vmatmul.bf16.gmra.mxu1 %v5557_v27  ;;  %4234 = vmatmul.msk.bf16.gmra.mxu2 %vm1070_vm2, %v5560_v3  ;;  %vm3170_vm10 = vcmp.ge.f32.partialorder %v5731_v15, 0.0 }
 0x2fb   : > { %v3118_v55 = vadd.f32 %v3117_v49, %v3090_v58  ;;  %v2631_v5 = vpop.f32.mrf.mxu3 }
 0x2fc   : > { %v2773_v54 = vpop.f32.mrf.mxu2  ;;  %v2677_v33 = vpop.f32.mrf.mxu0 }
 0x2fd   : > { %v2774_v9 = vadd.f32 %v2773_v54, %v2725_v32  ;;  %v2678_v35 = vadd.f32 %v2677_v33, %v2628_v34 }
 0x2fe   : > { %v2726_v24 = vpop.f32.mrf.mxu1 }
 0x2ff   : > { %v5742_v29 = vadd.f32 %v2774_v9, %v5416_v61  ;;  %v2727_v59 = vadd.f32 %v2726_v24, %v2678_v35  ;;  %v6214_v9 = vld [vmem:[#allocation22_spill] sm:$0xff] }
 0x301   : > { %v3034_v16 = vadd.f32 %v3033_v20, %v5742_v29  ;;  %v3092_v40 = vmul.f32 %v5742_v29, %v5742_v29  ;;  %vm3172_vm12 = vcmp.ge.f32.partialorder %v5742_v29, 0.0 }
 0x303   : > { %v3119_v27 = vadd.f32 %v3118_v55, %v3092_v40  ;;  %v2633_v17 = vpop.f32.mrf.mxu3 }
 0x304   : > { %v2775_v38 = vpop.f32.mrf.mxu2  ;;  %v2680_v48 = vpop.f32.mrf.mxu0 }
 0x305   : > { %v2776_v3 = vadd.f32 %v2775_v38, %v2727_v59  ;;  %v2681_v57 = vadd.f32 %v2680_v48, %v2631_v5 }
 0x306   : > { %v2729_v41 = vpop.f32.mrf.mxu1 }
 0x307   : > { %v5748_v37 = vadd.f32 %v2776_v3, %v5419_v39  ;;  %v2730_v52 = vadd.f32 %v2729_v41, %v2681_v57  ;;  %2875 = vmatmul.bf16.gmra.mxu0 %v5578_v43 }
 0x308   : > { %2831 = vmatmul.bf16.gmra.mxu3 %v5581_v8 }
 0x309   : > { %v3035_v61 = vadd.f32 %v3034_v16, %v5748_v37  ;;  %v3094_v56 = vmul.f32 %v5748_v37, %v5748_v37  ;;  %2924 = vmatmul.bf16.gmra.mxu1 %v5584_v45  ;;  %4235 = vmatmul.msk.bf16.gmra.mxu2 %vm1070_vm2, %v5587_v46  ;;  %vm3174_vm14 = vcmp.ge.f32.partialorder %v5748_v37, 0.0 }
 0x30b   : > { %v3120_v49 = vadd.f32 %v3119_v27, %v3094_v56  ;;  %v2636_v34 = vpop.f32.mrf.mxu3 }
 0x30c   : > { %v2778_v7 = vpop.f32.mrf.mxu2  ;;  %v2682_v10 = vpop.f32.mrf.mxu0 }
 0x30d   : > { %v2779_v39 = vadd.f32 %v2778_v7, %v2730_v52  ;;  %v2683_v60 = vadd.f32 %v2682_v10, %v2633_v17  ;;  %v6216_v7 = vld [vmem:[#allocation32_spill] sm:$0xff] }
 0x30e   : > { %v2731_v44 = vpop.f32.mrf.mxu1 }
 0x30f   : > { %v5759_v43 = vadd.f32 %v2779_v39, %v5427_v23  ;;  %v2732_v8 = vadd.f32 %v2731_v44, %v2683_v60 }
 0x311   : > { %v3036_v50 = vadd.f32 %v3035_v61, %v5759_v43  ;;  %v3096_v32 = vmul.f32 %v5759_v43, %v5759_v43  ;;  %vm3176_vm0 = vcmp.ge.f32.partialorder %v5759_v43, 0.0 }
 0x313   : > { %v3121_v45 = vadd.f32 %v3120_v49, %v3096_v32  ;;  %v2638_v20 = vpop.f32.mrf.mxu3 }
 0x314   : > { %v2780_v58 = vpop.f32.mrf.mxu2  ;;  %v2685_v55 = vpop.f32.mrf.mxu0 }
 0x315   : > { %v2781_v46 = vadd.f32 %v2780_v58, %v2732_v8  ;;  %v2686_v5 = vadd.f32 %v2685_v55, %v2636_v34 }
 0x316   : > { %v2734_v54 = vpop.f32.mrf.mxu1 }
 0x317   : > { %v5765_v33 = vadd.f32 %v2781_v46, %v6214_v9  ;;  %v2735_v35 = vadd.f32 %v2734_v54, %v2686_v5  ;;  %2880 = vmatmul.bf16.gmra.mxu0 %v5605_v47  ;;  %v6215_v47 = vld [vmem:[#allocation35_spill] sm:$0xff] }
 0x318   : > { %2836 = vmatmul.bf16.gmra.mxu3 %v5608_v63 }
 0x319   : > { %v3037_v23 = vadd.f32 %v3036_v50, %v5765_v33  ;;  %v3098_v24 = vmul.f32 %v5765_v33, %v5765_v33  ;;  %2929 = vmatmul.bf16.gmra.mxu1 %v5611_v28  ;;  %4236 = vmatmul.msk.bf16.gmra.mxu2 %vm1070_vm2, %v5614_v26 }
 0x31b   : > { %v3122_v59 = vadd.f32 %v3121_v45, %v3098_v24  ;;  %v2641_v16 = vpop.f32.mrf.mxu3 }
 0x31c   : > { %v2783_v40 = vpop.f32.mrf.mxu2  ;;  %v2687_v17 = vpop.f32.mrf.mxu0 }
 0x31d   : > { %v2784_v27 = vadd.f32 %v2783_v40, %v2735_v35  ;;  %v2688_v38 = vadd.f32 %v2687_v17, %v2638_v20 }
 0x31e   : > { %v2736_v3 = vpop.f32.mrf.mxu1 }
 0x31f   : > { %v5776_v48 = vadd.f32 %v2784_v27, %v6215_v47  ;;  %v2737_v63 = vadd.f32 %v2736_v3, %v2688_v38 }
 0x321   : > { %v3038_v57 = vadd.f32 %v3037_v23, %v5776_v48  ;;  %v3100_v41 = vmul.f32 %v5776_v48, %v5776_v48 }
 0x323   : > { %v3123_v28 = vadd.f32 %v3122_v59, %v3100_v41  ;;  %v2643_v52 = vpop.f32.mrf.mxu3 }
 0x324   : > { %v2785_v61 = vpop.f32.mrf.mxu2  ;;  %v2690_v56 = vpop.f32.mrf.mxu0 }
 0x325   : > { %v2786_v26 = vadd.f32 %v2785_v61, %v2737_v63  ;;  %v2691_v49 = vadd.f32 %v2690_v56, %v2641_v16  ;;  %v6218_v16 = vld [vmem:[#allocation26_spill] sm:$0xff] }
 0x326   : > { %v2739_v34 = vpop.f32.mrf.mxu1 }
 0x327   : > { %v5782_v39 = vadd.f32 %v2786_v26, %v6216_v7  ;;  %v2740_v10 = vadd.f32 %v2739_v34, %v2691_v49  ;;  %2885 = vmatmul.bf16.gmra.mxu0 %v5632_v42  ;;  %v6217_v42 = vld [vmem:[#allocation33_spill] sm:$0xff] }
 0x328   : > { %2841 = vmatmul.bf16.gmra.mxu3 %v5635_v21 }
 0x329   : > { %v3039_v60 = vadd.f32 %v3038_v57, %v5782_v39  ;;  %v3102_v44 = vmul.f32 %v5782_v39, %v5782_v39  ;;  %2934 = vmatmul.bf16.gmra.mxu1 %v5638_v31  ;;  %4237 = vmatmul.msk.bf16.gmra.mxu2 %vm1070_vm2, %v5641_v30 }
 0x32b   : > { %v3124_v8 = vadd.f32 %v3123_v28, %v3102_v44  ;;  %v2646_v50 = vpop.f32.mrf.mxu3  ;;  %v6220_v44 = vld [vmem:[#allocation37_spill] sm:$0xff] }
 0x32c   : > { %v2788_v32 = vpop.f32.mrf.mxu2  ;;  %v2692_v20 = vpop.f32.mrf.mxu0 }
 0x32d   : > { %v2789_v45 = vadd.f32 %v2788_v32, %v2740_v10  ;;  %v2693_v58 = vadd.f32 %v2692_v20, %v2643_v52 }
 0x32e   : > { %v2741_v46 = vpop.f32.mrf.mxu1 }
 0x32f   : > { %v5793_v55 = vadd.f32 %v2789_v45, %v6217_v42  ;;  %v2742_v21 = vadd.f32 %v2741_v46, %v2693_v58 }
 0x331   : > { %v3040_v5 = vadd.f32 %v3039_v60, %v5793_v55  ;;  %v3104_v54 = vmul.f32 %v5793_v55, %v5793_v55 }
 0x333   : > { %v3125_v31 = vadd.f32 %v3124_v8, %v3104_v54  ;;  %v2648_v9 = vpop.f32.mrf.mxu3 }
 0x334   : > { %v2790_v35 = vpop.f32.mrf.mxu2  ;;  %v2695_v23 = vpop.f32.mrf.mxu0 }
 0x335   : > { %v2791_v30 = vadd.f32 %v2790_v35, %v2742_v21  ;;  %v2696_v24 = vadd.f32 %v2695_v23, %v2646_v50 }
 0x336   : > { %v2744_v59 = vpop.f32.mrf.mxu1 }
 0x337   : > { %v5799_v40 = vadd.f32 %v2791_v30, %v6218_v16  ;;  %v2745_v27 = vadd.f32 %v2744_v59, %v2696_v24  ;;  %2890 = vmatmul.bf16.gmra.mxu0 %v5659_v11  ;;  %v6219_v11 = vld [vmem:[#allocation36_spill] sm:$0xff] }
 0x338   : > { %2846 = vmatmul.bf16.gmra.mxu3 %v5662_v13 }
 0x339   : > { %v3041_v17 = vadd.f32 %v3040_v5, %v5799_v40  ;;  %v3106_v38 = vmul.f32 %v5799_v40, %v5799_v40  ;;  %2939 = vmatmul.bf16.gmra.mxu1 %v5665_v18  ;;  %4238 = vmatmul.msk.bf16.gmra.mxu2 %vm1070_vm2, %v5668_v6 }
 0x33b   : > { %v3126_v3 = vadd.f32 %v3125_v31, %v3106_v38  ;;  %v2651_v47 = vpop.f32.mrf.mxu3 }
 0x33c   : > { %v2793_v63 = vpop.f32.mrf.mxu2  ;;  %v2697_v41 = vpop.f32.mrf.mxu0 }
 0x33d   : > { %v2794_v57 = vadd.f32 %v2793_v63, %v2745_v27  ;;  %v2698_v28 = vadd.f32 %v2697_v41, %v2648_v9 }
 0x33e   : > { %v2746_v52 = vpop.f32.mrf.mxu1 }
 0x33f   : > { %v5810_v61 = vadd.f32 %v2794_v57, %v6219_v11  ;;  %v2747_v13 = vadd.f32 %v2746_v52, %v2698_v28  ;;  %v3196_v52 = vmul.f32 0.2, %v5708_v1  ;;  %v6221_v11 = vld [vmem:[#allocation30_spill] sm:$0xff] }
 0x341   : > { %v3042_v26 = vadd.f32 %v3041_v17, %v5810_v61  ;;  %v3108_v56 = vmul.f32 %v5810_v61, %v5810_v61 }
 0x343   : > { %v3127_v18 = vadd.f32 %v3126_v3, %v3108_v56  ;;  %v2653_v49 = vpop.f32.mrf.mxu3  ;;  %v3228_v56 = vsel %vm3164_vm4, %v5708_v1, %v3196_v52  ;;  %vm3180_vm4 = vcmp.ge.f32.partialorder %v5776_v48, 0.0 }
 0x344   : > { %v2795_v34 = vpop.f32.mrf.mxu2  ;;  %v2700_v7 = vpop.f32.mrf.mxu0 }
 0x345   : > { %v2796_v6 = vadd.f32 %v2795_v34, %v2747_v13  ;;  %v2701_v10 = vadd.f32 %v2700_v7, %v2651_v47 }
 0x346   : > { %v2749_v60 = vpop.f32.mrf.mxu1 }
 0x347   : > { %v5816_v8 = vadd.f32 %v2796_v6, %v6220_v44  ;;  %v2750_v50 = vadd.f32 %v2749_v60, %v2701_v10  ;;  %2895 = vmatmul.bf16.gmra.mxu0 %v5685_v22 }
 0x349   : > { %v3043_v32 = vadd.f32 %v3042_v26, %v5816_v8  ;;  %v3110_v45 = vmul.f32 %v5816_v8, %v5816_v8  ;;  %2944 = vmatmul.bf16.gmra.mxu1 %v5688_v62  ;;  %4239 = vmatmul.msk.bf16.gmra.mxu2 %vm1070_vm2, %v5691_v25  ;;  %vm3178_vm2 = vcmp.ge.f32.partialorder %v5765_v33, 0.0 }
 0x34b   : > { %v3128_v20 = vadd.f32 %v3127_v18, %v3110_v45  ;;  %v2812_v58 = vpop.f32.mrf.mxu3  ;;  %v6222_v45 = vld [vmem:[#allocation39_spill] sm:$0xff] }
 0x34c   : > { %v2798_v46 = vpop.f32.mrf.mxu2  ;;  %v2702_v21 = vpop.f32.mrf.mxu0 }
 0x34d   : > { %v2799_v42 = vadd.f32 %v2798_v46, %v2750_v50  ;;  %v2703_v5 = vadd.f32 %v2702_v21, %v2653_v49 }
 0x34e   : > { %v2751_v54 = vpop.f32.mrf.mxu1 }
 0x34f   : > { %v5826_v31 = vadd.f32 %v2799_v42, %v5481_v12  ;;  %v2752_v22 = vadd.f32 %v2751_v54, %v2703_v5 }
 0x351   : > { %v3044_v9 = vadd.f32 %v3043_v32, %v5826_v31  ;;  %v3112_v35 = vmul.f32 %v5826_v31, %v5826_v31  ;;  %v3198_v32 = vmul.f32 0.2, %v5711_v19 }
 0x353   : > { %v3129_v62 = vadd.f32 %v3128_v20, %v3112_v35  ;;  %v2814_v30 = vpop.f32.mrf.mxu3  ;;  %v3230_v5 = vsel %vm3166_vm6, %v5711_v19, %v3198_v32  ;;  %vm3182_vm6 = vcmp.ge.f32.partialorder %v5782_v39, 0.0 }
 0x354   : > { %v2800_v23 = vpop.f32.mrf.mxu2  ;;  %v2861_v24 = vpop.f32.mrf.mxu0 }
 0x355   : > { %v2801_v25 = vadd.f32 %v2800_v23, %v2752_v22  ;;  %v2862_v59 = vadd.f32 %v2861_v24, %v2812_v58  ;;  %v3200_v24 = vmul.f32 0.2, %v5725_v36 }
 0x356   : > { %v2910_v16 = vpop.f32.mrf.mxu1 }
 0x357   : > { %v5832_v27 = vadd.f32 %v2801_v25, %v5494_v4  ;;  %v2911_v38 = vadd.f32 %v2910_v16, %v2862_v59  ;;  %v6223_v59 = vld [vmem:[#allocation40_spill] sm:$0xff] }
 0x359   : > { %v5835_v12 = vadd.f32 %v3044_v9, %v5832_v27  ;;  %v3114_v17 = vmul.f32 %v5832_v27, %v5832_v27 }
 0x35b   : > { %v5839_v3 = vadd.f32 %v3129_v62, %v3114_v17  ;;  %v2817_v47 = vpop.f32.mrf.mxu3 }
 0x35c   : > { %v2959_v63 = vpop.f32.mrf.mxu2  ;;  %v2863_v41 = vpop.f32.mrf.mxu0 }
 0x35d   : > { %v2960_v57 = vadd.f32 %v2959_v63, %v2911_v38  ;;  %v2864_v4 = vadd.f32 %v2863_v41, %v2814_v30  ;;  %v3232_v63 = vsel %vm3168_vm8, %v5725_v36, %v3200_v24  ;;  %vm3184_vm8 = vcmp.ge.f32.partialorder %v5793_v55, 0.0 }
 0x35e   : > { %v2912_v28 = vpop.f32.mrf.mxu1 }
 0x35f   : > { %v3000_v13 = vadd.f32 %v2960_v57, %v6221_v11  ;;  %v2913_v49 = vadd.f32 %v2912_v28, %v2864_v4 }
 0x361   : > { %vm3165_vm5 = vcmp.ge.f32.partialorder %v3000_v13, 0.0  ;;  %v3197_v26 = vmul.f32 0.2, %v3000_v13  ;;  %v3085_v1 = vmul.f32 %v3000_v13, %v3000_v13 }
 0x363   : > { %v3229_v18 = vsel %vm3165_vm5, %v3000_v13, %v3197_v26  ;;  %v2819_v34 = vpop.f32.mrf.mxu3 }
 0x364   : > { %v3260_v6 = vpack.c.bf16 %v3229_v18, %v3228_v56  ;;  %v2961_v7 = vpop.f32.mrf.mxu2  ;;  %v2866_v60 = vpop.f32.mrf.mxu0 }
 0x365   : > { %v2962_v10 = vadd.f32 %v2961_v7, %v2913_v49  ;;  %v2867_v44 = vadd.f32 %v2866_v60, %v2817_v47  ;;  %v3202_v49 = vmul.f32 0.2, %v5731_v15 }
 0x366   : > { %3276 = vst [vmem:[%s5846_s26] sm:$0xff] %v3260_v6  ;;  %v2915_v50 = vpop.f32.mrf.mxu1 }
 0x367   : > { %v3002_v20 = vadd.f32 %v2962_v10, %v6222_v45  ;;  %v2916_v58 = vadd.f32 %v2915_v50, %v2867_v44  ;;  %v3234_v44 = vsel %vm3170_vm10, %v5731_v15, %v3202_v49  ;;  %vm3186_vm10 = vcmp.ge.f32.partialorder %v5799_v40, 0.0 }
 0x369   : > { %v3052_v46 = vadd.f32 %v3002_v20, %v3000_v13  ;;  %v3087_v42 = vmul.f32 %v3002_v20, %v3002_v20  ;;  %vm3167_vm7 = vcmp.ge.f32.partialorder %v3002_v20, 0.0  ;;  %v3199_v21 = vmul.f32 0.2, %v3002_v20 }
 0x36b   : > { %v3137_v54 = vadd.f32 %v3087_v42, %v3085_v1  ;;  %v3231_v22 = vsel %vm3167_vm7, %v3002_v20, %v3199_v21  ;;  %v2822_v9 = vpop.f32.mrf.mxu3  ;;  %v3204_v21 = vmul.f32 0.2, %v5742_v29 }
 0x36c   : > { %v3261_v35 = vpack.c.bf16 %v3231_v22, %v3230_v5  ;;  %v2964_v62 = vpop.f32.mrf.mxu2  ;;  %v2868_v23 = vpop.f32.mrf.mxu0  ;;  %v6225_v5 = vld [vmem:[#allocation31_spill] sm:$0xff] }
 0x36d   : > { %v2965_v30 = vadd.f32 %v2964_v62, %v2916_v58  ;;  %v2869_v17 = vadd.f32 %v2868_v23, %v2819_v34  ;;  %v6224_v34 = vld [vmem:[#allocation44_spill] sm:$0xff]  ;;  %v3236_v62 = vsel %vm3172_vm12, %v5742_v29, %v3204_v21  ;;  %vm3188_vm12 = vcmp.ge.f32.partialorder %v5810_v61, 0.0 }
 0x36e   : > { %3277 = vst [vmem:[%s5846_s26 + $0x8] sm:$0xff] %v3261_v35  ;;  %v2917_v25 = vpop.f32.mrf.mxu1 }
 0x36f   : > { %v3004_v16 = vadd.f32 %v2965_v30, %v6223_v59  ;;  %v2918_v28 = vadd.f32 %v2917_v25, %v2869_v17 }
 0x371   : > { %v3053_v38 = vadd.f32 %v3052_v46, %v3004_v16  ;;  %v3089_v47 = vmul.f32 %v3004_v16, %v3004_v16  ;;  %vm3169_vm9 = vcmp.ge.f32.partialorder %v3004_v16, 0.0  ;;  %v3201_v19 = vmul.f32 0.2, %v3004_v16 }
 0x373   : > { %v3138_v57 = vadd.f32 %v3137_v54, %v3089_v47  ;;  %v3233_v41 = vsel %vm3169_vm9, %v3004_v16, %v3201_v19  ;;  %v2824_v52 = vpop.f32.mrf.mxu3 }
 0x374   : > { %v3262_v11 = vpack.c.bf16 %v3233_v41, %v3232_v63  ;;  %v2966_v13 = vpop.f32.mrf.mxu2  ;;  %v2871_v26 = vpop.f32.mrf.mxu0  ;;  %v3206_v63 = vmul.f32 0.2, %v5748_v37 }
 0x375   : > { %v2967_v4 = vadd.f32 %v2966_v13, %v2918_v28  ;;  %v2872_v56 = vadd.f32 %v2871_v26, %v2822_v9 }
 0x376   : > { %3278 = vst [vmem:[%s5846_s26 + $0x10] sm:$0xff] %v3262_v11  ;;  %v2920_v18 = vpop.f32.mrf.mxu1  ;;  %v3238_v13 = vsel %vm3174_vm14, %v5748_v37, %v3206_v63  ;;  %vm3190_vm14 = vcmp.ge.f32.partialorder %v5816_v8, 0.0 }
 0x377   : > { %v3006_v6 = vadd.f32 %v2967_v4, %v6224_v34  ;;  %v2921_v7 = vadd.f32 %v2920_v18, %v2872_v56 }
 0x379   : > { %v3054_v36 = vadd.f32 %v3053_v38, %v3006_v6  ;;  %v3091_v10 = vmul.f32 %v3006_v6, %v3006_v6  ;;  %vm3171_vm11 = vcmp.ge.f32.partialorder %v3006_v6, 0.0  ;;  %v3203_v60 = vmul.f32 0.2, %v3006_v6 }
 0x37b   : > { %v3139_v50 = vadd.f32 %v3138_v57, %v3091_v10  ;;  %v3235_v32 = vsel %vm3171_vm11, %v3006_v6, %v3203_v60  ;;  %v2827_v45 = vpop.f32.mrf.mxu3  ;;  %v6226_v57 = vld [vmem:[#allocation17_spill] sm:$0xff] }
 0x37c   : > { %v3263_v20 = vpack.c.bf16 %v3235_v32, %v3234_v44  ;;  %v2969_v1 = vpop.f32.mrf.mxu2  ;;  %v2873_v46 = vpop.f32.mrf.mxu0  ;;  %v6227_v10 = vld [vmem:[#allocation45_spill] sm:$0xff] }
 0x37d   : > { %v2970_v58 = vadd.f32 %v2969_v1, %v2921_v7  ;;  %v2874_v22 = vadd.f32 %v2873_v46, %v2824_v52 }
 0x37e   : > { %3279 = vst [vmem:[%s5846_s26 + $0x18] sm:$0xff] %v3263_v20  ;;  %v2922_v42 = vpop.f32.mrf.mxu1 }
 0x37f   : > { %v3008_v54 = vadd.f32 %v2970_v58, %v6225_v5  ;;  %v2923_v25 = vadd.f32 %v2922_v42, %v2874_v22 }
 0x381   : > { %v3055_v9 = vadd.f32 %v3054_v36, %v3008_v54  ;;  %v3093_v35 = vmul.f32 %v3008_v54, %v3008_v54  ;;  %vm3173_vm13 = vcmp.ge.f32.partialorder %v3008_v54, 0.0  ;;  %v3205_v15 = vmul.f32 0.2, %v3008_v54 }
 0x382   : > { %v3208_v36 = vmul.f32 0.2, %v5759_v43 }
 0x383   : > { %v3140_v30 = vadd.f32 %v3139_v50, %v3093_v35  ;;  %v3237_v23 = vsel %vm3173_vm13, %v3008_v54, %v3205_v15  ;;  %v2829_v24 = vpop.f32.mrf.mxu3  ;;  %v3210_v35 = vmul.f32 0.2, %v5765_v33  ;;  %v6228_v15 = vld [vmem:[#allocation34_spill] sm:$0xff] }
 0x384   : > { %v3264_v59 = vpack.c.bf16 %v3237_v23, %v3236_v62  ;;  %v2971_v16 = vpop.f32.mrf.mxu2  ;;  %v2876_v38 = vpop.f32.mrf.mxu0 }
 0x385   : > { %v2972_v17 = vadd.f32 %v2971_v16, %v2923_v25  ;;  %v2877_v47 = vadd.f32 %v2876_v38, %v2827_v45  ;;  %v3240_v45 = vsel %vm3176_vm0, %v5759_v43, %v3208_v36  ;;  %vm3192_vm0 = vcmp.ge.f32.partialorder %v5826_v31, 0.0 }
 0x386   : > { %3280 = vst [vmem:[%s5846_s26 + $0x20] sm:$0xff] %v3264_v59  ;;  %v2925_v19 = vpop.f32.mrf.mxu1 }
 0x387   : > { %v3010_v41 = vadd.f32 %v2972_v17, %v6226_v57  ;;  %v2926_v28 = vadd.f32 %v2925_v19, %v2877_v47 }
 0x389   : > { %v3056_v29 = vadd.f32 %v3055_v9, %v3010_v41  ;;  %v3095_v52 = vmul.f32 %v3010_v41, %v3010_v41  ;;  %vm3175_vm15 = vcmp.ge.f32.partialorder %v3010_v41, 0.0  ;;  %v3207_v11 = vmul.f32 0.2, %v3010_v41 }
 0x38b   : > { %v3141_v4 = vadd.f32 %v3140_v30, %v3095_v52  ;;  %v3239_v26 = vsel %vm3175_vm15, %v3010_v41, %v3207_v11  ;;  %v2832_v56 = vpop.f32.mrf.mxu3  ;;  %v3212_v41 = vmul.f32 0.2, %v5776_v48 }
 0x38c   : > { %v3265_v18 = vpack.c.bf16 %v3239_v26, %v3238_v13  ;;  %v2974_v49 = vpop.f32.mrf.mxu2  ;;  %v2878_v6 = vpop.f32.mrf.mxu0 }
 0x38d   : > { %v2975_v34 = vadd.f32 %v2974_v49, %v2926_v28  ;;  %v2879_v44 = vadd.f32 %v2878_v6, %v2829_v24  ;;  %v3242_v24 = vsel %vm3178_vm2, %v5765_v33, %v3210_v35  ;;  %v6229_v28 = vld [vmem:[#allocation46_spill] sm:$0xff]  ;;  %vm3194_vm2 = vcmp.ge.f32.partialorder %v5832_v27, 0.0 }
 0x38e   : > { %3281 = vst [vmem:[%s5846_s26 + $0x28] sm:$0xff] %v3265_v18  ;;  %v2927_v7 = vpop.f32.mrf.mxu1 }
 0x38f   : > { %v3012_v60 = vadd.f32 %v2975_v34, %v6227_v10  ;;  %v2928_v58 = vadd.f32 %v2927_v7, %v2879_v44  ;;  %v3214_v44 = vmul.f32 0.2, %v5782_v39 }
 0x391   : > { %v3057_v50 = vadd.f32 %v3056_v29, %v3012_v60  ;;  %v3097_v32 = vmul.f32 %v3012_v60, %v3012_v60  ;;  %vm3177_vm1 = vcmp.ge.f32.partialorder %v3012_v60, 0.0  ;;  %v3209_v37 = vmul.f32 0.2, %v3012_v60 }
 0x393   : > { %v3142_v20 = vadd.f32 %v3141_v4, %v3097_v32  ;;  %v3241_v1 = vsel %vm3177_vm1, %v3012_v60, %v3209_v37  ;;  %v2834_v46 = vpop.f32.mrf.mxu3  ;;  %v3244_v4 = vsel %vm3180_vm4, %v5776_v48, %v3212_v41 }
 0x394   : > { %v3266_v42 = vpack.c.bf16 %v3241_v1, %v3240_v45  ;;  %v2976_v21 = vpop.f32.mrf.mxu2  ;;  %v2881_v54 = vpop.f32.mrf.mxu0 }
 0x395   : > { %v2977_v5 = vadd.f32 %v2976_v21, %v2928_v58  ;;  %v2882_v22 = vadd.f32 %v2881_v54, %v2832_v56 }
 0x396   : > { %3282 = vst [vmem:[%s5846_s26 + $0x30] sm:$0xff] %v3266_v42  ;;  %v2930_v9 = vpop.f32.mrf.mxu1 }
 0x397   : > { %v3014_v62 = vadd.f32 %v2977_v5, %v6228_v15  ;;  %v2931_v30 = vadd.f32 %v2930_v9, %v2882_v22  ;;  %v3216_v22 = vmul.f32 0.2, %v5793_v55 }
 0x399   : > { %v3058_v43 = vadd.f32 %v3057_v50, %v3014_v62  ;;  %v3099_v23 = vmul.f32 %v3014_v62, %v3014_v62  ;;  %vm3179_vm3 = vcmp.ge.f32.partialorder %v3014_v62, 0.0  ;;  %v3211_v25 = vmul.f32 0.2, %v3014_v62 }
 0x39b   : > { %v3143_v59 = vadd.f32 %v3142_v20, %v3099_v23  ;;  %v3243_v16 = vsel %vm3179_vm3, %v3014_v62, %v3211_v25  ;;  %v2837_v47 = vpop.f32.mrf.mxu3  ;;  %v3246_v20 = vsel %vm3182_vm6, %v5782_v39, %v3214_v44 }
 0x39c   : > { %v3267_v17 = vpack.c.bf16 %v3243_v16, %v3242_v24  ;;  %v2979_v38 = vpop.f32.mrf.mxu2  ;;  %v2883_v63 = vpop.f32.mrf.mxu0 }
 0x39d   : > { %v2980_v19 = vadd.f32 %v2979_v38, %v2931_v30  ;;  %v2884_v52 = vadd.f32 %v2883_v63, %v2834_v46  ;;  %v3218_v63 = vmul.f32 0.2, %v5799_v40 }
 0x39e   : > { %3283 = vst [vmem:[%s5846_s26 + $0x38] sm:$0xff] %v3267_v17  ;;  %v2932_v57 = vpop.f32.mrf.mxu1 }
 0x39f   : > { %v3016_v29 = vadd.f32 %v2980_v19, %v6229_v28  ;;  %v2933_v18 = vadd.f32 %v2932_v57, %v2884_v52  ;;  %v6231_v57 = vld [vmem:[#allocation47_spill] sm:$0xff] }
 0x3a1   : > { %v3059_v11 = vadd.f32 %v3058_v43, %v3016_v29  ;;  %v3101_v13 = vmul.f32 %v3016_v29, %v3016_v29  ;;  %vm3181_vm5 = vcmp.ge.f32.partialorder %v3016_v29, 0.0  ;;  %v3213_v33 = vmul.f32 0.2, %v3016_v29 }
 0x3a2   : > { %v3248_v43 = vsel %vm3184_vm8, %v5793_v55, %v3216_v22 }
 0x3a3   : > { %v3144_v26 = vadd.f32 %v3143_v59, %v3101_v13  ;;  %v3245_v56 = vsel %vm3181_vm5, %v3016_v29, %v3213_v33  ;;  %v2839_v60 = vpop.f32.mrf.mxu3  ;;  %v3250_v13 = vsel %vm3186_vm10, %v5799_v40, %v3218_v63 }
 0x3a4   : > { %v3268_v49 = vpack.c.bf16 %v3245_v56, %v3244_v4  ;;  %v2981_v34 = vpop.f32.mrf.mxu2  ;;  %v2886_v7 = vpop.f32.mrf.mxu0 }
 0x3a5   : > { %v2982_v6 = vadd.f32 %v2981_v34, %v2933_v18  ;;  %v2887_v36 = vadd.f32 %v2886_v7, %v2837_v47 }
 0x3a6   : > { %3284 = vst [vmem:[%s5846_s26 + $0x40] sm:$0xff] %v3268_v49  ;;  %v2935_v10 = vpop.f32.mrf.mxu1 }
 0x3a7   : > { %v3018_v50 = vadd.f32 %v2982_v6, %v5629_v14  ;;  %v2936_v32 = vadd.f32 %v2935_v10, %v2887_v36  ;;  %v6230_v14 = vld [vmem:[#allocation15_spill] sm:$0xff]  ;;  %v3220_v6 = vmul.f32 0.2, %v5810_v61 }
 0x3a9   : > { %v3060_v48 = vadd.f32 %v3059_v11, %v3018_v50  ;;  %v3103_v37 = vmul.f32 %v3018_v50, %v3018_v50  ;;  %vm3183_vm7 = vcmp.ge.f32.partialorder %v3018_v50, 0.0  ;;  %v3215_v45 = vmul.f32 0.2, %v3018_v50 }
 0x3aa   : > { %v3252_v44 = vsel %vm3188_vm12, %v5810_v61, %v3220_v6 }
 0x3ab   : > { %v3145_v1 = vadd.f32 %v3144_v26, %v3103_v37  ;;  %v3247_v58 = vsel %vm3183_vm7, %v3018_v50, %v3215_v45  ;;  %v2842_v15 = vpop.f32.mrf.mxu3 }
 0x3ac   : > { %v3269_v46 = vpack.c.bf16 %v3247_v58, %v3246_v20  ;;  %v2984_v42 = vpop.f32.mrf.mxu2  ;;  %v2888_v5 = vpop.f32.mrf.mxu0 }
 0x3ad   : > { %v2985_v21 = vadd.f32 %v2984_v42, %v2936_v32  ;;  %v2889_v35 = vadd.f32 %v2888_v5, %v2839_v60 }
 0x3ae   : > { %3285 = vst [vmem:[%s5846_s26 + $0x48] sm:$0xff] %v3269_v46  ;;  %v2937_v54 = vpop.f32.mrf.mxu1  ;;  %v3222_v46 = vmul.f32 0.2, %v5816_v8 }
 0x3af   : > { %v3020_v9 = vadd.f32 %v2985_v21, %v6230_v14  ;;  %v2938_v24 = vadd.f32 %v2937_v54, %v2889_v35 }
 0x3b0   : > { %v3254_v14 = vsel %vm3190_vm14, %v5816_v8, %v3222_v46 }
 0x3b1   : > { %v3061_v62 = vadd.f32 %v3060_v48, %v3020_v9  ;;  %v3105_v30 = vmul.f32 %v3020_v9, %v3020_v9  ;;  %vm3185_vm9 = vcmp.ge.f32.partialorder %v3020_v9, 0.0  ;;  %v3217_v39 = vmul.f32 0.2, %v3020_v9 }
 0x3b3   : > { %v3146_v23 = vadd.f32 %v3145_v1, %v3105_v30  ;;  %v3249_v25 = vsel %vm3185_vm9, %v3020_v9, %v3217_v39  ;;  %v2844_v11 = vpop.f32.mrf.mxu3 }
 0x3b4   : > { %v3270_v59 = vpack.c.bf16 %v3249_v25, %v3248_v43  ;;  %v2986_v16 = vpop.f32.mrf.mxu2  ;;  %v2891_v38 = vpop.f32.mrf.mxu0 }
 0x3b5   : > { %v2987_v17 = vadd.f32 %v2986_v16, %v2938_v24  ;;  %v2892_v47 = vadd.f32 %v2891_v38, %v2842_v15  ;;  %v3046_v38 = vrot.slane %v5835_v12, 4 }
 0x3b6   : > { %3286 = vst [vmem:[%s5846_s26 + $0x50] sm:$0xff] %v3270_v59  ;;  %v2940_v19 = vpop.f32.mrf.mxu1 }
 0x3b7   : > { %v3022_v41 = vadd.f32 %v2987_v17, %v6231_v57  ;;  %v2941_v28 = vadd.f32 %v2940_v19, %v2892_v47  ;;  %v3131_v57 = vrot.slane %v5839_v3, 4 }
 0x3b9   : > { %v3062_v29 = vadd.f32 %v3061_v62, %v3022_v41  ;;  %v3107_v55 = vmul.f32 %v3022_v41, %v3022_v41  ;;  %vm3187_vm11 = vcmp.ge.f32.partialorder %v3022_v41, 0.0  ;;  %v3219_v52 = vmul.f32 0.2, %v3022_v41 }
 0x3bb   : > { %v3147_v33 = vadd.f32 %v3146_v23, %v3107_v55  ;;  %v3251_v4 = vsel %vm3187_vm11, %v3022_v41, %v3219_v52  ;;  %v2847_v45 = vpop.f32.mrf.mxu3  ;;  %v3132_v52 = vadd.f32 %v3131_v57, %v5839_v3 }
 0x3bc   : > { %v3271_v26 = vpack.c.bf16 %v3251_v4, %v3250_v13  ;;  %v2989_v56 = vpop.f32.mrf.mxu2  ;;  %v2893_v49 = vpop.f32.mrf.mxu0 }
 0x3bd   : > { %v2990_v18 = vadd.f32 %v2989_v56, %v2941_v28  ;;  %v2894_v36 = vadd.f32 %v2893_v49, %v2844_v11 }
 0x3be   : > { %3287 = vst [vmem:[%s5846_s26 + $0x58] sm:$0xff] %v3271_v26  ;;  %v2942_v34 = vpop.f32.mrf.mxu1 }
 0x3bf   : > { %v3024_v7 = vadd.f32 %v2990_v18, %v5676_v2  ;;  %v2943_v48 = vadd.f32 %v2942_v34, %v2894_v36  ;;  %v3133_v34 = vrot.slane %v3132_v52, 2 }
 0x3c1   : > { %v3063_v10 = vadd.f32 %v3062_v29, %v3024_v7  ;;  %v3109_v60 = vmul.f32 %v3024_v7, %v3024_v7  ;;  %vm3189_vm13 = vcmp.ge.f32.partialorder %v3024_v7, 0.0  ;;  %v3221_v40 = vmul.f32 0.2, %v3024_v7 }
 0x3c2   : > { %v3226_v29 = vmul.f32 0.2, %v5832_v27 }
 0x3c3   : > { %v3148_v50 = vadd.f32 %v3147_v33, %v3109_v60  ;;  %v3253_v32 = vsel %vm3189_vm13, %v3024_v7, %v3221_v40  ;;  %v2849_v43 = vpop.f32.mrf.mxu3 }
 0x3c4   : > { %v3272_v37 = vpack.c.bf16 %v3253_v32, %v3252_v44  ;;  %v2991_v20 = vpop.f32.mrf.mxu2  ;;  %v2896_v58 = vpop.f32.mrf.mxu0  ;;  %v3258_v4 = vsel %vm3194_vm2, %v5832_v27, %v3226_v29 }
 0x3c5   : > { %v2992_v1 = vadd.f32 %v2991_v20, %v2943_v48  ;;  %v2897_v2 = vadd.f32 %v2896_v58, %v2847_v45 }
 0x3c6   : > { %3288 = vst [vmem:[%s5846_s26 + $0x60] sm:$0xff] %v3272_v37  ;;  %v2945_v21 = vpop.f32.mrf.mxu1 }
 0x3c7   : > { %v3026_v42 = vadd.f32 %v2992_v1, %v5682_v53  ;;  %v2946_v5 = vadd.f32 %v2945_v21, %v2897_v2  ;;  %v3224_v53 = vmul.f32 0.2, %v5826_v31 }
 0x3c9   : > { %v3064_v61 = vadd.f32 %v3063_v10, %v3026_v42  ;;  %v3111_v54 = vmul.f32 %v3026_v42, %v3026_v42  ;;  %vm3191_vm15 = vcmp.ge.f32.partialorder %v3026_v42, 0.0  ;;  %v3223_v22 = vmul.f32 0.2, %v3026_v42 }
 0x3ca   : > { %v3256_v16 = vsel %vm3192_vm0, %v5826_v31, %v3224_v53  ;;  %v3047_v31 = vadd.f32 %v3046_v38, %v5835_v12 }
 0x3cb   : > { %v3149_v9 = vadd.f32 %v3148_v50, %v3111_v54  ;;  %v3255_v35 = vsel %vm3191_vm15, %v3026_v42, %v3223_v22 }
 0x3cc   : > { %v3273_v15 = vpack.c.bf16 %v3255_v35, %v3254_v14  ;;  %v2994_v62 = vpop.f32.mrf.mxu2  ;;  %v2898_v39 = vpop.f32.mrf.mxu0  ;;  %v3048_v18 = vrot.slane %v3047_v31, 2 }
 0x3cd   : > { %v2995_v30 = vadd.f32 %v2994_v62, %v2946_v5  ;;  %v2899_v25 = vadd.f32 %v2898_v39, %v2849_v43 }
 0x3ce   : > { %3289 = vst [vmem:[%s5846_s26 + $0x68] sm:$0xff] %v3273_v15  ;;  %v2947_v17 = vpop.f32.mrf.mxu1  ;;  %v3049_v27 = vadd.f32 %v3048_v18, %v3047_v31 }
 0x3cf   : > { %v3028_v23 = vadd.f32 %v2995_v30, %v5698_v51  ;;  %v2948_v63 = vadd.f32 %v2947_v17, %v2899_v25 }
 0x3d1   : > { %v3065_v24 = vadd.f32 %v3064_v61, %v3028_v23  ;;  %v3113_v59 = vmul.f32 %v3028_v23, %v3028_v23  ;;  %vm3193_vm1 = vcmp.ge.f32.partialorder %v3028_v23, 0.0  ;;  %v3225_v8 = vmul.f32 0.2, %v3028_v23 }
 0x3d3   : > { %v3150_v47 = vadd.f32 %v3149_v9, %v3113_v59  ;;  %v3257_v19 = vsel %vm3193_vm1, %v3028_v23, %v3225_v8 }
 0x3d4   : > { %v3274_v41 = vpack.c.bf16 %v3257_v19, %v3256_v16  ;;  %v2996_v51 = vpop.f32.mrf.mxu2 }
 0x3d5   : > { %v2997_v28 = vadd.f32 %v2996_v51, %v2948_v63 }
 0x3d6   : > { %3290 = vst [vmem:[%s5846_s26 + $0x70] sm:$0xff] %v3274_v41 }
 0x3d7   : > { %v3030_v55 = vadd.f32 %v2997_v28, %v5700_v0 }
 0x3d9   : > { %v3066_v11 = vadd.f32 %v3065_v24, %v3030_v55  ;;  %v3115_v13 = vmul.f32 %v3030_v55, %v3030_v55  ;;  %vm3195_vm3 = vcmp.ge.f32.partialorder %v3030_v55, 0.0  ;;  %v3227_v33 = vmul.f32 0.2, %v3030_v55 }
 0x3db   : > { %v3067_v26 = vrot.slane %v3066_v11, 4  ;;  %v3151_v12 = vadd.f32 %v3150_v47, %v3115_v13  ;;  %v3259_v56 = vsel %vm3195_vm3, %v3030_v55, %v3227_v33 }
 0x3dc   : > { %v3275_v0 = vpack.c.bf16 %v3259_v56, %v3258_v4 }
 0x3dd   : > { %v3068_v3 = vadd.f32 %v3067_v26, %v3066_v11  ;;  %v3152_v49 = vrot.slane %v3151_v12, 4 }
 0x3de   : > { %3291 = vst [vmem:[%s5846_s26 + $0x78] sm:$0xff] %v3275_v0 }
 0x3df   : > { %v3153_v6 = vadd.f32 %v3152_v49, %v3151_v12  ;;  %v3069_v7 = vrot.slane %v3068_v3, 2 }
 0x3e0   : > { %4589 = shalt.err (!%p4586_p10)
}
 0x3e1   : > { %s4699_s26 = smov 128   ;;  %s4700_s25 = smov 8   ;;  %v3154_v36 = vrot.slane %v3153_v6, 2  ;;  %v3070_v10 = vadd.f32 %v3069_v7, %v3068_v3  ;;  %v3134_v60 = vadd.f32 %v3133_v34, %v3132_v52  ;;  %v3050_v40 = vrot.slane %v3049_v27, 1 }
 0x3e2   : > { %4435 = dma.vmem_to_hbm [thread:$0]  (%p4795_p7), %s5932_s6, 2048, %s5934_s7, %s3293_s14, %s4699_s26, %s4699_s26, %s4700_s25   ;;  %v3079_v50 = vlaneseq  ;;  %vm3076_vm4 = vcmask 1040384  }
 0x3e3   : > { %s3331_s10 = scalar_lea.hbm %s6032_s3, %s4246_s13  ;;  %v3071_v44 = vrot.slane %v3070_v10, 1  ;;  %s3297_s12 = sand.u32 1, %s4747_s19   ;;  %v3155_v32 = vadd.f32 %v3154_v36, %v3153_v6  ;;  %v3135_v37 = vrot.slane %v3134_v60, 1  ;;  %v3051_v20 = vadd.f32 %v3050_v40, %v3049_v27 }
 0x3e4   : > { %s3345_s5 = scalar_lea.hbm %s6033_s4, %s4246_s13  ;;  %s246_s6 = scalar_lea.vmem [#allocation8], %s3502_s11  ;;  %vm5966_vm5 = vcmp.lt.s32.totalorder %v3079_v50, 256 }
 0x3e5   : > { %v3072_v48 = vadd.f32 %v3071_v44, %v3070_v10  ;;  %s3333_s7 = sshll.u32 %s246_s6, 4  ;;  %s3335_s14 = sshll.u32 %s3331_s10, 4  ;;  %v3156_v45 = vrot.slane %v3155_v32, 1  ;;  %v3136_v42 = vadd.f32 %v3135_v37, %v3134_v60  ;;  %s3334_s7 = int_to_ptr.vmem [resolvable:$true] %s3333_s7  ;;  %s3336_s14 = int_to_ptr.hbm [resolvable:$true] %s3335_s14 }
 0x3e6   : > { %s3349_s21 = sshll.u32 %s3345_s5, 4  ;;  %s253_s19 = scalar_lea.vmem [#allocation10], %s3502_s11  ;;  %s5977_s21 = int_to_ptr.hbm [resolvable:$true] %s3349_s21 }
 0x3e7   : > { %v3075_v1 = vrot.slane %v3072_v48, 7  ;;  %v3157_v2 = vadd.f32 %v3156_v45, %v3155_v32  ;;  %s3347_s13 = sshll.u32 %s253_s19, 4  ;;  %s5979_s24 = scalar_lea.sflag [#allocation9], %s3297_s12  ;;  %s5975_s13 = int_to_ptr.vmem [resolvable:$true] %s3347_s13 }
 0x3e8   : > { %s4604_s26 = sshra.s32 %s3336_s14, 4  ;;  %s4610_s28 = scalar_lea.hbm %s6032_s3, 4  ;;  %s4605_s26 = int_to_ptr.hbm [resolvable:$true] %s4604_s26 }
 0x3e9   : > { %v3077_v46 = vsel %vm3076_vm4, %v3051_v20, %v3075_v1  ;;  %v3160_v21 = vrot.slane %v3157_v2, 7  ;;  %s4606_s23 = scalar_lea.hbm %s4605_s26, 2  ;;  %p4611_p3 = scmp.lt.s32.totalorder %s4605_s26, %s6032_s3 }
 0x3ea   : > { %3083 = vst.msk [vmem:[%s246_s6] sm:$0x3] %vm5966_vm5, %v3077_v46  ;;  %p4607_p12 = scmp.ne.s32.totalorder %s4605_s26, %s4606_s23  ;;  %p4612_p5 = scmp.lt.s32.totalorder %s4610_s28, %s4606_s23 }
 0x3ec   : > { %p4608_p13 = pnand %p4607_p12, %p4795_p7  ;;  %p4613_p1 = por %p4612_p5, %p4611_p3 }
 0x3ee   : > { %p4609_p0 = pneg %p4608_p13 }
 0x3f0   : > { %p4614_p4 = pnand %p4613_p1, %p4609_p0 }
 0x3f2   : > { %4617 = shalt.err (!%p4614_p4)
}
 0x3f3   : > { %4436 = dma.vmem_to_hbm [thread:$0]  (%p4795_p7), %s3334_s7, 32, %s3336_s14, %s5979_s24   ;;  %v3161_v5 = vsel %vm3076_vm4, %v3136_v42, %v3160_v21 }
 0x3f4   : > { %3163 = vst.msk [vmem:[%s253_s19] sm:$0x3] %vm5966_vm5, %v3161_v5  ;;  %s4632_s12 = sshra.s32 %s5977_s21, 4  ;;  %s4638_s6 = scalar_lea.hbm %s6033_s4, 4  ;;  %s4633_s12 = int_to_ptr.hbm [resolvable:$true] %s4632_s12 }
 0x3f5   : > { %s4634_s20 = scalar_lea.hbm %s4633_s12, 2  ;;  %p4639_p2 = scmp.lt.s32.totalorder %s4633_s12, %s6033_s4 }
 0x3f6   : > { %p4635_p8 = scmp.ne.s32.totalorder %s4633_s12, %s4634_s20  ;;  %p4640_p10 = scmp.lt.s32.totalorder %s4638_s6, %s4634_s20 }
 0x3f8   : > { %p4636_p11 = pnand %p4635_p8, %p4795_p7  ;;  %p4641_p12 = por %p4640_p10, %p4639_p2 }
 0x3fa   : > { %p4637_p9 = pneg %p4636_p11 }
 0x3fc   : > { %p4642_p13 = pnand %p4641_p12, %p4637_p9 }
 0x3fe   : > { %4645 = shalt.err (!%p4642_p13)
}
 0x3ff   : > { %4437 = dma.vmem_to_hbm [thread:$0]  (%p4795_p7), %s5975_s13, 32, %s5977_s21, %s5979_s24  }
 0x400 PF: > { %s3361_s7 = sand.u32 1, %s4680_s15   ;;  %p6234_p0 = scmp.ge.s32.totalorder %s4692_s18, 2 }
 0x401   : > { %s3362_s14 = scalar_lea.sflag [#allocation4], %s3361_s7 }
 0x402   : > { %p4450_p3 = pnand %p6234_p0, %p4763_p6 }
 0x404   : > { %p4451_p5 = pneg %p4450_p3 }
 0x406   : > { %4671 = dma.done.wait (%p4451_p5), %s3362_s14, 2048  }
 0x407   : > { %4673 = vsyncadd (%p4451_p5), %s3362_s14, 4294965248  ;;  %s6235_s19 = sadd.s32 4294967294, %s4692_s18  }
 0x408   : > { %s3371_s11 = sand.u32 1, %s6235_s19  }
 0x409   : > { %s3372_s9 = scalar_lea.sflag [#allocation9], %s3371_s11 }
 0x40a   : > { %4675 = dma.done.wait (%p4451_p5), %s3372_s9, 64  }
 0x40b   : > { %4677 = vsyncadd (%p4451_p5), %s3372_s9, 4294967232  ;;  %p22_p7 = scmp.ge.s32.totalorder %s4781_s29, 4   ;;  %s6236_s15 = smov %s4684_s16 }
 0x40c   : > { %s6237_s16 = smov %s4688_s17  ;;  %s6238_s17 = smov %s4791_s8 }
 0x40d   : > { %s6239_s18 = smov %s4781_s29  ;;  %24 = sbr.rel (!%p22_p7) target bundleno = 8 (0x8), region = 111 }
 0x412   :  { %3388 = vsyncpa [#allocation3], 1 }
 0x413   :  { %3390 = vsyncpa [#allocation3 + $0x1], 1 }
 0x414   :  { %3391 = vsyncpa [#allocation6], 1 }
 0x415   :  { %3392 = vsyncpa [#allocation4], 1 }
 0x416   :  { %3394 = vsyncpa [#allocation4 + $0x1], 1 }
 0x417   :  { %3395 = vsyncpa [#allocation9], 1 }
 0x418   :  { %3397 = vsyncpa [#allocation9 + $0x1], 1 }

</bundles_post_ra>
